<compile_context>
chip_gen: v6e
topology: v6e:2x2x1
jax: 0.10.0
libtpu: 0.0.40
codegen_flags: <defaults>
</compile_context>

<pallas_src>
import functools

import jax
import jax.numpy as jnp
from jax import lax
from jax.experimental import pallas as pl
from jax.experimental.pallas import tpu as pltpu

EPS = 1e-5
MATMUL_DTYPE = jnp.float32  # set to jnp.bfloat16 to halve conv-input HBM bytes


# ---------------------------------------------------------------------------
# Kernel A: 1x1 conv (channel matmul) + per-tile BN partial statistics
# ---------------------------------------------------------------------------
def _conv1x1_stats_kernel(x_ref, w_ref, y_ref, stats_ref):
    # x: (1, Cin, M) block, w: (Cout, Cin), y: (1, Cout, M), stats: (1, Cout, 2)
    x = x_ref[0].astype(MATMUL_DTYPE)
    w = w_ref[...].astype(MATMUL_DTYPE)
    y = jnp.dot(w, x, preferred_element_type=jnp.float32)   # (Cout, M), lane-dense
    y_ref[0] = y
    s = jnp.sum(y, axis=1, keepdims=True)
    ss = jnp.sum(y * y, axis=1, keepdims=True)
    stats_ref[0] = jnp.concatenate([s, ss], axis=1)          # (Cout, 2), write-once


def conv1x1_with_stats(x_cm, w):
    """x_cm: (N, Cin, M) f32; w: (Cout, Cin). Returns y=(N,Cout,M), stats=(N,Cout,2)."""
    N, Cin, M = x_cm.shape
    Cout = w.shape[0]
    return pl.pallas_call(
        _conv1x1_stats_kernel,
        out_shape=(jax.ShapeDtypeStruct((N, Cout, M), jnp.float32),
                   jax.ShapeDtypeStruct((N, Cout, 2), jnp.float32)),
        grid_spec=pltpu.PrefetchScalarGridSpec(
            num_scalar_prefetch=0,
            grid=(N,),
            in_specs=[pl.BlockSpec((1, Cin, M), lambda n: (n, 0, 0)),
                      pl.BlockSpec((Cout, Cin), lambda n: (0, 0))],
            out_specs=(pl.BlockSpec((1, Cout, M), lambda n: (n, 0, 0)),
                       pl.BlockSpec((1, Cout, 2), lambda n: (n, 0, 0)))),
        compiler_params=pltpu.CompilerParams(dimension_semantics=("parallel",)),
    )(x_cm, w)


# ---------------------------------------------------------------------------
# BN glue: reduce the per-tile partial stats into per-channel scale / shift
# ---------------------------------------------------------------------------
def _bn_scale_shift(stats, count, gamma, beta):
    # stats: (tiles, C, 2).  NOTE: E[x^2]-E[x]^2 is fine at these scales; use a
    # two-pass / Welford scheme for very large reductions.
    tot = jnp.sum(stats, axis=0)                       # (C, 2)
    mean = tot[:, 0] / count
    var = jnp.maximum(tot[:, 1] / count - mean * mean, 0.0)
    inv = lax.rsqrt(var + EPS)
    scale = gamma * inv
    shift = beta - mean * scale
    return scale, shift


# ---------------------------------------------------------------------------
# Kernel B: fused per-channel BN affine (+ReLU) (+residual) applied in place
# ---------------------------------------------------------------------------
def _bn_act_kernel(y_ref, sc_ref, sh_ref, o_ref, *, relu):
    o = y_ref[0] * sc_ref[...] + sh_ref[...]
    if relu:
        o = jnp.maximum(o, 0.0)
    o_ref[0] = o


def _bn_res_relu_kernel(y_ref, sc_ref, sh_ref, res_ref, o_ref):
    o = y_ref[0] * sc_ref[...] + sh_ref[...] + res_ref[0]
    o_ref[0] = jnp.maximum(o, 0.0)


def bn_apply(y, scale, shift, *, relu, residual=None):
    N, C, M = y.shape
    sc = scale.reshape(C, 1).astype(jnp.float32)
    sh = shift.reshape(C, 1).astype(jnp.float32)
    row_spec = pl.BlockSpec((1, C, M), lambda n: (n, 0, 0))
    vec_spec = pl.BlockSpec((C, 1), lambda n: (0, 0))
    if residual is None:
        kernel = functools.partial(_bn_act_kernel, relu=relu)
        in_specs = [row_spec, vec_spec, vec_spec]
        args = (y, sc, sh)
    else:
        kernel = _bn_res_relu_kernel
        in_specs = [row_spec, vec_spec, vec_spec, row_spec]
        args = (y, sc, sh, residual)
    return pl.pallas_call(
        kernel,
        out_shape=jax.ShapeDtypeStruct((N, C, M), jnp.float32),
        grid_spec=pltpu.PrefetchScalarGridSpec(
            num_scalar_prefetch=0, grid=(N,),
            in_specs=in_specs,
            out_specs=row_spec),
        compiler_params=pltpu.CompilerParams(dimension_semantics=("parallel",)),
        input_output_aliases={0: 0},   # reuse the pre-BN buffer in place
    )(*args)


# ---------------------------------------------------------------------------
# Kernel C1: axial similarities (qk, qr, kr) + bn_similarity partial stats
# ---------------------------------------------------------------------------
def _axial_sim_kernel(qkv_ref, emb_ref, sim_ref, stats_ref, *, gpq):
    t = qkv_ref[0]                       # (G, 2*gp, L)
    q = t[:, :gpq, :]                    # (G, gpq, L)
    k = t[:, gpq:2 * gpq, :]             # (G, gpq, L)
    emb = emb_ref[...]                   # (2*gpq, L, L)
    q_emb = emb[:gpq]                    # (gpq, L, L)
    k_emb_t = emb[gpq:]                  # (gpq, L, L), pre-transposed in glue
    # Contraction dim (gpq) is tiny -> broadcast-multiply-reduce on the VPU.
    qk = jnp.sum(q[:, :, :, None] * k[:, :, None, :], axis=1)        # (G, L, L)
    qr = jnp.sum(q[:, :, :, None] * q_emb[None, :, :, :], axis=1)    # (G, L, L)
    kr = jnp.sum(k[:, :, None, :] * k_emb_t[None, :, :, :], axis=1)  # (G, L, L)
    sim = jnp.concatenate([qk, qr, kr], axis=0)                      # (3G, L, L)
    sim_ref[0] = sim
    s = jnp.sum(jnp.sum(sim, axis=2), axis=1, keepdims=True)         # (3G, 1)
    ss = jnp.sum(jnp.sum(sim * sim, axis=2), axis=1, keepdims=True)  # (3G, 1)
    stats_ref[0] = jnp.concatenate([s, ss], axis=1)                  # (3G, 2)


# ---------------------------------------------------------------------------
# Kernel C2: BN(similarity) + sum over {qk,qr,kr} + softmax + sv / sve
#            + bn_output partial stats
# ---------------------------------------------------------------------------
def _attn_softmax_sv_kernel(sim_ref, qkv_ref, vemb_ref, sc_ref, sh_ref,
                            sv_ref, sve_ref, stv_ref, stve_ref, *, groups, gp):
    G = groups
    sim = sim_ref[0] * sc_ref[...] + sh_ref[...]            # (3G, L, L)
    logits = sim[:G] + sim[G:2 * G] + sim[2 * G:3 * G]      # (G, L, L)
    m = jnp.max(logits, axis=2, keepdims=True)
    e = jnp.exp(logits - m)
    attn = e / jnp.sum(e, axis=2, keepdims=True)            # (G, L, L)
    v = qkv_ref[0][:, gp:, :]                               # (G, gp, L)
    # sv[g,c,i] = sum_j v[g,c,j] * attn[g,i,j]  (minor-dim contraction, batched)
    sv = lax.dot_general(v, attn,
                         dimension_numbers=(((2,), (2,)), ((0,), (0,))),
                         preferred_element_type=jnp.float32)   # (G, gp, L)
    vemb = vemb_ref[...]                                    # (gp, L, L)
    # sve[g,c,i] = sum_j attn[g,i,j] * v_emb[c,i,j]
    sve = jnp.sum(attn[:, None, :, :] * vemb[None, :, :, :], axis=3)  # (G, gp, L)
    sv_ref[0] = sv
    sve_ref[0] = sve
    stv_ref[0] = jnp.concatenate(
        [jnp.sum(sv, axis=2, keepdims=True),
         jnp.sum(sv * sv, axis=2, keepdims=True)], axis=2)   # (G, gp, 2)
    stve_ref[0] = jnp.concatenate(
        [jnp.sum(sve, axis=2, keepdims=True),
         jnp.sum(sve * sve, axis=2, keepdims=True)], axis=2)  # (G, gp, 2)


# ---------------------------------------------------------------------------
# Kernel D: bn_output affine + (sv, sve) channel-pair sum (+optional ReLU)
# ---------------------------------------------------------------------------
def _bn_pair_sum_kernel(sv_ref, sve_ref, a1_ref, b1_ref, a2_ref, b2_ref,
                        o_ref, *, relu):
    o = (sv_ref[0] * a1_ref[...] + b1_ref[...]
         + sve_ref[0] * a2_ref[...] + b2_ref[...])
    if relu:
        o = jnp.maximum(o, 0.0)
    o_ref[0] = o


# ---------------------------------------------------------------------------
# AxialAttention forward (Pallas)
# ---------------------------------------------------------------------------
def axial_attention(x, p, *, width_axis, fuse_relu):
    """x: (N, C, H, W). Returns (N, out_planes, H, W)."""
    N, C, H, W = x.shape
    two_op = p['w_qkv'].shape[0]
    op = two_op // 2
    G = p['bn_sim_g'].shape[0] // 3
    gp = op // G
    gpq = gp // 2

    # qkv 1x1 conv + BN1d, computed in NCHW layout (a 1x1 conv and per-channel
    # BN with global batch stats commute with the axial permute).
    M = H * W
    y, st = conv1x1_with_stats(x.reshape(N, C, M), p['w_qkv'])
    sc, sh = _bn_scale_shift(st, N * M, p['bn_qkv_g'], p['bn_qkv_b'])
    qkv = bn_apply(y, sc, sh, relu=False).reshape(N, two_op, H, W)

    # Reorder so the attended axis is last: (B, G, 2*gp, L).
    if width_axis:
        L, B = W, N * H
        qkvb = jnp.transpose(qkv, (0, 2, 1, 3)).reshape(B, two_op, L)
    else:
        L, B = H, N * W
        qkvb = jnp.transpose(qkv, (0, 3, 1, 2)).reshape(B, two_op, L)
    qkv4 = qkvb.reshape(B, G, 2 * gp, L)

    # Relative position embeddings (tiny gather -> glue).
    idx = (jnp.arange(L)[:, None] - jnp.arange(L)[None, :] + L - 1).reshape(-1)
    all_emb = jnp.take(p['relative'], idx, axis=1).reshape(2 * gp, L, L)
    q_emb = all_emb[:gpq]
    k_emb_t = jnp.transpose(all_emb[gpq:2 * gpq], (0, 2, 1))  # pre-transpose for kr
    v_emb = all_emb[gp:]
    emb_qk = jnp.concatenate([q_emb, k_emb_t], axis=0)         # (2*gpq, L, L)

    # Pass 1: similarities + bn_similarity partial stats.
    sim, st_sim = pl.pallas_call(
        functools.partial(_axial_sim_kernel, gpq=gpq),
        out_shape=(jax.ShapeDtypeStruct((B, 3 * G, L, L), jnp.float32),
                   jax.ShapeDtypeStruct((B, 3 * G, 2), jnp.float32)),
        grid_spec=pltpu.PrefetchScalarGridSpec(
            num_scalar_prefetch=0, grid=(B,),
            in_specs=[pl.BlockSpec((1, G, 2 * gp, L), lambda b: (b, 0, 0, 0)),
                      pl.BlockSpec((2 * gpq, L, L), lambda b: (0, 0, 0))],
            out_specs=(pl.BlockSpec((1, 3 * G, L, L), lambda b: (b, 0, 0, 0)),
                       pl.BlockSpec((1, 3 * G, 2), lambda b: (b, 0, 0)))),
        compiler_params=pltpu.CompilerParams(dimension_semantics=("parallel",)),
    )(qkv4, emb_qk)
    sc_sim, sh_sim = _bn_scale_shift(st_sim, B * L * L,
                                     p['bn_sim_g'], p['bn_sim_b'])

    # Pass 2: BN + sum(3) + softmax + sv/sve + bn_output partial stats.
    sv4, sve4, st_sv, st_sve = pl.pallas_call(
        functools.partial(_attn_softmax_sv_kernel, groups=G, gp=gp),
        out_shape=(jax.ShapeDtypeStruct((B, G, gp, L), jnp.float32),
                   jax.ShapeDtypeStruct((B, G, gp, L), jnp.float32),
                   jax.ShapeDtypeStruct((B, G, gp, 2), jnp.float32),
                   jax.ShapeDtypeStruct((B, G, gp, 2), jnp.float32)),
        grid_spec=pltpu.PrefetchScalarGridSpec(
            num_scalar_prefetch=0, grid=(B,),
            in_specs=[pl.BlockSpec((1, 3 * G, L, L), lambda b: (b, 0, 0, 0)),
                      pl.BlockSpec((1, G, 2 * gp, L), lambda b: (b, 0, 0, 0)),
                      pl.BlockSpec((gp, L, L), lambda b: (0, 0, 0)),
                      pl.BlockSpec((3 * G, 1, 1), lambda b: (0, 0, 0)),
                      pl.BlockSpec((3 * G, 1, 1), lambda b: (0, 0, 0))],
            out_specs=(pl.BlockSpec((1, G, gp, L), lambda b: (b, 0, 0, 0)),
                       pl.BlockSpec((1, G, gp, L), lambda b: (b, 0, 0, 0)),
                       pl.BlockSpec((1, G, gp, 2), lambda b: (b, 0, 0, 0)),
                       pl.BlockSpec((1, G, gp, 2), lambda b: (b, 0, 0, 0)))),
        compiler_params=pltpu.CompilerParams(dimension_semantics=("parallel",)),
    )(sim, qkv4, v_emb,
      sc_sim.reshape(3 * G, 1, 1), sh_sim.reshape(3 * G, 1, 1))

    # bn_output: even torch channels <-> sv, odd <-> sve.
    sv = sv4.reshape(B, op, L)
    sve = sve4.reshape(B, op, L)
    sc_sv, sh_sv = _bn_scale_shift(st_sv.reshape(B, op, 2), B * L,
                                   p['bn_out_g'][0::2], p['bn_out_b'][0::2])
    sc_sve, sh_sve = _bn_scale_shift(st_sve.reshape(B, op, 2), B * L,
                                     p['bn_out_g'][1::2], p['bn_out_b'][1::2])

    # Pass 3: fused bn_output affine + channel-pair sum (+ the AxialBlock ReLU
    # that follows the width block), in place over the sv buffer.
    row_spec = pl.BlockSpec((1, op, L), lambda b: (b, 0, 0))
    vec_spec = pl.BlockSpec((op, 1), lambda b: (0, 0))
    out_b = pl.pallas_call(
        functools.partial(_bn_pair_sum_kernel, relu=fuse_relu),
        out_shape=jax.ShapeDtypeStruct((B, op, L), jnp.float32),
        grid_spec=pltpu.PrefetchScalarGridSpec(
            num_scalar_prefetch=0, grid=(B,),
            in_specs=[row_spec, row_spec, vec_spec, vec_spec, vec_spec, vec_spec],
            out_specs=row_spec),
        compiler_params=pltpu.CompilerParams(dimension_semantics=("parallel",)),
        input_output_aliases={0: 0},
    )(sv, sve,
      sc_sv.reshape(op, 1), sh_sv.reshape(op, 1),
      sc_sve.reshape(op, 1), sh_sve.reshape(op, 1))

    # Back to NCHW.
    if width_axis:
        out = out_b.reshape(N, H, op, W).transpose(0, 2, 1, 3)
    else:
        out = out_b.reshape(N, W, op, L).transpose(0, 2, 3, 1)
    return out
    # TODO(synk): AvgPool2d path for stride > 1 is not implemented (AxialBlock
    # is exercised with its default stride=1).


# ---------------------------------------------------------------------------
# AxialBlock forward (Pallas)
# ---------------------------------------------------------------------------
def axial_block_forward(x, P):
    N, Cin, H, W = x.shape
    M = H * W
    x_cm = x.reshape(N, Cin, M).astype(jnp.float32)

    # conv_down -> bn1 -> relu (BN apply + ReLU fused, in place).
    y, st = conv1x1_with_stats(x_cm, P['w_down'])
    sc, sh = _bn_scale_shift(st, N * M, P['bn1_g'], P['bn1_b'])
    width = P['w_down'].shape[0]
    out = bn_apply(y, sc, sh, relu=True).reshape(N, width, H, W)

    # Height attention, then width attention (the AxialBlock ReLU that follows
    # the width block is fused into its final BN kernel).
    out = axial_attention(out, P['hight'], width_axis=False, fuse_relu=False)
    out = axial_attention(out, P['width'], width_axis=True, fuse_relu=True)

    # conv_up -> bn2 -> +identity -> relu (all fused into one BN-apply kernel).
    y2, st2 = conv1x1_with_stats(out.reshape(N, width, M), P['w_up'])
    sc2, sh2 = _bn_scale_shift(st2, N * M, P['bn2_g'], P['bn2_b'])
    out = bn_apply(y2, sc2, sh2, relu=True, residual=x_cm)
    return out.reshape(N, P['w_up'].shape[0], H, W)


# ---------------------------------------------------------------------------
# Pure-JAX reference (mirrors the PyTorch forward in train mode)
# ---------------------------------------------------------------------------
def _bn_train_ref(x, gamma, beta, axes):
    mean = jnp.mean(x, axis=axes, keepdims=True)
    var = jnp.mean((x - mean) ** 2, axis=axes, keepdims=True)
    shape = [1] * x.ndim
    shape[1] = x.shape[1]
    return (x - mean) * lax.rsqrt(var + EPS) * gamma.reshape(shape) + beta.reshape(shape)


def _axial_attention_ref(x, p, *, width_axis):
    N, C, H, W = x.shape
    two_op = p['w_qkv'].shape[0]
    op = two_op // 2
    G = p['bn_sim_g'].shape[0] // 3
    gp = op // G
    gpq = gp // 2
    if width_axis:
        xb = jnp.transpose(x, (0, 2, 1, 3)).reshape(N * H, C, W)
    else:
        xb = jnp.transpose(x, (0, 3, 1, 2)).reshape(N * W, C, H)
    B, _, L = xb.shape
    qkv = jnp.einsum('oc,bcl->bol', p['w_qkv'], xb)
    qkv = _bn_train_ref(qkv, p['bn_qkv_g'], p['bn_qkv_b'], axes=(0, 2))
    qkv4 = qkv.reshape(B, G, 2 * gp, L)
    q, k, v = qkv4[:, :, :gpq], qkv4[:, :, gpq:2 * gpq], qkv4[:, :, gp:]
    idx = (jnp.arange(L)[:, None] - jnp.arange(L)[None, :] + L - 1).reshape(-1)
    all_emb = jnp.take(p['relative'], idx, axis=1).reshape(2 * gp, L, L)
    q_emb, k_emb, v_emb = all_emb[:gpq], all_emb[gpq:2 * gpq], all_emb[gp:]
    qr = jnp.einsum('bgci,cij->bgij', q, q_emb)
    kr = jnp.einsum('bgci,cij->bgij', k, k_emb).transpose(0, 1, 3, 2)
    qk = jnp.einsum('bgci,bgcj->bgij', q, k)
    stacked = jnp.concatenate([qk, qr, kr], axis=1)
    stacked = _bn_train_ref(stacked, p['bn_sim_g'], p['bn_sim_b'], axes=(0, 2, 3))
    sim = jax.nn.softmax(stacked.reshape(B, 3, G, L, L).sum(axis=1), axis=3)
    sv = jnp.einsum('bgij,bgcj->bgci', sim, v)
    sve = jnp.einsum('bgij,cij->bgci', sim, v_emb)
    so = jnp.concatenate([sv, sve], axis=-1).reshape(B, two_op, L)
    so = _bn_train_ref(so, p['bn_out_g'], p['bn_out_b'], axes=(0, 2))
    out = so.reshape(B, op, 2, L).sum(axis=2)
    if width_axis:
        return out.reshape(N, H, op, W).transpose(0, 2, 1, 3)
    return out.reshape(N, W, op, L).transpose(0, 2, 3, 1)


def _axial_block_ref(x, P):
    conv = lambda w, t: jnp.einsum('oc,nchw->nohw', w, t)
    out = _bn_train_ref(conv(P['w_down'], x), P['bn1_g'], P['bn1_b'], axes=(0, 2, 3))
    out = jnp.maximum(out, 0.0)
    out = _axial_attention_ref(out, P['hight'], width_axis=False)
    out = _axial_attention_ref(out, P['width'], width_axis=True)
    out = jnp.maximum(out, 0.0)
    out = _bn_train_ref(conv(P['w_up'], out), P['bn2_g'], P['bn2_b'], axes=(0, 2, 3))
    return jnp.maximum(out + x, 0.0)


# ---------------------------------------------------------------------------
# Parameter construction (matches the PyTorch module's parameter shapes)
# ---------------------------------------------------------------------------
def make_params(key, *, inplanes, planes, groups, kernel_size, base_width=64):
    width = int(planes * (base_width / 64.0))
    op = width
    gp = op // groups
    ks = kernel_size
    keys = iter(jax.random.split(key, 16))

    def conv_w(k, cout, cin):
        return jax.random.normal(k, (cout, cin), jnp.float32) / jnp.sqrt(cin)

    def bn(k, c):
        kg, kb = jax.random.split(k)
        return (1.0 + 0.1 * jax.random.normal(kg, (c,), jnp.float32),
                0.1 * jax.random.normal(kb, (c,), jnp.float32))

    def attn(kw, kr, kbn):
        kb = jax.random.split(kbn, 3)
        p = {'w_qkv': conv_w(kw, 2 * op, width),
             'relative': jax.random.normal(kr, (2 * gp, 2 * ks - 1), jnp.float32)
                         * jnp.sqrt(1.0 / gp)}
        p['bn_qkv_g'], p['bn_qkv_b'] = bn(kb[0], 2 * op)
        p['bn_sim_g'], p['bn_sim_b'] = bn(kb[1], 3 * groups)
        p['bn_out_g'], p['bn_out_b'] = bn(kb[2], 2 * op)
        return p

    P = {'w_down': conv_w(next(keys), width, inplanes),
         'w_up': conv_w(next(keys), planes * 2, width)}
    P['bn1_g'], P['bn1_b'] = bn(next(keys), width)
    P['bn2_g'], P['bn2_b'] = bn(next(keys), planes * 2)
    P['hight'] = attn(next(keys), next(keys), next(keys))
    P['width'] = attn(next(keys), next(keys), next(keys))
    return P


if __name__ == "__main__":
    key = jax.random.PRNGKey(0)
    k_x, k_p = jax.random.split(key)

    # AxialBlock(inplanes=32, planes=16, groups=2, kernel_size=16), stride=1,
    # downsample=None, on a (2, 32, 16, 16) input -> (2, 32, 16, 16) output.
    N, inplanes, planes, groups, ks = 2, 32, 16, 2, 16
    x = jax.random.normal(k_x, (N, inplanes, ks, ks), jnp.float32)
    P = make_params(k_p, inplanes=inplanes, planes=planes, groups=groups,
                    kernel_size=ks)

    fwd = jax.jit(axial_block_forward)
    out = jax.block_until_ready(fwd(x, P))

    ref = _axial_block_ref(x, P)
    assert out.shape == ref.shape == (N, planes * 2, ks, ks)
    assert bool(jnp.allclose(out, ref, rtol=2e-3, atol=2e-3)), (
        f"max abs diff {float(jnp.max(jnp.abs(out - ref)))}")
    print("KERNEL_OK")
</pallas_src>

<mosaic_0001>
module attributes {stable_mosaic.version = 11 : i64} {
  func.func @_conv1x1_stats_kernel(%arg0: i32, %arg1: memref<1x32x256xf32, #tpu.memory_space<vmem>>, %arg2: memref<16x32xf32, #tpu.memory_space<vmem>>, %arg3: memref<1x16x256xf32, #tpu.memory_space<vmem>>, %arg4: memref<1x16x2xf32, #tpu.memory_space<vmem>>) attributes {dimension_semantics = [#tpu.dimension_semantics<parallel>], iteration_bounds = array<i64: 2>, scalar_prefetch = 0 : i64, scratch_operands = 0 : i64, tpu.core_type = #tpu.core_type<tc>, window_params = [{transform_indices = @transform_0, window_bounds = array<i64: 1, 32, 256>}, {pipeline_mode = #tpu.pipeline_mode<synchronous>, transform_indices = @transform_1, window_bounds = array<i64: 16, 32>}, {transform_indices = @transform_2, window_bounds = array<i64: 1, 16, 256>}, {transform_indices = @transform_3, window_bounds = array<i64: 1, 16, 2>}]} {
    %c0 = arith.constant 0 : index
    %c0_0 = arith.constant 0 : index
    %c0_1 = arith.constant 0 : index
    %0 = vector.load %arg1[%c0, %c0_0, %c0_1] : memref<1x32x256xf32, #tpu.memory_space<vmem>>, vector<1x32x256xf32>
    %1 = vector.shape_cast %0 : vector<1x32x256xf32> to vector<32x256xf32>
    %c0_2 = arith.constant 0 : index
    %c0_3 = arith.constant 0 : index
    %2 = vector.load %arg2[%c0_2, %c0_3] : memref<16x32xf32, #tpu.memory_space<vmem>>, vector<16x32xf32>
    %cst = arith.constant dense<0.000000e+00> : vector<16x256xf32>
    %3 = tpu.matmul %2, %1, %cst {dimension_numbers = #tpu.dot_dimension_numbers<[1], [0], [0], [1], [0, 0, 1, 1], [], []>} : vector<16x32xf32>, vector<32x256xf32>, vector<16x256xf32> -> vector<16x256xf32>
    %c0_4 = arith.constant 0 : index
    %c0_5 = arith.constant 0 : index
    %c0_6 = arith.constant 0 : index
    %4 = vector.load %arg3[%c0_4, %c0_5, %c0_6] : memref<1x16x256xf32, #tpu.memory_space<vmem>>, vector<1x16x256xf32>
    %5 = vector.shape_cast %4 : vector<1x16x256xf32> to vector<16x256xf32>
    %6 = vector.shape_cast %3 : vector<16x256xf32> to vector<1x16x256xf32>
    tpu.vector_store %arg3[%c0_4, %c0_5, %c0_6], %6 {strides = array<i32>} : memref<1x16x256xf32, #tpu.memory_space<vmem>>, vector<1x16x256xf32>,
    %cst_7 = arith.constant dense<0.000000e+00> : vector<16xf32>
    %7 = vector.multi_reduction <add>, %3, %cst_7 [1] : vector<16x256xf32> to vector<16xf32>
    %8 = vector.shape_cast %7 : vector<16xf32> to vector<16x1xf32>
    %9 = arith.mulf %3, %3 : vector<16x256xf32>
    %cst_8 = arith.constant dense<0.000000e+00> : vector<16xf32>
    %10 = vector.multi_reduction <add>, %9, %cst_8 [1] : vector<16x256xf32> to vector<16xf32>
    %11 = vector.shape_cast %10 : vector<16xf32> to vector<16x1xf32>
    %12 = tpu.concatenate %8, %11 in 1 : vector<16x1xf32>, vector<16x1xf32> -> vector<16x2xf32>
    %c0_9 = arith.constant 0 : index
    %c0_10 = arith.constant 0 : index
    %c0_11 = arith.constant 0 : index
    %13 = vector.load %arg4[%c0_9, %c0_10, %c0_11] : memref<1x16x2xf32, #tpu.memory_space<vmem>>, vector<1x16x2xf32>
    %14 = vector.shape_cast %13 : vector<1x16x2xf32> to vector<16x2xf32>
    %15 = vector.shape_cast %12 : vector<16x2xf32> to vector<1x16x2xf32>
    tpu.vector_store %arg4[%c0_9, %c0_10, %c0_11], %15 {strides = array<i32>} : memref<1x16x2xf32, #tpu.memory_space<vmem>>, vector<1x16x2xf32>,
    return
  }
  func.func @transform_0(%arg0: i32) -> (i32, i32, i32) {
    %c0_i32 = arith.constant 0 : i32
    %c0_i32_0 = arith.constant 0 : i32
    %c0_i32_1 = arith.constant 0 : i32
    return %arg0, %c0_i32, %c0_i32_0 : i32, i32, i32
  }
  func.func @transform_1(%arg0: i32) -> (i32, i32) {
    %c0_i32 = arith.constant 0 : i32
    %c0_i32_0 = arith.constant 0 : i32
    %c0_i32_1 = arith.constant 0 : i32
    return %c0_i32, %c0_i32_0 : i32, i32
  }
  func.func @transform_2(%arg0: i32) -> (i32, i32, i32) {
    %c0_i32 = arith.constant 0 : i32
    %c0_i32_0 = arith.constant 0 : i32
    %c0_i32_1 = arith.constant 0 : i32
    return %arg0, %c0_i32, %c0_i32_0 : i32, i32, i32
  }
  func.func @transform_3(%arg0: i32) -> (i32, i32, i32) {
    %c0_i32 = arith.constant 0 : i32
    %c0_i32_0 = arith.constant 0 : i32
    %c0_i32_1 = arith.constant 0 : i32
    return %arg0, %c0_i32, %c0_i32_0 : i32, i32, i32
  }
}

module attributes {stable_mosaic.version = 11 : i64} {
  func.func @_bn_act_kernel(%arg0: i32, %arg1: memref<1x16x256xf32, #tpu.memory_space<vmem>>, %arg2: memref<16x1xf32, #tpu.memory_space<vmem>>, %arg3: memref<16x1xf32, #tpu.memory_space<vmem>>, %arg4: memref<1x16x256xf32, #tpu.memory_space<vmem>>) attributes {dimension_semantics = [#tpu.dimension_semantics<parallel>], iteration_bounds = array<i64: 2>, scalar_prefetch = 0 : i64, scratch_operands = 0 : i64, tpu.core_type = #tpu.core_type<tc>, window_params = [{transform_indices = @transform_0, window_bounds = array<i64: 1, 16, 256>}, {pipeline_mode = #tpu.pipeline_mode<synchronous>, transform_indices = @transform_1, window_bounds = array<i64: 16, 1>}, {pipeline_mode = #tpu.pipeline_mode<synchronous>, transform_indices = @transform_2, window_bounds = array<i64: 16, 1>}, {transform_indices = @transform_3, window_bounds = array<i64: 1, 16, 256>}]} {
    %c0 = arith.constant 0 : index
    %c0_0 = arith.constant 0 : index
    %c0_1 = arith.constant 0 : index
    %0 = vector.load %arg1[%c0, %c0_0, %c0_1] : memref<1x16x256xf32, #tpu.memory_space<vmem>>, vector<1x16x256xf32>
    %1 = vector.shape_cast %0 : vector<1x16x256xf32> to vector<16x256xf32>
    %c0_2 = arith.constant 0 : index
    %c0_3 = arith.constant 0 : index
    %2 = vector.load %arg2[%c0_2, %c0_3] : memref<16x1xf32, #tpu.memory_space<vmem>>, vector<16x1xf32>
    %3 = vector.broadcast %2 : vector<16x1xf32> to vector<16x256xf32>
    %4 = arith.mulf %1, %3 : vector<16x256xf32>
    %c0_4 = arith.constant 0 : index
    %c0_5 = arith.constant 0 : index
    %5 = vector.load %arg3[%c0_4, %c0_5] : memref<16x1xf32, #tpu.memory_space<vmem>>, vector<16x1xf32>
    %6 = vector.broadcast %5 : vector<16x1xf32> to vector<16x256xf32>
    %7 = arith.addf %4, %6 : vector<16x256xf32>
    %cst = arith.constant 0.000000e+00 : f32
    %8 = vector.broadcast %cst : f32 to vector<16x256xf32>
    %9 = arith.maximumf %7, %8 : vector<16x256xf32>
    %c0_6 = arith.constant 0 : index
    %c0_7 = arith.constant 0 : index
    %c0_8 = arith.constant 0 : index
    %10 = vector.load %arg4[%c0_6, %c0_7, %c0_8] : memref<1x16x256xf32, #tpu.memory_space<vmem>>, vector<1x16x256xf32>
    %11 = vector.shape_cast %10 : vector<1x16x256xf32> to vector<16x256xf32>
    %12 = vector.shape_cast %9 : vector<16x256xf32> to vector<1x16x256xf32>
    tpu.vector_store %arg4[%c0_6, %c0_7, %c0_8], %12 {strides = array<i32>} : memref<1x16x256xf32, #tpu.memory_space<vmem>>, vector<1x16x256xf32>,
    return
  }
  func.func @transform_0(%arg0: i32) -> (i32, i32, i32) {
    %c0_i32 = arith.constant 0 : i32
    %c0_i32_0 = arith.constant 0 : i32
    %c0_i32_1 = arith.constant 0 : i32
    return %arg0, %c0_i32, %c0_i32_0 : i32, i32, i32
  }
  func.func @transform_1(%arg0: i32) -> (i32, i32) {
    %c0_i32 = arith.constant 0 : i32
    %c0_i32_0 = arith.constant 0 : i32
    %c0_i32_1 = arith.constant 0 : i32
    return %c0_i32, %c0_i32_0 : i32, i32
  }
  func.func @transform_2(%arg0: i32) -> (i32, i32) {
    %c0_i32 = arith.constant 0 : i32
    %c0_i32_0 = arith.constant 0 : i32
    %c0_i32_1 = arith.constant 0 : i32
    return %c0_i32, %c0_i32_0 : i32, i32
  }
  func.func @transform_3(%arg0: i32) -> (i32, i32, i32) {
    %c0_i32 = arith.constant 0 : i32
    %c0_i32_0 = arith.constant 0 : i32
    %c0_i32_1 = arith.constant 0 : i32
    return %arg0, %c0_i32, %c0_i32_0 : i32, i32, i32
  }
}

module attributes {stable_mosaic.version = 11 : i64} {
  func.func @_conv1x1_stats_kernel(%arg0: i32, %arg1: memref<1x16x256xf32, #tpu.memory_space<vmem>>, %arg2: memref<32x16xf32, #tpu.memory_space<vmem>>, %arg3: memref<1x32x256xf32, #tpu.memory_space<vmem>>, %arg4: memref<1x32x2xf32, #tpu.memory_space<vmem>>) attributes {dimension_semantics = [#tpu.dimension_semantics<parallel>], iteration_bounds = array<i64: 2>, scalar_prefetch = 0 : i64, scratch_operands = 0 : i64, tpu.core_type = #tpu.core_type<tc>, window_params = [{transform_indices = @transform_0, window_bounds = array<i64: 1, 16, 256>}, {pipeline_mode = #tpu.pipeline_mode<synchronous>, transform_indices = @transform_1, window_bounds = array<i64: 32, 16>}, {transform_indices = @transform_2, window_bounds = array<i64: 1, 32, 256>}, {transform_indices = @transform_3, window_bounds = array<i64: 1, 32, 2>}]} {
    %c0 = arith.constant 0 : index
    %c0_0 = arith.constant 0 : index
    %c0_1 = arith.constant 0 : index
    %0 = vector.load %arg1[%c0, %c0_0, %c0_1] : memref<1x16x256xf32, #tpu.memory_space<vmem>>, vector<1x16x256xf32>
    %1 = vector.shape_cast %0 : vector<1x16x256xf32> to vector<16x256xf32>
    %c0_2 = arith.constant 0 : index
    %c0_3 = arith.constant 0 : index
    %2 = vector.load %arg2[%c0_2, %c0_3] : memref<32x16xf32, #tpu.memory_space<vmem>>, vector<32x16xf32>
    %cst = arith.constant dense<0.000000e+00> : vector<32x256xf32>
    %3 = tpu.matmul %2, %1, %cst {dimension_numbers = #tpu.dot_dimension_numbers<[1], [0], [0], [1], [0, 0, 1, 1], [], []>} : vector<32x16xf32>, vector<16x256xf32>, vector<32x256xf32> -> vector<32x256xf32>
    %c0_4 = arith.constant 0 : index
    %c0_5 = arith.constant 0 : index
    %c0_6 = arith.constant 0 : index
    %4 = vector.load %arg3[%c0_4, %c0_5, %c0_6] : memref<1x32x256xf32, #tpu.memory_space<vmem>>, vector<1x32x256xf32>
    %5 = vector.shape_cast %4 : vector<1x32x256xf32> to vector<32x256xf32>
    %6 = vector.shape_cast %3 : vector<32x256xf32> to vector<1x32x256xf32>
    tpu.vector_store %arg3[%c0_4, %c0_5, %c0_6], %6 {strides = array<i32>} : memref<1x32x256xf32, #tpu.memory_space<vmem>>, vector<1x32x256xf32>,
    %cst_7 = arith.constant dense<0.000000e+00> : vector<32xf32>
    %7 = vector.multi_reduction <add>, %3, %cst_7 [1] : vector<32x256xf32> to vector<32xf32>
    %8 = vector.shape_cast %7 : vector<32xf32> to vector<32x1xf32>
    %9 = arith.mulf %3, %3 : vector<32x256xf32>
    %cst_8 = arith.constant dense<0.000000e+00> : vector<32xf32>
    %10 = vector.multi_reduction <add>, %9, %cst_8 [1] : vector<32x256xf32> to vector<32xf32>
    %11 = vector.shape_cast %10 : vector<32xf32> to vector<32x1xf32>
    %12 = tpu.concatenate %8, %11 in 1 : vector<32x1xf32>, vector<32x1xf32> -> vector<32x2xf32>
    %c0_9 = arith.constant 0 : index
    %c0_10 = arith.constant 0 : index
    %c0_11 = arith.constant 0 : index
    %13 = vector.load %arg4[%c0_9, %c0_10, %c0_11] : memref<1x32x2xf32, #tpu.memory_space<vmem>>, vector<1x32x2xf32>
    %14 = vector.shape_cast %13 : vector<1x32x2xf32> to vector<32x2xf32>
    %15 = vector.shape_cast %12 : vector<32x2xf32> to vector<1x32x2xf32>
    tpu.vector_store %arg4[%c0_9, %c0_10, %c0_11], %15 {strides = array<i32>} : memref<1x32x2xf32, #tpu.memory_space<vmem>>, vector<1x32x2xf32>,
    return
  }
  func.func @transform_0(%arg0: i32) -> (i32, i32, i32) {
    %c0_i32 = arith.constant 0 : i32
    %c0_i32_0 = arith.constant 0 : i32
    %c0_i32_1 = arith.constant 0 : i32
    return %arg0, %c0_i32, %c0_i32_0 : i32, i32, i32
  }
  func.func @transform_1(%arg0: i32) -> (i32, i32) {
    %c0_i32 = arith.constant 0 : i32
    %c0_i32_0 = arith.constant 0 : i32
    %c0_i32_1 = arith.constant 0 : i32
    return %c0_i32, %c0_i32_0 : i32, i32
  }
  func.func @transform_2(%arg0: i32) -> (i32, i32, i32) {
    %c0_i32 = arith.constant 0 : i32
    %c0_i32_0 = arith.constant 0 : i32
    %c0_i32_1 = arith.constant 0 : i32
    return %arg0, %c0_i32, %c0_i32_0 : i32, i32, i32
  }
  func.func @transform_3(%arg0: i32) -> (i32, i32, i32) {
    %c0_i32 = arith.constant 0 : i32
    %c0_i32_0 = arith.constant 0 : i32
    %c0_i32_1 = arith.constant 0 : i32
    return %arg0, %c0_i32, %c0_i32_0 : i32, i32, i32
  }
}

module attributes {stable_mosaic.version = 11 : i64} {
  func.func @_bn_act_kernel(%arg0: i32, %arg1: memref<1x32x256xf32, #tpu.memory_space<vmem>>, %arg2: memref<32x1xf32, #tpu.memory_space<vmem>>, %arg3: memref<32x1xf32, #tpu.memory_space<vmem>>, %arg4: memref<1x32x256xf32, #tpu.memory_space<vmem>>) attributes {dimension_semantics = [#tpu.dimension_semantics<parallel>], iteration_bounds = array<i64: 2>, scalar_prefetch = 0 : i64, scratch_operands = 0 : i64, tpu.core_type = #tpu.core_type<tc>, window_params = [{transform_indices = @transform_0, window_bounds = array<i64: 1, 32, 256>}, {pipeline_mode = #tpu.pipeline_mode<synchronous>, transform_indices = @transform_1, window_bounds = array<i64: 32, 1>}, {pipeline_mode = #tpu.pipeline_mode<synchronous>, transform_indices = @transform_2, window_bounds = array<i64: 32, 1>}, {transform_indices = @transform_3, window_bounds = array<i64: 1, 32, 256>}]} {
    %c0 = arith.constant 0 : index
    %c0_0 = arith.constant 0 : index
    %c0_1 = arith.constant 0 : index
    %0 = vector.load %arg1[%c0, %c0_0, %c0_1] : memref<1x32x256xf32, #tpu.memory_space<vmem>>, vector<1x32x256xf32>
    %1 = vector.shape_cast %0 : vector<1x32x256xf32> to vector<32x256xf32>
    %c0_2 = arith.constant 0 : index
    %c0_3 = arith.constant 0 : index
    %2 = vector.load %arg2[%c0_2, %c0_3] : memref<32x1xf32, #tpu.memory_space<vmem>>, vector<32x1xf32>
    %3 = vector.broadcast %2 : vector<32x1xf32> to vector<32x256xf32>
    %4 = arith.mulf %1, %3 : vector<32x256xf32>
    %c0_4 = arith.constant 0 : index
    %c0_5 = arith.constant 0 : index
    %5 = vector.load %arg3[%c0_4, %c0_5] : memref<32x1xf32, #tpu.memory_space<vmem>>, vector<32x1xf32>
    %6 = vector.broadcast %5 : vector<32x1xf32> to vector<32x256xf32>
    %7 = arith.addf %4, %6 : vector<32x256xf32>
    %c0_6 = arith.constant 0 : index
    %c0_7 = arith.constant 0 : index
    %c0_8 = arith.constant 0 : index
    %8 = vector.load %arg4[%c0_6, %c0_7, %c0_8] : memref<1x32x256xf32, #tpu.memory_space<vmem>>, vector<1x32x256xf32>
    %9 = vector.shape_cast %8 : vector<1x32x256xf32> to vector<32x256xf32>
    %10 = vector.shape_cast %7 : vector<32x256xf32> to vector<1x32x256xf32>
    tpu.vector_store %arg4[%c0_6, %c0_7, %c0_8], %10 {strides = array<i32>} : memref<1x32x256xf32, #tpu.memory_space<vmem>>, vector<1x32x256xf32>,
    return
  }
  func.func @transform_0(%arg0: i32) -> (i32, i32, i32) {
    %c0_i32 = arith.constant 0 : i32
    %c0_i32_0 = arith.constant 0 : i32
    %c0_i32_1 = arith.constant 0 : i32
    return %arg0, %c0_i32, %c0_i32_0 : i32, i32, i32
  }
  func.func @transform_1(%arg0: i32) -> (i32, i32) {
    %c0_i32 = arith.constant 0 : i32
    %c0_i32_0 = arith.constant 0 : i32
    %c0_i32_1 = arith.constant 0 : i32
    return %c0_i32, %c0_i32_0 : i32, i32
  }
  func.func @transform_2(%arg0: i32) -> (i32, i32) {
    %c0_i32 = arith.constant 0 : i32
    %c0_i32_0 = arith.constant 0 : i32
    %c0_i32_1 = arith.constant 0 : i32
    return %c0_i32, %c0_i32_0 : i32, i32
  }
  func.func @transform_3(%arg0: i32) -> (i32, i32, i32) {
    %c0_i32 = arith.constant 0 : i32
    %c0_i32_0 = arith.constant 0 : i32
    %c0_i32_1 = arith.constant 0 : i32
    return %arg0, %c0_i32, %c0_i32_0 : i32, i32, i32
  }
}

module attributes {stable_mosaic.version = 11 : i64} {
  func.func @_axial_sim_kernel(%arg0: i32, %arg1: memref<1x2x16x16xf32, #tpu.memory_space<vmem>>, %arg2: memref<8x16x16xf32, #tpu.memory_space<vmem>>, %arg3: memref<1x6x16x16xf32, #tpu.memory_space<vmem>>, %arg4: memref<1x6x2xf32, #tpu.memory_space<vmem>>) attributes {dimension_semantics = [#tpu.dimension_semantics<parallel>], iteration_bounds = array<i64: 32>, scalar_prefetch = 0 : i64, scratch_operands = 0 : i64, tpu.core_type = #tpu.core_type<tc>, window_params = [{transform_indices = @transform_0, window_bounds = array<i64: 1, 2, 16, 16>}, {pipeline_mode = #tpu.pipeline_mode<synchronous>, transform_indices = @transform_1, window_bounds = array<i64: 8, 16, 16>}, {transform_indices = @transform_2, window_bounds = array<i64: 1, 6, 16, 16>}, {transform_indices = @transform_3, window_bounds = array<i64: 1, 6, 2>}]} {
    %c0 = arith.constant 0 : index
    %c0_0 = arith.constant 0 : index
    %c0_1 = arith.constant 0 : index
    %c0_2 = arith.constant 0 : index
    %0 = vector.load %arg1[%c0, %c0_0, %c0_1, %c0_2] : memref<1x2x16x16xf32, #tpu.memory_space<vmem>>, vector<1x2x16x16xf32>
    %1 = vector.shape_cast %0 : vector<1x2x16x16xf32> to vector<2x16x16xf32>
    %2 = vector.extract_strided_slice %1 {offsets = [0, 0, 0], sizes = [2, 4, 16], strides = [1, 1, 1]} : vector<2x16x16xf32> to vector<2x4x16xf32>
    %3 = vector.extract_strided_slice %1 {offsets = [0, 4, 0], sizes = [2, 4, 16], strides = [1, 1, 1]} : vector<2x16x16xf32> to vector<2x4x16xf32>
    %c0_3 = arith.constant 0 : index
    %c0_4 = arith.constant 0 : index
    %c0_5 = arith.constant 0 : index
    %4 = vector.load %arg2[%c0_3, %c0_4, %c0_5] : memref<8x16x16xf32, #tpu.memory_space<vmem>>, vector<8x16x16xf32>
    %5 = vector.extract_strided_slice %4 {offsets = [0, 0, 0], sizes = [4, 16, 16], strides = [1, 1, 1]} : vector<8x16x16xf32> to vector<4x16x16xf32>
    %6 = vector.extract_strided_slice %4 {offsets = [4, 0, 0], sizes = [4, 16, 16], strides = [1, 1, 1]} : vector<8x16x16xf32> to vector<4x16x16xf32>
    %7 = vector.shape_cast %2 : vector<2x4x16xf32> to vector<2x4x16x1xf32>
    %8 = vector.shape_cast %3 : vector<2x4x16xf32> to vector<2x4x1x16xf32>
    %9 = vector.broadcast %7 : vector<2x4x16x1xf32> to vector<2x4x16x16xf32>
    %10 = vector.broadcast %8 : vector<2x4x1x16xf32> to vector<2x4x16x16xf32>
    %11 = arith.mulf %9, %10 : vector<2x4x16x16xf32>
    %cst = arith.constant dense<0.000000e+00> : vector<2x16x16xf32>
    %12 = vector.multi_reduction <add>, %11, %cst [1] : vector<2x4x16x16xf32> to vector<2x16x16xf32>
    %13 = vector.shape_cast %2 : vector<2x4x16xf32> to vector<2x4x16x1xf32>
    %14 = vector.shape_cast %5 : vector<4x16x16xf32> to vector<1x4x16x16xf32>
    %15 = vector.broadcast %13 : vector<2x4x16x1xf32> to vector<2x4x16x16xf32>
    %16 = vector.broadcast %14 : vector<1x4x16x16xf32> to vector<2x4x16x16xf32>
    %17 = arith.mulf %15, %16 : vector<2x4x16x16xf32>
    %cst_6 = arith.constant dense<0.000000e+00> : vector<2x16x16xf32>
    %18 = vector.multi_reduction <add>, %17, %cst_6 [1] : vector<2x4x16x16xf32> to vector<2x16x16xf32>
    %19 = vector.shape_cast %3 : vector<2x4x16xf32> to vector<2x4x1x16xf32>
    %20 = vector.shape_cast %6 : vector<4x16x16xf32> to vector<1x4x16x16xf32>
    %21 = vector.broadcast %19 : vector<2x4x1x16xf32> to vector<2x4x16x16xf32>
    %22 = vector.broadcast %20 : vector<1x4x16x16xf32> to vector<2x4x16x16xf32>
    %23 = arith.mulf %21, %22 : vector<2x4x16x16xf32>
    %cst_7 = arith.constant dense<0.000000e+00> : vector<2x16x16xf32>
    %24 = vector.multi_reduction <add>, %23, %cst_7 [1] : vector<2x4x16x16xf32> to vector<2x16x16xf32>
    %25 = tpu.concatenate %12, %18, %24 in 0 : vector<2x16x16xf32>, vector<2x16x16xf32>, vector<2x16x16xf32> -> vector<6x16x16xf32>
    %c0_8 = arith.constant 0 : index
    %c0_9 = arith.constant 0 : index
    %c0_10 = arith.constant 0 : index
    %c0_11 = arith.constant 0 : index
    %26 = vector.load %arg3[%c0_8, %c0_9, %c0_10, %c0_11] : memref<1x6x16x16xf32, #tpu.memory_space<vmem>>, vector<1x6x16x16xf32>
    %27 = vector.shape_cast %26 : vector<1x6x16x16xf32> to vector<6x16x16xf32>
    %28 = vector.shape_cast %25 : vector<6x16x16xf32> to vector<1x6x16x16xf32>
    tpu.vector_store %arg3[%c0_8, %c0_9, %c0_10, %c0_11], %28 {strides = array<i32>} : memref<1x6x16x16xf32, #tpu.memory_space<vmem>>, vector<1x6x16x16xf32>,
    %cst_12 = arith.constant dense<0.000000e+00> : vector<6x16xf32>
    %29 = vector.multi_reduction <add>, %25, %cst_12 [2] : vector<6x16x16xf32> to vector<6x16xf32>
    %cst_13 = arith.constant dense<0.000000e+00> : vector<6xf32>
    %30 = vector.multi_reduction <add>, %29, %cst_13 [1] : vector<6x16xf32> to vector<6xf32>
    %31 = vector.shape_cast %30 : vector<6xf32> to vector<6x1xf32>
    %32 = arith.mulf %25, %25 : vector<6x16x16xf32>
    %cst_14 = arith.constant dense<0.000000e+00> : vector<6x16xf32>
    %33 = vector.multi_reduction <add>, %32, %cst_14 [2] : vector<6x16x16xf32> to vector<6x16xf32>
    %cst_15 = arith.constant dense<0.000000e+00> : vector<6xf32>
    %34 = vector.multi_reduction <add>, %33, %cst_15 [1] : vector<6x16xf32> to vector<6xf32>
    %35 = vector.shape_cast %34 : vector<6xf32> to vector<6x1xf32>
    %36 = tpu.concatenate %31, %35 in 1 : vector<6x1xf32>, vector<6x1xf32> -> vector<6x2xf32>
    %c0_16 = arith.constant 0 : index
    %c0_17 = arith.constant 0 : index
    %c0_18 = arith.constant 0 : index
    %37 = vector.load %arg4[%c0_16, %c0_17, %c0_18] : memref<1x6x2xf32, #tpu.memory_space<vmem>>, vector<1x6x2xf32>
    %38 = vector.shape_cast %37 : vector<1x6x2xf32> to vector<6x2xf32>
    %39 = vector.shape_cast %36 : vector<6x2xf32> to vector<1x6x2xf32>
    tpu.vector_store %arg4[%c0_16, %c0_17, %c0_18], %39 {strides = array<i32>} : memref<1x6x2xf32, #tpu.memory_space<vmem>>, vector<1x6x2xf32>,
    return
  }
  func.func @transform_0(%arg0: i32) -> (i32, i32, i32, i32) {
    %c0_i32 = arith.constant 0 : i32
    %c0_i32_0 = arith.constant 0 : i32
    %c0_i32_1 = arith.constant 0 : i32
    %c0_i32_2 = arith.constant 0 : i32
    return %arg0, %c0_i32, %c0_i32_0, %c0_i32_1 : i32, i32, i32, i32
  }
  func.func @transform_1(%arg0: i32) -> (i32, i32, i32) {
    %c0_i32 = arith.constant 0 : i32
    %c0_i32_0 = arith.constant 0 : i32
    %c0_i32_1 = arith.constant 0 : i32
    %c0_i32_2 = arith.constant 0 : i32
    return %c0_i32, %c0_i32_0, %c0_i32_1 : i32, i32, i32
  }
  func.func @transform_2(%arg0: i32) -> (i32, i32, i32, i32) {
    %c0_i32 = arith.constant 0 : i32
    %c0_i32_0 = arith.constant 0 : i32
    %c0_i32_1 = arith.constant 0 : i32
    %c0_i32_2 = arith.constant 0 : i32
    return %arg0, %c0_i32, %c0_i32_0, %c0_i32_1 : i32, i32, i32, i32
  }
  func.func @transform_3(%arg0: i32) -> (i32, i32, i32) {
    %c0_i32 = arith.constant 0 : i32
    %c0_i32_0 = arith.constant 0 : i32
    %c0_i32_1 = arith.constant 0 : i32
    return %arg0, %c0_i32, %c0_i32_0 : i32, i32, i32
  }
}

module attributes {stable_mosaic.version = 11 : i64} {
  func.func @_attn_softmax_sv_kernel(%arg0: i32, %arg1: memref<1x6x16x16xf32, #tpu.memory_space<vmem>>, %arg2: memref<1x2x16x16xf32, #tpu.memory_space<vmem>>, %arg3: memref<8x16x16xf32, #tpu.memory_space<vmem>>, %arg4: memref<6x1x1xf32, #tpu.memory_space<vmem>>, %arg5: memref<6x1x1xf32, #tpu.memory_space<vmem>>, %arg6: memref<1x2x8x16xf32, #tpu.memory_space<vmem>>, %arg7: memref<1x2x8x16xf32, #tpu.memory_space<vmem>>, %arg8: memref<1x2x8x2xf32, #tpu.memory_space<vmem>>, %arg9: memref<1x2x8x2xf32, #tpu.memory_space<vmem>>) attributes {dimension_semantics = [#tpu.dimension_semantics<parallel>], iteration_bounds = array<i64: 32>, scalar_prefetch = 0 : i64, scratch_operands = 0 : i64, tpu.core_type = #tpu.core_type<tc>, window_params = [{transform_indices = @transform_0, window_bounds = array<i64: 1, 6, 16, 16>}, {transform_indices = @transform_1, window_bounds = array<i64: 1, 2, 16, 16>}, {pipeline_mode = #tpu.pipeline_mode<synchronous>, transform_indices = @transform_2, window_bounds = array<i64: 8, 16, 16>}, {pipeline_mode = #tpu.pipeline_mode<synchronous>, transform_indices = @transform_3, window_bounds = array<i64: 6, 1, 1>}, {pipeline_mode = #tpu.pipeline_mode<synchronous>, transform_indices = @transform_4, window_bounds = array<i64: 6, 1, 1>}, {transform_indices = @transform_5, window_bounds = array<i64: 1, 2, 8, 16>}, {transform_indices = @transform_6, window_bounds = array<i64: 1, 2, 8, 16>}, {transform_indices = @transform_7, window_bounds = array<i64: 1, 2, 8, 2>}, {transform_indices = @transform_8, window_bounds = array<i64: 1, 2, 8, 2>}]} {
    %c0 = arith.constant 0 : index
    %c0_0 = arith.constant 0 : index
    %c0_1 = arith.constant 0 : index
    %c0_2 = arith.constant 0 : index
    %0 = vector.load %arg1[%c0, %c0_0, %c0_1, %c0_2] : memref<1x6x16x16xf32, #tpu.memory_space<vmem>>, vector<1x6x16x16xf32>
    %1 = vector.shape_cast %0 : vector<1x6x16x16xf32> to vector<6x16x16xf32>
    %c0_3 = arith.constant 0 : index
    %c0_4 = arith.constant 0 : index
    %c0_5 = arith.constant 0 : index
    %2 = vector.load %arg4[%c0_3, %c0_4, %c0_5] : memref<6x1x1xf32, #tpu.memory_space<vmem>>, vector<6x1x1xf32>
    %3 = vector.broadcast %2 : vector<6x1x1xf32> to vector<6x16x16xf32>
    %4 = arith.mulf %1, %3 : vector<6x16x16xf32>
    %c0_6 = arith.constant 0 : index
    %c0_7 = arith.constant 0 : index
    %c0_8 = arith.constant 0 : index
    %5 = vector.load %arg5[%c0_6, %c0_7, %c0_8] : memref<6x1x1xf32, #tpu.memory_space<vmem>>, vector<6x1x1xf32>
    %6 = vector.broadcast %5 : vector<6x1x1xf32> to vector<6x16x16xf32>
    %7 = arith.addf %4, %6 : vector<6x16x16xf32>
    %8 = vector.extract_strided_slice %7 {offsets = [0, 0, 0], sizes = [2, 16, 16], strides = [1, 1, 1]} : vector<6x16x16xf32> to vector<2x16x16xf32>
    %9 = vector.extract_strided_slice %7 {offsets = [2, 0, 0], sizes = [2, 16, 16], strides = [1, 1, 1]} : vector<6x16x16xf32> to vector<2x16x16xf32>
    %10 = arith.addf %8, %9 : vector<2x16x16xf32>
    %11 = vector.extract_strided_slice %7 {offsets = [4, 0, 0], sizes = [2, 16, 16], strides = [1, 1, 1]} : vector<6x16x16xf32> to vector<2x16x16xf32>
    %12 = arith.addf %10, %11 : vector<2x16x16xf32>
    %cst = arith.constant dense<0xFF800000> : vector<2x16xf32>
    %13 = vector.multi_reduction <maximumf>, %12, %cst [2] : vector<2x16x16xf32> to vector<2x16xf32>
    %14 = vector.shape_cast %13 : vector<2x16xf32> to vector<2x16x1xf32>
    %15 = vector.broadcast %14 : vector<2x16x1xf32> to vector<2x16x16xf32>
    %16 = arith.subf %12, %15 : vector<2x16x16xf32>
    %17 = math.exp %16 : vector<2x16x16xf32>
    %cst_9 = arith.constant dense<0.000000e+00> : vector<2x16xf32>
    %18 = vector.multi_reduction <add>, %17, %cst_9 [2] : vector<2x16x16xf32> to vector<2x16xf32>
    %19 = vector.shape_cast %18 : vector<2x16xf32> to vector<2x16x1xf32>
    %20 = vector.broadcast %19 : vector<2x16x1xf32> to vector<2x16x16xf32>
    %21 = arith.divf %17, %20 : vector<2x16x16xf32>
    %c0_10 = arith.constant 0 : index
    %c0_11 = arith.constant 0 : index
    %c0_12 = arith.constant 0 : index
    %c0_13 = arith.constant 0 : index
    %22 = vector.load %arg2[%c0_10, %c0_11, %c0_12, %c0_13] : memref<1x2x16x16xf32, #tpu.memory_space<vmem>>, vector<1x2x16x16xf32>
    %23 = vector.shape_cast %22 : vector<1x2x16x16xf32> to vector<2x16x16xf32>
    %24 = vector.extract_strided_slice %23 {offsets = [0, 8, 0], sizes = [2, 8, 16], strides = [1, 1, 1]} : vector<2x16x16xf32> to vector<2x8x16xf32>
    %cst_14 = arith.constant dense<0.000000e+00> : vector<2x8x16xf32>
    %25 = tpu.matmul %24, %21, %cst_14 {dimension_numbers = #tpu.dot_dimension_numbers<[2], [2], [1], [1], [0, 0, 0, 1, 1, 1], [0], [0]>} : vector<2x8x16xf32>, vector<2x16x16xf32>, vector<2x8x16xf32> -> vector<2x8x16xf32>
    %c0_15 = arith.constant 0 : index
    %c0_16 = arith.constant 0 : index
    %c0_17 = arith.constant 0 : index
    %26 = vector.load %arg3[%c0_15, %c0_16, %c0_17] : memref<8x16x16xf32, #tpu.memory_space<vmem>>, vector<8x16x16xf32>
    %27 = vector.shape_cast %21 : vector<2x16x16xf32> to vector<2x1x16x16xf32>
    %28 = vector.shape_cast %26 : vector<8x16x16xf32> to vector<1x8x16x16xf32>
    %29 = vector.broadcast %27 : vector<2x1x16x16xf32> to vector<2x8x16x16xf32>
    %30 = vector.broadcast %28 : vector<1x8x16x16xf32> to vector<2x8x16x16xf32>
    %31 = arith.mulf %29, %30 : vector<2x8x16x16xf32>
    %cst_18 = arith.constant dense<0.000000e+00> : vector<2x8x16xf32>
    %32 = vector.multi_reduction <add>, %31, %cst_18 [3] : vector<2x8x16x16xf32> to vector<2x8x16xf32>
    %c0_19 = arith.constant 0 : index
    %c0_20 = arith.constant 0 : index
    %c0_21 = arith.constant 0 : index
    %c0_22 = arith.constant 0 : index
    %33 = vector.load %arg6[%c0_19, %c0_20, %c0_21, %c0_22] : memref<1x2x8x16xf32, #tpu.memory_space<vmem>>, vector<1x2x8x16xf32>
    %34 = vector.shape_cast %33 : vector<1x2x8x16xf32> to vector<2x8x16xf32>
    %35 = vector.shape_cast %25 : vector<2x8x16xf32> to vector<1x2x8x16xf32>
    tpu.vector_store %arg6[%c0_19, %c0_20, %c0_21, %c0_22], %35 {strides = array<i32>} : memref<1x2x8x16xf32, #tpu.memory_space<vmem>>, vector<1x2x8x16xf32>,
    %c0_23 = arith.constant 0 : index
    %c0_24 = arith.constant 0 : index
    %c0_25 = arith.constant 0 : index
    %c0_26 = arith.constant 0 : index
    %36 = vector.load %arg7[%c0_23, %c0_24, %c0_25, %c0_26] : memref<1x2x8x16xf32, #tpu.memory_space<vmem>>, vector<1x2x8x16xf32>
    %37 = vector.shape_cast %36 : vector<1x2x8x16xf32> to vector<2x8x16xf32>
    %38 = vector.shape_cast %32 : vector<2x8x16xf32> to vector<1x2x8x16xf32>
    tpu.vector_store %arg7[%c0_23, %c0_24, %c0_25, %c0_26], %38 {strides = array<i32>} : memref<1x2x8x16xf32, #tpu.memory_space<vmem>>, vector<1x2x8x16xf32>,
    %cst_27 = arith.constant dense<0.000000e+00> : vector<2x8xf32>
    %39 = vector.multi_reduction <add>, %25, %cst_27 [2] : vector<2x8x16xf32> to vector<2x8xf32>
    %40 = vector.shape_cast %39 : vector<2x8xf32> to vector<2x8x1xf32>
    %41 = arith.mulf %25, %25 : vector<2x8x16xf32>
    %cst_28 = arith.constant dense<0.000000e+00> : vector<2x8xf32>
    %42 = vector.multi_reduction <add>, %41, %cst_28 [2] : vector<2x8x16xf32> to vector<2x8xf32>
    %43 = vector.shape_cast %42 : vector<2x8xf32> to vector<2x8x1xf32>
    %44 = tpu.concatenate %40, %43 in 2 : vector<2x8x1xf32>, vector<2x8x1xf32> -> vector<2x8x2xf32>
    %c0_29 = arith.constant 0 : index
    %c0_30 = arith.constant 0 : index
    %c0_31 = arith.constant 0 : index
    %c0_32 = arith.constant 0 : index
    %45 = vector.load %arg8[%c0_29, %c0_30, %c0_31, %c0_32] : memref<1x2x8x2xf32, #tpu.memory_space<vmem>>, vector<1x2x8x2xf32>
    %46 = vector.shape_cast %45 : vector<1x2x8x2xf32> to vector<2x8x2xf32>
    %47 = vector.shape_cast %44 : vector<2x8x2xf32> to vector<1x2x8x2xf32>
    tpu.vector_store %arg8[%c0_29, %c0_30, %c0_31, %c0_32], %47 {strides = array<i32>} : memref<1x2x8x2xf32, #tpu.memory_space<vmem>>, vector<1x2x8x2xf32>,
    %cst_33 = arith.constant dense<0.000000e+00> : vector<2x8xf32>
    %48 = vector.multi_reduction <add>, %32, %cst_33 [2] : vector<2x8x16xf32> to vector<2x8xf32>
    %49 = vector.shape_cast %48 : vector<2x8xf32> to vector<2x8x1xf32>
    %50 = arith.mulf %32, %32 : vector<2x8x16xf32>
    %cst_34 = arith.constant dense<0.000000e+00> : vector<2x8xf32>
    %51 = vector.multi_reduction <add>, %50, %cst_34 [2] : vector<2x8x16xf32> to vector<2x8xf32>
    %52 = vector.shape_cast %51 : vector<2x8xf32> to vector<2x8x1xf32>
    %53 = tpu.concatenate %49, %52 in 2 : vector<2x8x1xf32>, vector<2x8x1xf32> -> vector<2x8x2xf32>
    %c0_35 = arith.constant 0 : index
    %c0_36 = arith.constant 0 : index
    %c0_37 = arith.constant 0 : index
    %c0_38 = arith.constant 0 : index
    %54 = vector.load %arg9[%c0_35, %c0_36, %c0_37, %c0_38] : memref<1x2x8x2xf32, #tpu.memory_space<vmem>>, vector<1x2x8x2xf32>
    %55 = vector.shape_cast %54 : vector<1x2x8x2xf32> to vector<2x8x2xf32>
    %56 = vector.shape_cast %53 : vector<2x8x2xf32> to vector<1x2x8x2xf32>
    tpu.vector_store %arg9[%c0_35, %c0_36, %c0_37, %c0_38], %56 {strides = array<i32>} : memref<1x2x8x2xf32, #tpu.memory_space<vmem>>, vector<1x2x8x2xf32>,
    return
  }
  func.func @transform_0(%arg0: i32) -> (i32, i32, i32, i32) {
    %c0_i32 = arith.constant 0 : i32
    %c0_i32_0 = arith.constant 0 : i32
    %c0_i32_1 = arith.constant 0 : i32
    %c0_i32_2 = arith.constant 0 : i32
    return %arg0, %c0_i32, %c0_i32_0, %c0_i32_1 : i32, i32, i32, i32
  }
  func.func @transform_1(%arg0: i32) -> (i32, i32, i32, i32) {
    %c0_i32 = arith.constant 0 : i32
    %c0_i32_0 = arith.constant 0 : i32
    %c0_i32_1 = arith.constant 0 : i32
    %c0_i32_2 = arith.constant 0 : i32
    return %arg0, %c0_i32, %c0_i32_0, %c0_i32_1 : i32, i32, i32, i32
  }
  func.func @transform_2(%arg0: i32) -> (i32, i32, i32) {
    %c0_i32 = arith.constant 0 : i32
    %c0_i32_0 = arith.constant 0 : i32
    %c0_i32_1 = arith.constant 0 : i32
    %c0_i32_2 = arith.constant 0 : i32
    return %c0_i32, %c0_i32_0, %c0_i32_1 : i32, i32, i32
  }
  func.func @transform_3(%arg0: i32) -> (i32, i32, i32) {
    %c0_i32 = arith.constant 0 : i32
    %c0_i32_0 = arith.constant 0 : i32
    %c0_i32_1 = arith.constant 0 : i32
    %c0_i32_2 = arith.constant 0 : i32
    return %c0_i32, %c0_i32_0, %c0_i32_1 : i32, i32, i32
  }
  func.func @transform_4(%arg0: i32) -> (i32, i32, i32) {
    %c0_i32 = arith.constant 0 : i32
    %c0_i32_0 = arith.constant 0 : i32
    %c0_i32_1 = arith.constant 0 : i32
    %c0_i32_2 = arith.constant 0 : i32
    return %c0_i32, %c0_i32_0, %c0_i32_1 : i32, i32, i32
  }
  func.func @transform_5(%arg0: i32) -> (i32, i32, i32, i32) {
    %c0_i32 = arith.constant 0 : i32
    %c0_i32_0 = arith.constant 0 : i32
    %c0_i32_1 = arith.constant 0 : i32
    %c0_i32_2 = arith.constant 0 : i32
    return %arg0, %c0_i32, %c0_i32_0, %c0_i32_1 : i32, i32, i32, i32
  }
  func.func @transform_6(%arg0: i32) -> (i32, i32, i32, i32) {
    %c0_i32 = arith.constant 0 : i32
    %c0_i32_0 = arith.constant 0 : i32
    %c0_i32_1 = arith.constant 0 : i32
    %c0_i32_2 = arith.constant 0 : i32
    return %arg0, %c0_i32, %c0_i32_0, %c0_i32_1 : i32, i32, i32, i32
  }
  func.func @transform_7(%arg0: i32) -> (i32, i32, i32, i32) {
    %c0_i32 = arith.constant 0 : i32
    %c0_i32_0 = arith.constant 0 : i32
    %c0_i32_1 = arith.constant 0 : i32
    %c0_i32_2 = arith.constant 0 : i32
    return %arg0, %c0_i32, %c0_i32_0, %c0_i32_1 : i32, i32, i32, i32
  }
  func.func @transform_8(%arg0: i32) -> (i32, i32, i32, i32) {
    %c0_i32 = arith.constant 0 : i32
    %c0_i32_0 = arith.constant 0 : i32
    %c0_i32_1 = arith.constant 0 : i32
    %c0_i32_2 = arith.constant 0 : i32
    return %arg0, %c0_i32, %c0_i32_0, %c0_i32_1 : i32, i32, i32, i32
  }
}

module attributes {stable_mosaic.version = 11 : i64} {
  func.func @_bn_pair_sum_kernel(%arg0: i32, %arg1: memref<1x16x16xf32, #tpu.memory_space<vmem>>, %arg2: memref<1x16x16xf32, #tpu.memory_space<vmem>>, %arg3: memref<16x1xf32, #tpu.memory_space<vmem>>, %arg4: memref<16x1xf32, #tpu.memory_space<vmem>>, %arg5: memref<16x1xf32, #tpu.memory_space<vmem>>, %arg6: memref<16x1xf32, #tpu.memory_space<vmem>>, %arg7: memref<1x16x16xf32, #tpu.memory_space<vmem>>) attributes {dimension_semantics = [#tpu.dimension_semantics<parallel>], iteration_bounds = array<i64: 32>, scalar_prefetch = 0 : i64, scratch_operands = 0 : i64, tpu.core_type = #tpu.core_type<tc>, window_params = [{transform_indices = @transform_0, window_bounds = array<i64: 1, 16, 16>}, {transform_indices = @transform_1, window_bounds = array<i64: 1, 16, 16>}, {pipeline_mode = #tpu.pipeline_mode<synchronous>, transform_indices = @transform_2, window_bounds = array<i64: 16, 1>}, {pipeline_mode = #tpu.pipeline_mode<synchronous>, transform_indices = @transform_3, window_bounds = array<i64: 16, 1>}, {pipeline_mode = #tpu.pipeline_mode<synchronous>, transform_indices = @transform_4, window_bounds = array<i64: 16, 1>}, {pipeline_mode = #tpu.pipeline_mode<synchronous>, transform_indices = @transform_5, window_bounds = array<i64: 16, 1>}, {transform_indices = @transform_6, window_bounds = array<i64: 1, 16, 16>}]} {
    %c0 = arith.constant 0 : index
    %c0_0 = arith.constant 0 : index
    %c0_1 = arith.constant 0 : index
    %0 = vector.load %arg1[%c0, %c0_0, %c0_1] : memref<1x16x16xf32, #tpu.memory_space<vmem>>, vector<1x16x16xf32>
    %1 = vector.shape_cast %0 : vector<1x16x16xf32> to vector<16x16xf32>
    %c0_2 = arith.constant 0 : index
    %c0_3 = arith.constant 0 : index
    %2 = vector.load %arg3[%c0_2, %c0_3] : memref<16x1xf32, #tpu.memory_space<vmem>>, vector<16x1xf32>
    %3 = vector.broadcast %2 : vector<16x1xf32> to vector<16x16xf32>
    %4 = arith.mulf %1, %3 : vector<16x16xf32>
    %c0_4 = arith.constant 0 : index
    %c0_5 = arith.constant 0 : index
    %5 = vector.load %arg4[%c0_4, %c0_5] : memref<16x1xf32, #tpu.memory_space<vmem>>, vector<16x1xf32>
    %6 = vector.broadcast %5 : vector<16x1xf32> to vector<16x16xf32>
    %7 = arith.addf %4, %6 : vector<16x16xf32>
    %c0_6 = arith.constant 0 : index
    %c0_7 = arith.constant 0 : index
    %c0_8 = arith.constant 0 : index
    %8 = vector.load %arg2[%c0_6, %c0_7, %c0_8] : memref<1x16x16xf32, #tpu.memory_space<vmem>>, vector<1x16x16xf32>
    %9 = vector.shape_cast %8 : vector<1x16x16xf32> to vector<16x16xf32>
    %c0_9 = arith.constant 0 : index
    %c0_10 = arith.constant 0 : index
    %10 = vector.load %arg5[%c0_9, %c0_10] : memref<16x1xf32, #tpu.memory_space<vmem>>, vector<16x1xf32>
    %11 = vector.broadcast %10 : vector<16x1xf32> to vector<16x16xf32>
    %12 = arith.mulf %9, %11 : vector<16x16xf32>
    %13 = arith.addf %7, %12 : vector<16x16xf32>
    %c0_11 = arith.constant 0 : index
    %c0_12 = arith.constant 0 : index
    %14 = vector.load %arg6[%c0_11, %c0_12] : memref<16x1xf32, #tpu.memory_space<vmem>>, vector<16x1xf32>
    %15 = vector.broadcast %14 : vector<16x1xf32> to vector<16x16xf32>
    %16 = arith.addf %13, %15 : vector<16x16xf32>
    %c0_13 = arith.constant 0 : index
    %c0_14 = arith.constant 0 : index
    %c0_15 = arith.constant 0 : index
    %17 = vector.load %arg7[%c0_13, %c0_14, %c0_15] : memref<1x16x16xf32, #tpu.memory_space<vmem>>, vector<1x16x16xf32>
    %18 = vector.shape_cast %17 : vector<1x16x16xf32> to vector<16x16xf32>
    %19 = vector.shape_cast %16 : vector<16x16xf32> to vector<1x16x16xf32>
    tpu.vector_store %arg7[%c0_13, %c0_14, %c0_15], %19 {strides = array<i32>} : memref<1x16x16xf32, #tpu.memory_space<vmem>>, vector<1x16x16xf32>,
    return
  }
  func.func @transform_0(%arg0: i32) -> (i32, i32, i32) {
    %c0_i32 = arith.constant 0 : i32
    %c0_i32_0 = arith.constant 0 : i32
    %c0_i32_1 = arith.constant 0 : i32
    return %arg0, %c0_i32, %c0_i32_0 : i32, i32, i32
  }
  func.func @transform_1(%arg0: i32) -> (i32, i32, i32) {
    %c0_i32 = arith.constant 0 : i32
    %c0_i32_0 = arith.constant 0 : i32
    %c0_i32_1 = arith.constant 0 : i32
    return %arg0, %c0_i32, %c0_i32_0 : i32, i32, i32
  }
  func.func @transform_2(%arg0: i32) -> (i32, i32) {
    %c0_i32 = arith.constant 0 : i32
    %c0_i32_0 = arith.constant 0 : i32
    %c0_i32_1 = arith.constant 0 : i32
    return %c0_i32, %c0_i32_0 : i32, i32
  }
  func.func @transform_3(%arg0: i32) -> (i32, i32) {
    %c0_i32 = arith.constant 0 : i32
    %c0_i32_0 = arith.constant 0 : i32
    %c0_i32_1 = arith.constant 0 : i32
    return %c0_i32, %c0_i32_0 : i32, i32
  }
  func.func @transform_4(%arg0: i32) -> (i32, i32) {
    %c0_i32 = arith.constant 0 : i32
    %c0_i32_0 = arith.constant 0 : i32
    %c0_i32_1 = arith.constant 0 : i32
    return %c0_i32, %c0_i32_0 : i32, i32
  }
  func.func @transform_5(%arg0: i32) -> (i32, i32) {
    %c0_i32 = arith.constant 0 : i32
    %c0_i32_0 = arith.constant 0 : i32
    %c0_i32_1 = arith.constant 0 : i32
    return %c0_i32, %c0_i32_0 : i32, i32
  }
  func.func @transform_6(%arg0: i32) -> (i32, i32, i32) {
    %c0_i32 = arith.constant 0 : i32
    %c0_i32_0 = arith.constant 0 : i32
    %c0_i32_1 = arith.constant 0 : i32
    return %arg0, %c0_i32, %c0_i32_0 : i32, i32, i32
  }
}

module attributes {stable_mosaic.version = 11 : i64} {
  func.func @_bn_pair_sum_kernel(%arg0: i32, %arg1: memref<1x16x16xf32, #tpu.memory_space<vmem>>, %arg2: memref<1x16x16xf32, #tpu.memory_space<vmem>>, %arg3: memref<16x1xf32, #tpu.memory_space<vmem>>, %arg4: memref<16x1xf32, #tpu.memory_space<vmem>>, %arg5: memref<16x1xf32, #tpu.memory_space<vmem>>, %arg6: memref<16x1xf32, #tpu.memory_space<vmem>>, %arg7: memref<1x16x16xf32, #tpu.memory_space<vmem>>) attributes {dimension_semantics = [#tpu.dimension_semantics<parallel>], iteration_bounds = array<i64: 32>, scalar_prefetch = 0 : i64, scratch_operands = 0 : i64, tpu.core_type = #tpu.core_type<tc>, window_params = [{transform_indices = @transform_0, window_bounds = array<i64: 1, 16, 16>}, {transform_indices = @transform_1, window_bounds = array<i64: 1, 16, 16>}, {pipeline_mode = #tpu.pipeline_mode<synchronous>, transform_indices = @transform_2, window_bounds = array<i64: 16, 1>}, {pipeline_mode = #tpu.pipeline_mode<synchronous>, transform_indices = @transform_3, window_bounds = array<i64: 16, 1>}, {pipeline_mode = #tpu.pipeline_mode<synchronous>, transform_indices = @transform_4, window_bounds = array<i64: 16, 1>}, {pipeline_mode = #tpu.pipeline_mode<synchronous>, transform_indices = @transform_5, window_bounds = array<i64: 16, 1>}, {transform_indices = @transform_6, window_bounds = array<i64: 1, 16, 16>}]} {
    %c0 = arith.constant 0 : index
    %c0_0 = arith.constant 0 : index
    %c0_1 = arith.constant 0 : index
    %0 = vector.load %arg1[%c0, %c0_0, %c0_1] : memref<1x16x16xf32, #tpu.memory_space<vmem>>, vector<1x16x16xf32>
    %1 = vector.shape_cast %0 : vector<1x16x16xf32> to vector<16x16xf32>
    %c0_2 = arith.constant 0 : index
    %c0_3 = arith.constant 0 : index
    %2 = vector.load %arg3[%c0_2, %c0_3] : memref<16x1xf32, #tpu.memory_space<vmem>>, vector<16x1xf32>
    %3 = vector.broadcast %2 : vector<16x1xf32> to vector<16x16xf32>
    %4 = arith.mulf %1, %3 : vector<16x16xf32>
    %c0_4 = arith.constant 0 : index
    %c0_5 = arith.constant 0 : index
    %5 = vector.load %arg4[%c0_4, %c0_5] : memref<16x1xf32, #tpu.memory_space<vmem>>, vector<16x1xf32>
    %6 = vector.broadcast %5 : vector<16x1xf32> to vector<16x16xf32>
    %7 = arith.addf %4, %6 : vector<16x16xf32>
    %c0_6 = arith.constant 0 : index
    %c0_7 = arith.constant 0 : index
    %c0_8 = arith.constant 0 : index
    %8 = vector.load %arg2[%c0_6, %c0_7, %c0_8] : memref<1x16x16xf32, #tpu.memory_space<vmem>>, vector<1x16x16xf32>
    %9 = vector.shape_cast %8 : vector<1x16x16xf32> to vector<16x16xf32>
    %c0_9 = arith.constant 0 : index
    %c0_10 = arith.constant 0 : index
    %10 = vector.load %arg5[%c0_9, %c0_10] : memref<16x1xf32, #tpu.memory_space<vmem>>, vector<16x1xf32>
    %11 = vector.broadcast %10 : vector<16x1xf32> to vector<16x16xf32>
    %12 = arith.mulf %9, %11 : vector<16x16xf32>
    %13 = arith.addf %7, %12 : vector<16x16xf32>
    %c0_11 = arith.constant 0 : index
    %c0_12 = arith.constant 0 : index
    %14 = vector.load %arg6[%c0_11, %c0_12] : memref<16x1xf32, #tpu.memory_space<vmem>>, vector<16x1xf32>
    %15 = vector.broadcast %14 : vector<16x1xf32> to vector<16x16xf32>
    %16 = arith.addf %13, %15 : vector<16x16xf32>
    %cst = arith.constant 0.000000e+00 : f32
    %17 = vector.broadcast %cst : f32 to vector<16x16xf32>
    %18 = arith.maximumf %16, %17 : vector<16x16xf32>
    %c0_13 = arith.constant 0 : index
    %c0_14 = arith.constant 0 : index
    %c0_15 = arith.constant 0 : index
    %19 = vector.load %arg7[%c0_13, %c0_14, %c0_15] : memref<1x16x16xf32, #tpu.memory_space<vmem>>, vector<1x16x16xf32>
    %20 = vector.shape_cast %19 : vector<1x16x16xf32> to vector<16x16xf32>
    %21 = vector.shape_cast %18 : vector<16x16xf32> to vector<1x16x16xf32>
    tpu.vector_store %arg7[%c0_13, %c0_14, %c0_15], %21 {strides = array<i32>} : memref<1x16x16xf32, #tpu.memory_space<vmem>>, vector<1x16x16xf32>,
    return
  }
  func.func @transform_0(%arg0: i32) -> (i32, i32, i32) {
    %c0_i32 = arith.constant 0 : i32
    %c0_i32_0 = arith.constant 0 : i32
    %c0_i32_1 = arith.constant 0 : i32
    return %arg0, %c0_i32, %c0_i32_0 : i32, i32, i32
  }
  func.func @transform_1(%arg0: i32) -> (i32, i32, i32) {
    %c0_i32 = arith.constant 0 : i32
    %c0_i32_0 = arith.constant 0 : i32
    %c0_i32_1 = arith.constant 0 : i32
    return %arg0, %c0_i32, %c0_i32_0 : i32, i32, i32
  }
  func.func @transform_2(%arg0: i32) -> (i32, i32) {
    %c0_i32 = arith.constant 0 : i32
    %c0_i32_0 = arith.constant 0 : i32
    %c0_i32_1 = arith.constant 0 : i32
    return %c0_i32, %c0_i32_0 : i32, i32
  }
  func.func @transform_3(%arg0: i32) -> (i32, i32) {
    %c0_i32 = arith.constant 0 : i32
    %c0_i32_0 = arith.constant 0 : i32
    %c0_i32_1 = arith.constant 0 : i32
    return %c0_i32, %c0_i32_0 : i32, i32
  }
  func.func @transform_4(%arg0: i32) -> (i32, i32) {
    %c0_i32 = arith.constant 0 : i32
    %c0_i32_0 = arith.constant 0 : i32
    %c0_i32_1 = arith.constant 0 : i32
    return %c0_i32, %c0_i32_0 : i32, i32
  }
  func.func @transform_5(%arg0: i32) -> (i32, i32) {
    %c0_i32 = arith.constant 0 : i32
    %c0_i32_0 = arith.constant 0 : i32
    %c0_i32_1 = arith.constant 0 : i32
    return %c0_i32, %c0_i32_0 : i32, i32
  }
  func.func @transform_6(%arg0: i32) -> (i32, i32, i32) {
    %c0_i32 = arith.constant 0 : i32
    %c0_i32_0 = arith.constant 0 : i32
    %c0_i32_1 = arith.constant 0 : i32
    return %arg0, %c0_i32, %c0_i32_0 : i32, i32, i32
  }
}

module attributes {stable_mosaic.version = 11 : i64} {
  func.func @_bn_res_relu_kernel(%arg0: i32, %arg1: memref<1x32x256xf32, #tpu.memory_space<vmem>>, %arg2: memref<32x1xf32, #tpu.memory_space<vmem>>, %arg3: memref<32x1xf32, #tpu.memory_space<vmem>>, %arg4: memref<1x32x256xf32, #tpu.memory_space<vmem>>, %arg5: memref<1x32x256xf32, #tpu.memory_space<vmem>>) attributes {dimension_semantics = [#tpu.dimension_semantics<parallel>], iteration_bounds = array<i64: 2>, scalar_prefetch = 0 : i64, scratch_operands = 0 : i64, tpu.core_type = #tpu.core_type<tc>, window_params = [{transform_indices = @transform_0, window_bounds = array<i64: 1, 32, 256>}, {pipeline_mode = #tpu.pipeline_mode<synchronous>, transform_indices = @transform_1, window_bounds = array<i64: 32, 1>}, {pipeline_mode = #tpu.pipeline_mode<synchronous>, transform_indices = @transform_2, window_bounds = array<i64: 32, 1>}, {transform_indices = @transform_3, window_bounds = array<i64: 1, 32, 256>}, {transform_indices = @transform_4, window_bounds = array<i64: 1, 32, 256>}]} {
    %c0 = arith.constant 0 : index
    %c0_0 = arith.constant 0 : index
    %c0_1 = arith.constant 0 : index
    %0 = vector.load %arg1[%c0, %c0_0, %c0_1] : memref<1x32x256xf32, #tpu.memory_space<vmem>>, vector<1x32x256xf32>
    %1 = vector.shape_cast %0 : vector<1x32x256xf32> to vector<32x256xf32>
    %c0_2 = arith.constant 0 : index
    %c0_3 = arith.constant 0 : index
    %2 = vector.load %arg2[%c0_2, %c0_3] : memref<32x1xf32, #tpu.memory_space<vmem>>, vector<32x1xf32>
    %3 = vector.broadcast %2 : vector<32x1xf32> to vector<32x256xf32>
    %4 = arith.mulf %1, %3 : vector<32x256xf32>
    %c0_4 = arith.constant 0 : index
    %c0_5 = arith.constant 0 : index
    %5 = vector.load %arg3[%c0_4, %c0_5] : memref<32x1xf32, #tpu.memory_space<vmem>>, vector<32x1xf32>
    %6 = vector.broadcast %5 : vector<32x1xf32> to vector<32x256xf32>
    %7 = arith.addf %4, %6 : vector<32x256xf32>
    %c0_6 = arith.constant 0 : index
    %c0_7 = arith.constant 0 : index
    %c0_8 = arith.constant 0 : index
    %8 = vector.load %arg4[%c0_6, %c0_7, %c0_8] : memref<1x32x256xf32, #tpu.memory_space<vmem>>, vector<1x32x256xf32>
    %9 = vector.shape_cast %8 : vector<1x32x256xf32> to vector<32x256xf32>
    %10 = arith.addf %7, %9 : vector<32x256xf32>
    %cst = arith.constant 0.000000e+00 : f32
    %11 = vector.broadcast %cst : f32 to vector<32x256xf32>
    %12 = arith.maximumf %10, %11 : vector<32x256xf32>
    %c0_9 = arith.constant 0 : index
    %c0_10 = arith.constant 0 : index
    %c0_11 = arith.constant 0 : index
    %13 = vector.load %arg5[%c0_9, %c0_10, %c0_11] : memref<1x32x256xf32, #tpu.memory_space<vmem>>, vector<1x32x256xf32>
    %14 = vector.shape_cast %13 : vector<1x32x256xf32> to vector<32x256xf32>
    %15 = vector.shape_cast %12 : vector<32x256xf32> to vector<1x32x256xf32>
    tpu.vector_store %arg5[%c0_9, %c0_10, %c0_11], %15 {strides = array<i32>} : memref<1x32x256xf32, #tpu.memory_space<vmem>>, vector<1x32x256xf32>,
    return
  }
  func.func @transform_0(%arg0: i32) -> (i32, i32, i32) {
    %c0_i32 = arith.constant 0 : i32
    %c0_i32_0 = arith.constant 0 : i32
    %c0_i32_1 = arith.constant 0 : i32
    return %arg0, %c0_i32, %c0_i32_0 : i32, i32, i32
  }
  func.func @transform_1(%arg0: i32) -> (i32, i32) {
    %c0_i32 = arith.constant 0 : i32
    %c0_i32_0 = arith.constant 0 : i32
    %c0_i32_1 = arith.constant 0 : i32
    return %c0_i32, %c0_i32_0 : i32, i32
  }
  func.func @transform_2(%arg0: i32) -> (i32, i32) {
    %c0_i32 = arith.constant 0 : i32
    %c0_i32_0 = arith.constant 0 : i32
    %c0_i32_1 = arith.constant 0 : i32
    return %c0_i32, %c0_i32_0 : i32, i32
  }
  func.func @transform_3(%arg0: i32) -> (i32, i32, i32) {
    %c0_i32 = arith.constant 0 : i32
    %c0_i32_0 = arith.constant 0 : i32
    %c0_i32_1 = arith.constant 0 : i32
    return %arg0, %c0_i32, %c0_i32_0 : i32, i32, i32
  }
  func.func @transform_4(%arg0: i32) -> (i32, i32, i32) {
    %c0_i32 = arith.constant 0 : i32
    %c0_i32_0 = arith.constant 0 : i32
    %c0_i32_1 = arith.constant 0 : i32
    return %arg0, %c0_i32, %c0_i32_0 : i32, i32, i32
  }
}

</mosaic_0001>

<bundles_post_ra>
// kernel: axial_block_forward.15
= control target key start
LH: loop header
LB: loop body
LE: loop exit
PB: predicated region body
PF: predicated region fallthrough
CT: control target
= control target key end

     0   :  { %s323_s12 = smov 0   ;;  %s352_s0 = inlined_call_operand.vmem [shape: f32[2,16,256], index: 0, kind: input, shape index: {}, may-alias: {0,3}]   ;;  %s353_s1 = inlined_call_operand.vmem [shape: f32[16,1], index: 1, kind: input, shape index: {}]   ;;  %s354_s2 = inlined_call_operand.vmem [shape: f32[16,1], index: 2, kind: input, shape index: {}]   ;;  %s355_s3 = inlined_call_operand.vmem [shape: f32[2,16,256], index: 3, kind: output, shape index: {}, may-alias: {0,3}]  }
   0x1 LB: > { %s270_s13 = sadd.s32 4294967295, %s300_s12   ;;  %p274_p0 = scmp.ge.s32.totalorder %s300_s12, 1  ;;  %s300_s12 = sphi %s323_s12, %s13_s12  }
   0x2   : > { %p137_p1 = scmp.lt.s32.totalorder %s300_s12, 3 }
   0x4   : > { %p138_p2 = pnand %p274_p0, %p137_p1 }
   0x5   : > { %p161_p3 = scmp.lt.s32.totalorder (!%p138_p2), %s270_s13, 1 }
   0x6   : > { %141 = sbr.rel (%p138_p2) target bundleno = 148 (0x94), region = 32 }
   0xb   : > { %v191_v0 = vld [vmem:[%s354_s2] sm:$0xff]  ;;  %v302_v2 = vmov 0   ;;  %v192_v3 = vld [vmem:[%s354_s2 + $0x8] sm:$0xff]  ;;  %s357_s13 = smov (!%p161_p3, %s270_s13), 1 }
   0xc   : > { %v175_v1 = vld [vmem:[%s353_s1] sm:$0xff]  ;;  %293 = vset.pattern.permute.xlu1 %v302_v2  ;;  %292 = vset.pattern.permute.xlu0 %v302_v2  ;;  %v176_v4 = vld [vmem:[%s353_s1 + $0x8] sm:$0xff]  ;;  %s281_s22 = sshll.u32 %s357_s13, 5 }
   0xd   : > { %195 = vperm.xlu1 %293, %v191_v0   ;;  %179 = vperm.xlu0 %292, %v175_v1   ;;  %s165_s25 = scalar_lea.vmem %s352_s0, %s281_s22  ;;  %s170_s28 = scalar_lea.vmem %s355_s3, %s281_s22 }
   0xe   : > { %v171_v5 = vld [vmem:[%s165_s25] sm:$0xff]  ;;  %v172_v6 = vld [vmem:[%s165_s25 + $0x8] sm:$0xff]  ;;  %v173_v11 = vld [vmem:[%s165_s25 + $0x10] sm:$0xff] }
   0xf   : > { %v174_v12 = vld [vmem:[%s165_s25 + $0x18] sm:$0xff] }
  0x11   : > { %200 = vperm.xlu1 %293, %v192_v3   ;;  %184 = vperm.xlu0 %292, %v176_v4  }
  0x88   : > { %v196_v7 = vpop.permute.xlu1 %195  ;;  %v180_v8 = vpop.permute.xlu0 %179 }
  0x89   : > { %v187_v9 = vmul.f32 %v180_v8, %v171_v5  ;;  %v188_v10 = vmul.f32 %v180_v8, %v172_v6 }
  0x8b   : > { %v203_v13 = vadd.f32 %v196_v7, %v187_v9  ;;  %v204_v14 = vadd.f32 %v196_v7, %v188_v10 }
  0x8c   : > { %v185_v15 = vpop.permute.xlu0 %184  ;;  %v201_v20 = vpop.permute.xlu1 %200 }
  0x8d   : > { %v207_v16 = vmax.f32 %v203_v13, 0.0  ;;  %v208_v17 = vmax.f32 %v204_v14, 0.0  ;;  %v189_v18 = vmul.f32 %v185_v15, %v173_v11  ;;  %v190_v19 = vmul.f32 %v185_v15, %v174_v12 }
  0x8f   : > { %v205_v21 = vadd.f32 %v201_v20, %v189_v18  ;;  %v206_v22 = vadd.f32 %v201_v20, %v190_v19  ;;  %211 = vst [vmem:[%s170_s28] sm:$0xff] %v207_v16  ;;  %212 = vst [vmem:[%s170_s28 + $0x8] sm:$0xff] %v208_v17 }
  0x91   : > { %v209_v23 = vmax.f32 %v205_v21, 0.0  ;;  %v210_v24 = vmax.f32 %v206_v22, 0.0 }
  0x93   : > { %213 = vst [vmem:[%s170_s28 + $0x10] sm:$0xff] %v209_v23  ;;  %214 = vst [vmem:[%s170_s28 + $0x18] sm:$0xff] %v210_v24 }
  0x94 PF: > { %s13_s12 = sadd.s32 1, %s300_s12  }
  0x95   : > { %p10_p4 = scmp.ge.s32.totalorder %s13_s12, 4  }
  0x97   :  { %12 = sbr.rel (!%p10_p4) target bundleno = 1 (0x1), region = 62 }

// kernel: axial_block_forward.14
= control target key start
LH: loop header
LB: loop body
LE: loop exit
PB: predicated region body
PF: predicated region fallthrough
CT: control target
= control target key end

     0   :  { %9 = vsyncpa [#allocation3], 0  ;;  %s531_s12 = smov 0   ;;  %s578_s0 = inlined_call_operand.vmem [shape: f32[2,32,256], index: 0, kind: input, shape index: {}]   ;;  %s579_s1 = inlined_call_operand.hbm [shape: f32[16,32], index: 1, kind: input, shape index: {}]   ;;  %s580_s2 = inlined_call_operand.vmem [shape: f32[2,16,256], index: 2, kind: output, shape index: {0}]   ;;  %s581_s3 = inlined_call_operand.vmem [shape: f32[2,16,2], index: 3, kind: output, shape index: {1}]  }
   0x1 LB: > { %s537_s13 = sadd.s32 4294967295, %s505_s12   ;;  %p421_p0 = scmp.ge.s32.totalorder %s505_s12, 1  ;;  %s505_s12 = sphi %s531_s12, %s15_s12  }
   0x2   : > { %p119_p1 = scmp.lt.s32.totalorder %s505_s12, 3  ;;  %s507_s14 = smov [#allocation2]  }
   0x3   : > { %s131_s15 = sshll.u32 %s507_s14, 4  ;;  %p455_p3 = scmp.eq.s32.totalorder %s537_s13, 0  ;;  %s132_s15 = int_to_ptr.vmem [resolvable:$true] %s131_s15 }
   0x4   : > { %p541_p2 = pnand %p421_p0, %p119_p1  ;;  %s480_s17 = scalar_lea.vmem %s132_s15, 256 }
   0x5   : > { %p481_p7 = scmp.ne.s32.totalorder %s132_s15, %s480_s17  ;;  %p488_p10 = scmp.lt.s32.totalorder %s132_s15, %s132_s15 }
   0x6   : > { %p451_p4 = pneg %p541_p2  ;;  %p489_p11 = scmp.lt.s32.totalorder %s480_s17, %s480_s17 }
   0x8   : > { %p452_p5 = pnand %p455_p3, %p451_p4  ;;  %p490_p12 = por %p489_p11, %p488_p10 }
   0xa   : > { %p471_p6 = pneg %p452_p5 }
   0xc   : > { %p483_p8 = pnand %p481_p7, %p471_p6 }
   0xe   : > { %p484_p9 = pneg %p483_p8 }
  0x10   : > { %p491_p13 = pnand %p490_p12, %p484_p9 }
  0x12   : > { %494 = shalt.err (!%p491_p13)
}
  0x13   : > { %s508_s18 = smov 128   ;;  %s509_s19 = smov 8  }
  0x14   : > { %454 = dma.hbm_to_vmem [thread:$0]  (!%p452_p5), %s579_s1, 256, %s132_s15, [#allocation3], %s508_s18, %s508_s18, %s509_s19  }
  0x15   : > { %155 = sbr.rel (%p541_p2) target bundleno = 384 (0x180), region = 28 }
  0x1a   : > { %500 = dma.done.wait (%p455_p3), [#allocation3], 256  }
  0x1b   : > { %502 = vsyncadd (%p455_p3), [#allocation3], 4294967040  ;;  %p184_p0 = scmp.lt.s32.totalorder %s537_s13, 1  ;;  %v510_v0 = vmov 0.0   ;;  %v207_v9 = vld [vmem:[#allocation2] sm:$0xff]  ;;  %vm209_vm0 = vcmask 261120  }
  0x1c   : > { %280 = vmatprep.mubr.f32.mxu0 %v510_v0  ;;  %286 = vmatprep.mubr.f32.mxu1 %v510_v0  ;;  %v208_v10 = vld [vmem:[#allocation2 + $0x8] sm:$0xff]  ;;  %vm313_vm1 = vcmask 7168   ;;  %vm316_vm2 = vcmask 15360  }
  0x1d   : > { %s584_s13 = smov (!%p184_p0, %s537_s13), 1 }
  0x1e   : > { %s436_s22 = sshll.u32 %s584_s13, 6  ;;  %s437_s26 = sshll.u32 %s584_s13, 5 }
  0x1f   : > { %s188_s25 = scalar_lea.vmem %s578_s0, %s436_s22  ;;  %s193_s29 = scalar_lea.vmem %s580_s2, %s437_s26 }
  0x20   : > { %v206_v1 = vld [vmem:[%s188_s25 + $0x38] sm:$0xff]  ;;  %v205_v2 = vld [vmem:[%s188_s25 + $0x30] sm:$0xff]  ;;  %v204_v3 = vld [vmem:[%s188_s25 + $0x28] sm:$0xff]  ;;  %s438_s30 = sshll.u32 %s584_s13, 4 }
  0x21   : > { %240 = vmatprep.subr.mxu0 %v206_v1  ;;  %439 = vmatprep.subr.mxu1 %v206_v1  ;;  %v203_v4 = vld [vmem:[%s188_s25 + $0x20] sm:$0xff]  ;;  %v202_v5 = vld [vmem:[%s188_s25 + $0x18] sm:$0xff]  ;;  %v201_v6 = vld [vmem:[%s188_s25 + $0x10] sm:$0xff]  ;;  %s198_s6 = scalar_lea.vmem %s581_s3, %s438_s30 }
  0x22   : > { %241 = vmatpush1.msra.mxu0 %v205_v2  ;;  %443 = vmatpush1.msra.mxu1 %v205_v2  ;;  %v200_v7 = vld [vmem:[%s188_s25 + $0x8] sm:$0xff]  ;;  %v199_v8 = vld [vmem:[%s188_s25] sm:$0xff] }
  0x23   : > { %242 = vmatprep.subr.mxu0 %v204_v3  ;;  %440 = vmatprep.subr.mxu1 %v204_v3 }
  0x24   : > { %243 = vmatpush1.msra.mxu0 %v203_v4  ;;  %444 = vmatpush1.msra.mxu1 %v203_v4 }
  0x25   : > { %244 = vmatprep.subr.mxu0 %v202_v5  ;;  %441 = vmatprep.subr.mxu1 %v202_v5 }
  0x26   : > { %245 = vmatpush1.msra.mxu0 %v201_v6  ;;  %445 = vmatpush1.msra.mxu1 %v201_v6 }
  0x27   : > { %246 = vmatprep.subr.mxu0 %v200_v7  ;;  %442 = vmatprep.subr.mxu1 %v200_v7 }
  0x28   : > { %247 = vmatpush1.msra.mxu0 %v199_v8  ;;  %446 = vmatpush1.msra.mxu1 %v199_v8 }
  0x29   : > { %432 = vmatmul.mubr.msk.f32.vlgmr.msra.gmra.mxu0 %vm209_vm0, %v207_v9  ;;  %433 = vmatmul.mubr.msk.f32.vlgmr.msra.gmra.mxu1 %vm209_vm0, %v208_v10 }
  0xe9   : > { %v282_v11 = vpop.f32.mrf.mxu0  ;;  %v288_v12 = vpop.f32.mrf.mxu1 }
  0xea   : > { %293 = vst [vmem:[%s193_s29] sm:$0xff] %v282_v11  ;;  %295 = vst [vmem:[%s193_s29 + $0x10] sm:$0xff] %v288_v12  ;;  %v303_v17 = vmul.f32 %v282_v11, %v282_v11  ;;  %v305_v20 = vmul.f32 %v288_v12, %v288_v12 }
  0xeb   : > { %v284_v13 = vpop.f32.mrf.mxu0  ;;  %v290_v14 = vpop.f32.mrf.mxu1 }
  0xec   : > { %294 = vst [vmem:[%s193_s29 + $0x8] sm:$0xff] %v284_v13  ;;  %v304_v15 = vmul.f32 %v284_v13, %v284_v13  ;;  %296 = vst [vmem:[%s193_s29 + $0x18] sm:$0xff] %v290_v14  ;;  %v297_v16 = vadd.f32 %v284_v13, %v282_v11  ;;  %v306_v18 = vmul.f32 %v290_v14, %v290_v14 }
  0xed   : > { %v300_v21 = vadd.f32 %v290_v14, %v288_v12 }
  0xee   : > { %298 = vadd.xlane.f32.xlu0 %v297_v16  ;;  %v307_v19 = vadd.f32 %v304_v15, %v303_v17  ;;  %v310_v22 = vadd.f32 %v306_v18, %v305_v20 }
  0xf0   : > { %308 = vadd.xlane.f32.xlu1 %v307_v19 }
  0xf2   : > { %301 = vadd.xlane.f32.xlu0 %v300_v21 }
  0xf4   : > { %311 = vadd.xlane.f32.xlu1 %v310_v22 }
 0x177   : > { %v299_v23 = vpop.xlane.xlu0 %298 }
 0x179   : > { %v309_v24 = vpop.xlane.xlu1 %308 }
 0x17a   : > { %v314_v25 = vsel %vm313_vm1, %v299_v23, %v309_v24 }
 0x17b   : > { %317 = vst.msk [vmem:[%s198_s6] sm:$0xff] %vm316_vm2, %v314_v25  ;;  %v302_v26 = vpop.xlane.xlu0 %301 }
 0x17d   : > { %v312_v27 = vpop.xlane.xlu1 %311 }
 0x17e   : > { %v315_v28 = vsel %vm313_vm1, %v302_v26, %v312_v27 }
 0x17f   : > { %318 = vst.msk [vmem:[%s198_s6 + $0x8] sm:$0xff] %vm316_vm2, %v315_v28 }
 0x180 PF: > { %s15_s12 = sadd.s32 1, %s505_s12  }
 0x181   : > { %p12_p1 = scmp.ge.s32.totalorder %s15_s12, 4  }
 0x183   :  { %14 = sbr.rel (!%p12_p1) target bundleno = 1 (0x1), region = 75 }
 0x188   :  { %356 = vsyncpa [#allocation3], 1 }
 0x189   :  { %358 = vsyncpa [#allocation3 + $0x1], 1 }

// kernel: axial_block_forward.16
= control target key start
LH: loop header
LB: loop body
LE: loop exit
PB: predicated region body
PF: predicated region fallthrough
CT: control target
= control target key end

     0   :  { %s494_s12 = smov 0   ;;  %s534_s0 = inlined_call_operand.vmem [shape: f32[2,16,256], index: 0, kind: input, shape index: {}]   ;;  %s535_s1 = inlined_call_operand.vmem [shape: f32[32,16], index: 1, kind: input, shape index: {}]   ;;  %s536_s2 = inlined_call_operand.vmem [shape: f32[2,32,256], index: 2, kind: output, shape index: {0}]   ;;  %s537_s3 = inlined_call_operand.vmem [shape: f32[2,32,2], index: 3, kind: output, shape index: {1}]  }
   0x1 LB: > { %s432_s13 = sadd.s32 4294967295, %s471_s12   ;;  %p436_p0 = scmp.ge.s32.totalorder %s471_s12, 1  ;;  %s471_s12 = sphi %s494_s12, %s14_s12  }
   0x2   : > { %p140_p1 = scmp.lt.s32.totalorder %s471_s12, 3 }
   0x4   : > { %p141_p2 = pnand %p436_p0, %p140_p1 }
   0x5   : > { %p169_p3 = scmp.lt.s32.totalorder (!%p141_p2), %s432_s13, 1 }
   0x6   : > { %144 = sbr.rel (%p141_p2) target bundleno = 368 (0x170), region = 28 }
   0xb   : > { %v473_v0 = vmov 0.0   ;;  %s539_s13 = smov (!%p169_p3, %s432_s13), 1  ;;  %v188_v5 = vld [vmem:[%s535_s1] sm:$0xff]  ;;  %vm192_vm0 = vcmask 130048   ;;  %v190_v6 = vld [vmem:[%s535_s1 + $0x10] sm:$0xff]  ;;  %v189_v7 = vld [vmem:[%s535_s1 + $0x8] sm:$0xff] }
   0xc   : > { %269 = vmatprep.mubr.f32.mxu0 %v473_v0  ;;  %281 = vmatprep.mubr.f32.mxu1 %v473_v0  ;;  %s449_s14 = sshll.u32 %s539_s13, 5  ;;  %v191_v8 = vld [vmem:[%s535_s1 + $0x18] sm:$0xff]  ;;  %s450_s26 = sshll.u32 %s539_s13, 6  ;;  %vm334_vm1 = vcmask 7168   ;;  %vm339_vm2 = vcmask 15360  }
   0xd   : > { %s173_s17 = scalar_lea.vmem %s534_s0, %s449_s14  ;;  %s178_s29 = scalar_lea.vmem %s536_s2, %s450_s26 }
   0xe   : > { %v187_v1 = vld [vmem:[%s173_s17 + $0x18] sm:$0xff]  ;;  %v186_v2 = vld [vmem:[%s173_s17 + $0x10] sm:$0xff]  ;;  %v185_v3 = vld [vmem:[%s173_s17 + $0x8] sm:$0xff]  ;;  %s183_s5 = scalar_lea.vmem %s537_s3, %s449_s14 }
   0xf   : > { %233 = vmatprep.subr.mxu0 %v187_v1  ;;  %452 = vmatprep.subr.mxu1 %v187_v1  ;;  %v184_v4 = vld [vmem:[%s173_s17] sm:$0xff] }
  0x10   : > { %234 = vmatpush1.msra.mxu0 %v186_v2  ;;  %454 = vmatpush1.msra.mxu1 %v186_v2 }
  0x11   : > { %235 = vmatprep.subr.mxu0 %v185_v3  ;;  %453 = vmatprep.subr.mxu1 %v185_v3 }
  0x12   : > { %236 = vmatpush1.msra.mxu0 %v184_v4  ;;  %455 = vmatpush1.msra.mxu1 %v184_v4 }
  0x13   : > { %443 = vmatmul.mubr.msk.f32.vlgmr.msra.gmra.mxu0 %vm192_vm0, %v188_v5  ;;  %445 = vmatmul.mubr.msk.f32.vlgmr.msra.gmra.mxu1 %vm192_vm0, %v190_v6 }
  0x14   : > { %275 = vmatprep.mubr.f32.mxu0 %v473_v0  ;;  %287 = vmatprep.mubr.f32.mxu1 %v473_v0 }
  0x17   : > { %444 = vmatmul.mubr.msk.f32.gmra.mxu0 %vm192_vm0, %v189_v7  ;;  %446 = vmatmul.mubr.msk.f32.gmra.mxu1 %vm192_vm0, %v191_v8 }
  0xd3   : > { %v271_v9 = vpop.f32.mrf.mxu0  ;;  %v283_v10 = vpop.f32.mrf.mxu1 }
  0xd4   : > { %294 = vst [vmem:[%s178_s29] sm:$0xff] %v271_v9  ;;  %298 = vst [vmem:[%s178_s29 + $0x20] sm:$0xff] %v283_v10  ;;  %v314_v18 = vmul.f32 %v271_v9, %v271_v9  ;;  %v318_v30 = vmul.f32 %v283_v10, %v283_v10 }
  0xd5   : > { %v273_v11 = vpop.f32.mrf.mxu0  ;;  %v285_v12 = vpop.f32.mrf.mxu1 }
  0xd6   : > { %295 = vst [vmem:[%s178_s29 + $0x8] sm:$0xff] %v273_v11  ;;  %299 = vst [vmem:[%s178_s29 + $0x28] sm:$0xff] %v285_v12  ;;  %v308_v13 = vadd.f32 %v285_v12, %v283_v10  ;;  %v302_v14 = vadd.f32 %v273_v11, %v271_v9  ;;  %v315_v15 = vmul.f32 %v273_v11, %v273_v11 }
  0xd7   : > { %v277_v16 = vpop.f32.mrf.mxu0  ;;  %v289_v17 = vpop.f32.mrf.mxu1  ;;  %v319_v28 = vmul.f32 %v285_v12, %v285_v12 }
  0xd8   : > { %296 = vst [vmem:[%s178_s29 + $0x10] sm:$0xff] %v277_v16  ;;  %300 = vst [vmem:[%s178_s29 + $0x30] sm:$0xff] %v289_v17  ;;  %309 = vadd.xlane.f32.xlu1 %v308_v13  ;;  %303 = vadd.xlane.f32.xlu0 %v302_v14  ;;  %v322_v23 = vadd.f32 %v315_v15, %v314_v18  ;;  %v316_v24 = vmul.f32 %v277_v16, %v277_v16 }
  0xd9   : > { %v279_v19 = vpop.f32.mrf.mxu0  ;;  %v291_v20 = vpop.f32.mrf.mxu1  ;;  %v320_v29 = vmul.f32 %v289_v17, %v289_v17  ;;  %v328_v32 = vadd.f32 %v319_v28, %v318_v30 }
  0xda   : > { %297 = vst [vmem:[%s178_s29 + $0x18] sm:$0xff] %v279_v19  ;;  %v317_v21 = vmul.f32 %v279_v19, %v279_v19  ;;  %301 = vst [vmem:[%s178_s29 + $0x38] sm:$0xff] %v291_v20  ;;  %v311_v22 = vadd.f32 %v291_v20, %v289_v17  ;;  %v321_v25 = vmul.f32 %v291_v20, %v291_v20 }
  0xdb   : > { %v305_v27 = vadd.f32 %v279_v19, %v277_v16 }
  0xdc   : > { %312 = vadd.xlane.f32.xlu1 %v311_v22  ;;  %323 = vadd.xlane.f32.xlu0 %v322_v23  ;;  %v325_v26 = vadd.f32 %v317_v21, %v316_v24  ;;  %v331_v31 = vadd.f32 %v321_v25, %v320_v29 }
  0xe0   : > { %326 = vadd.xlane.f32.xlu1 %v325_v26  ;;  %306 = vadd.xlane.f32.xlu0 %v305_v27 }
  0xe4   : > { %332 = vadd.xlane.f32.xlu1 %v331_v31  ;;  %329 = vadd.xlane.f32.xlu0 %v328_v32 }
 0x161   : > { %v310_v33 = vpop.xlane.xlu1 %309  ;;  %v304_v34 = vpop.xlane.xlu0 %303 }
 0x165   : > { %v313_v35 = vpop.xlane.xlu1 %312  ;;  %v324_v36 = vpop.xlane.xlu0 %323 }
 0x166   : > { %v335_v37 = vsel %vm334_vm1, %v304_v34, %v324_v36 }
 0x167   : > { %340 = vst.msk [vmem:[%s183_s5] sm:$0xff] %vm339_vm2, %v335_v37 }
 0x169   : > { %v327_v38 = vpop.xlane.xlu1 %326  ;;  %v307_v39 = vpop.xlane.xlu0 %306 }
 0x16a   : > { %v336_v40 = vsel %vm334_vm1, %v307_v39, %v327_v38 }
 0x16b   : > { %341 = vst.msk [vmem:[%s183_s5 + $0x8] sm:$0xff] %vm339_vm2, %v336_v40 }
 0x16d   : > { %v333_v41 = vpop.xlane.xlu1 %332  ;;  %v330_v42 = vpop.xlane.xlu0 %329 }
 0x16e   : > { %v338_v43 = vsel %vm334_vm1, %v313_v35, %v333_v41  ;;  %v337_v44 = vsel %vm334_vm1, %v310_v33, %v330_v42 }
 0x16f   : > { %343 = vst.msk [vmem:[%s183_s5 + $0x18] sm:$0xff] %vm339_vm2, %v338_v43  ;;  %342 = vst.msk [vmem:[%s183_s5 + $0x10] sm:$0xff] %vm339_vm2, %v337_v44 }
 0x170 PF: > { %s14_s12 = sadd.s32 1, %s471_s12  }
 0x171   : > { %p11_p4 = scmp.ge.s32.totalorder %s14_s12, 4  }
 0x173   :  { %13 = sbr.rel (!%p11_p4) target bundleno = 1 (0x1), region = 70 }

// kernel: axial_block_forward.17
= control target key start
LH: loop header
LB: loop body
LE: loop exit
PB: predicated region body
PF: predicated region fallthrough
CT: control target
= control target key end

     0   :  { %s359_s12 = smov 0   ;;  %s400_s0 = inlined_call_operand.vmem [shape: f32[2,32,256], index: 0, kind: input, shape index: {}, may-alias: {0,3}]   ;;  %s401_s1 = inlined_call_operand.vmem [shape: f32[32,1], index: 1, kind: input, shape index: {}]   ;;  %s402_s2 = inlined_call_operand.vmem [shape: f32[32,1], index: 2, kind: input, shape index: {}]   ;;  %s403_s3 = inlined_call_operand.vmem [shape: f32[2,32,256], index: 3, kind: output, shape index: {}, may-alias: {0,3}]  }
   0x1 LB: > { %s306_s13 = sadd.s32 4294967295, %s336_s12   ;;  %p310_p0 = scmp.ge.s32.totalorder %s336_s12, 1  ;;  %s336_s12 = sphi %s359_s12, %s13_s12  }
   0x2   : > { %p137_p1 = scmp.lt.s32.totalorder %s336_s12, 3 }
   0x4   : > { %p138_p2 = pnand %p310_p0, %p137_p1 }
   0x5   : > { %p161_p3 = scmp.lt.s32.totalorder (!%p138_p2), %s306_s13, 1 }
   0x6   : > { %141 = sbr.rel (%p138_p2) target bundleno = 153 (0x99), region = 32 }
   0xb   : > { %v181_v0 = vld [vmem:[%s401_s1 + $0x10] sm:$0xff]  ;;  %v179_v1 = vld [vmem:[%s401_s1] sm:$0xff]  ;;  %v338_v2 = vmov 0   ;;  %v182_v3 = vld [vmem:[%s401_s1 + $0x18] sm:$0xff]  ;;  %s405_s13 = smov (!%p161_p3, %s306_s13), 1 }
   0xc   : > { %329 = vset.pattern.permute.xlu1 %v338_v2  ;;  %328 = vset.pattern.permute.xlu0 %v338_v2  ;;  %v180_v4 = vld [vmem:[%s401_s1 + $0x8] sm:$0xff]  ;;  %v211_v6 = vld [vmem:[%s402_s2] sm:$0xff]  ;;  %v214_v7 = vld [vmem:[%s402_s2 + $0x18] sm:$0xff]  ;;  %s317_s30 = sshll.u32 %s405_s13, 6 }
   0xd   : > { %195 = vperm.xlu1 %329, %v181_v0   ;;  %185 = vperm.xlu0 %328, %v179_v1   ;;  %v212_v5 = vld [vmem:[%s402_s2 + $0x8] sm:$0xff]  ;;  %v213_v8 = vld [vmem:[%s402_s2 + $0x10] sm:$0xff]  ;;  %s165_s6 = scalar_lea.vmem %s400_s0, %s317_s30  ;;  %s170_s9 = scalar_lea.vmem %s403_s3, %s317_s30 }
   0xe   : > { %v171_v11 = vld [vmem:[%s165_s6] sm:$0xff]  ;;  %v172_v12 = vld [vmem:[%s165_s6 + $0x8] sm:$0xff]  ;;  %v173_v15 = vld [vmem:[%s165_s6 + $0x10] sm:$0xff] }
   0xf   : > { %v174_v16 = vld [vmem:[%s165_s6 + $0x18] sm:$0xff]  ;;  %v175_v17 = vld [vmem:[%s165_s6 + $0x20] sm:$0xff]  ;;  %v176_v22 = vld [vmem:[%s165_s6 + $0x28] sm:$0xff] }
  0x10   : > { %v177_v23 = vld [vmem:[%s165_s6 + $0x30] sm:$0xff]  ;;  %v178_v24 = vld [vmem:[%s165_s6 + $0x38] sm:$0xff] }
  0x11   : > { %200 = vperm.xlu1 %329, %v182_v3   ;;  %190 = vperm.xlu0 %328, %v180_v4  }
  0x15   : > { %222 = vperm.xlu1 %329, %v212_v5   ;;  %217 = vperm.xlu0 %328, %v211_v6  }
  0x19   : > { %232 = vperm.xlu1 %329, %v214_v7   ;;  %227 = vperm.xlu0 %328, %v213_v8  }
  0x88   : > { %v196_v9 = vpop.permute.xlu1 %195  ;;  %v186_v10 = vpop.permute.xlu0 %185 }
  0x89   : > { %v203_v18 = vmul.f32 %v186_v10, %v171_v11  ;;  %v204_v19 = vmul.f32 %v186_v10, %v172_v12  ;;  %v207_v31 = vmul.f32 %v196_v9, %v175_v17  ;;  %v208_v32 = vmul.f32 %v196_v9, %v176_v22 }
  0x8c   : > { %v201_v13 = vpop.permute.xlu1 %200  ;;  %v191_v14 = vpop.permute.xlu0 %190 }
  0x8d   : > { %v205_v20 = vmul.f32 %v191_v14, %v173_v15  ;;  %v206_v21 = vmul.f32 %v191_v14, %v174_v16  ;;  %v209_v33 = vmul.f32 %v201_v13, %v177_v23  ;;  %v210_v34 = vmul.f32 %v201_v13, %v178_v24 }
  0x90   : > { %v223_v25 = vpop.permute.xlu1 %222  ;;  %v218_v26 = vpop.permute.xlu0 %217 }
  0x91   : > { %v237_v27 = vadd.f32 %v223_v25, %v205_v20  ;;  %v238_v28 = vadd.f32 %v223_v25, %v206_v21  ;;  %v235_v29 = vadd.f32 %v218_v26, %v203_v18  ;;  %v236_v30 = vadd.f32 %v218_v26, %v204_v19 }
  0x93   : > { %245 = vst [vmem:[%s170_s9 + $0x10] sm:$0xff] %v237_v27  ;;  %246 = vst [vmem:[%s170_s9 + $0x18] sm:$0xff] %v238_v28 }
  0x94   : > { %243 = vst [vmem:[%s170_s9] sm:$0xff] %v235_v29  ;;  %244 = vst [vmem:[%s170_s9 + $0x8] sm:$0xff] %v236_v30  ;;  %v233_v35 = vpop.permute.xlu1 %232  ;;  %v228_v36 = vpop.permute.xlu0 %227 }
  0x95   : > { %v241_v37 = vadd.f32 %v233_v35, %v209_v33  ;;  %v242_v38 = vadd.f32 %v233_v35, %v210_v34  ;;  %v239_v39 = vadd.f32 %v228_v36, %v207_v31  ;;  %v240_v40 = vadd.f32 %v228_v36, %v208_v32 }
  0x97   : > { %249 = vst [vmem:[%s170_s9 + $0x30] sm:$0xff] %v241_v37  ;;  %250 = vst [vmem:[%s170_s9 + $0x38] sm:$0xff] %v242_v38 }
  0x98   : > { %247 = vst [vmem:[%s170_s9 + $0x20] sm:$0xff] %v239_v39  ;;  %248 = vst [vmem:[%s170_s9 + $0x28] sm:$0xff] %v240_v40 }
  0x99 PF: > { %s13_s12 = sadd.s32 1, %s336_s12  }
  0x9a   : > { %p10_p4 = scmp.ge.s32.totalorder %s13_s12, 4  }
  0x9c   :  { %12 = sbr.rel (!%p10_p4) target bundleno = 1 (0x1), region = 62 }

// kernel: axial_block_forward.18
= control target key start
LH: loop header
LB: loop body
LE: loop exit
PB: predicated region body
PF: predicated region fallthrough
CT: control target
= control target key end

     0   :  { %s912_s12 = smov 0   ;;  %s1235_s0 = inlined_call_operand.vmem [shape: f32[32,2,16,16], index: 0, kind: input, shape index: {}]   ;;  %s1236_s1 = inlined_call_operand.vmem [shape: f32[8,16,16], index: 1, kind: input, shape index: {}]   ;;  %s1237_s2 = inlined_call_operand.vmem [shape: f32[32,6,16,16], index: 2, kind: output, shape index: {0}]   ;;  %s1238_s3 = inlined_call_operand.vmem [shape: f32[32,6,2], index: 3, kind: output, shape index: {1}]  }
   0x1 LB: > { %s859_s13 = sadd.s32 4294967295, %s889_s12   ;;  %p863_p0 = scmp.ge.s32.totalorder %s889_s12, 1  ;;  %s889_s12 = sphi %s912_s12, %s14_s12  }
   0x2   : > { %p140_p1 = scmp.lt.s32.totalorder %s889_s12, 33 }
   0x4   : > { %p141_p2 = pnand %p863_p0, %p140_p1 }
   0x5   : > { %p168_p3 = scmp.lt.s32.totalorder (!%p141_p2), %s859_s13, 31 }
   0x6   : > { %144 = sbr.rel (%p141_p2) target bundleno = 483 (0x1e3), region = 28 }
   0xb   : > { %v200_v0 = vlaneseq  ;;  %v891_v1 = vmov 1966171168   ;;  %s1240_s13 = smov (!%p168_p3, %s859_s13), 31  ;;  %vm396_vm0 = vcmask 130048   ;;  %v192_v28 = vld [vmem:[%s1236_s1 + $0x40] sm:$0xff]  ;;  %v193_v33 = vld [vmem:[%s1236_s1 + $0x48] sm:$0xff] }
   0xc   : > { %v292_v2 = vunpack.c.l.s4 %v891_v1  ;;  %s870_s14 = sshll.u32 %s1240_s13, 5  ;;  %v194_v37 = vld [vmem:[%s1236_s1 + $0x50] sm:$0xff]  ;;  %v196_v38 = vld [vmem:[%s1236_s1 + $0x60] sm:$0xff]  ;;  %v195_v44 = vld [vmem:[%s1236_s1 + $0x58] sm:$0xff]  ;;  %s871_s7 = smul.u32 96, %s1240_s13  ;;  %vm584_vm1 = vcmask 130112  }
   0xd   : > { %v922_v3 = vshrl.u32 %v200_v0, 7  ;;  %v574_v4 = vand.u32 127, %v200_v0  ;;  %s172_s17 = scalar_lea.vmem %s1235_s0, %s870_s14  ;;  %v197_v45 = vld [vmem:[%s1236_s1 + $0x68] sm:$0xff]  ;;  %v198_v48 = vld [vmem:[%s1236_s1 + $0x70] sm:$0xff]  ;;  %v199_v49 = vld [vmem:[%s1236_s1 + $0x78] sm:$0xff]  ;;  %vm631_vm2 = vcmask 1041409  }
   0xe   : > { %v293_v5 = vunpack.c.0.s8 %v292_v2  ;;  %v934_v11 = vld [vmem:[%s172_s17] sm:$0xff]  ;;  %v943_v16 = vld [vmem:[%s172_s17 + $0x10] sm:$0xff]  ;;  %s1027_s10 = scalar_lea.vmem %s1237_s2, %s871_s7  ;;  %vm633_vm3 = vcmask 1042434   ;;  %vm635_vm4 = vcmask 1043459   ;;  %vm637_vm5 = vcmask 1044484   ;;  %s867_s29 = sshll.u32 %s1240_s13, 3 }
   0xf   : > { %v213_v6 = vsub.s32 1, %v922_v3  ;;  %v927_v7 = vsub.s32 %v574_v4, %v922_v3  ;;  %v579_v8 = vadd.s32 4294967288, %v574_v4  ;;  %v202_v9 = vsub.s32 0, %v922_v3  ;;  %s181_s5 = scalar_lea.vmem %s1238_s3, %s867_s29 }
  0x10   : > { %v296_v10 = vsub.s32 %v293_v5, %v922_v3  ;;  %v290_v14 = vcombine.high %v934_v11, %v934_v11  ;;  %v315_v17 = vcombine.high %v943_v16, %v943_v16  ;;  %v224_v18 = vsub.s32 2, %v922_v3 }
  0x11   : > { %v937_v12 = vsub.s32 %v579_v8, %v922_v3  ;;  %v214_v13 = vrot.slane %v934_v11, %v213_v6  ;;  %v203_v15 = vrot.slane %v934_v11, %v202_v9  ;;  %v247_v21 = vrot.slane %v943_v16, %v202_v9 }
  0x12   : > { %v297_v19 = vrot.slane %v290_v14, %v296_v10  ;;  %v322_v20 = vrot.slane %v315_v17, %v296_v10  ;;  %v258_v24 = vrot.slane %v943_v16, %v213_v6  ;;  %v951_v25 = vrot.slane %v934_v11, %v224_v18 }
  0x13   : > { %216 = vbcast.lane.b32.xlu1 %v214_v13, 256  ;;  %205 = vbcast.lane.b32.xlu0 %v203_v15, 256  ;;  %v235_v29 = vsub.s32 3, %v922_v3  ;;  %v963_v34 = vrot.slane %v943_v16, %v224_v18  ;;  %vm639_vm6 = vcmask 1045509   ;;  %vm642_vm7 = vcmask 128000  }
  0x14   : > { %v298_v22 = vcombine.high %v297_v19, %v297_v19  ;;  %v305_v23 = vrot.slane %v297_v19, %v296_v10  ;;  %v330_v26 = vrot.slane %v322_v20, %v296_v10  ;;  %v323_v27 = vcombine.high %v322_v20, %v322_v20 }
  0x15   : > { %vm769_vm8 = vcmask 7168   ;;  %vm771_vm9 = vcmask 13312  }
  0x16   : > { %v312_v30 = vrot.slane %v298_v22, %v296_v10  ;;  %v957_v31 = vrot.slane %v305_v23, %v202_v9  ;;  %v313_v32 = vcombine.high %v305_v23, %v305_v23  ;;  %v965_v35 = vrot.slane %v330_v26, %v202_v9 }
  0x17   : > { %220 = vbcast.lane.b32.xlu1 %v214_v13, 264  ;;  %209 = vbcast.lane.b32.xlu0 %v203_v15, 264  ;;  %v337_v36 = vrot.slane %v323_v27, %v296_v10  ;;  %v338_v39 = vcombine.high %v330_v26, %v330_v26 }
  0x18   : > { %v314_v40 = vcombine.high %v312_v30, %v312_v30  ;;  %v973_v41 = vrot.slane %v312_v30, %v202_v9  ;;  %v975_v42 = vrot.slane %v313_v32, %v202_v9  ;;  %v469_v43 = vmul.f32 %v957_v31, %v192_v28 }
  0x19   : > { %v339_v46 = vcombine.high %v337_v36, %v337_v36  ;;  %v984_v47 = vrot.slane %v337_v36, %v202_v9  ;;  %v470_v50 = vmul.f32 %v957_v31, %v193_v33  ;;  %v993_v51 = vrot.slane %v338_v39, %v202_v9 }
  0x1a   : > { %v995_v52 = vrot.slane %v314_v40, %v202_v9  ;;  %v471_v53 = vmul.f32 %v973_v41, %v194_v37  ;;  %v473_v54 = vmul.f32 %v975_v42, %v196_v38  ;;  %v485_v55 = vsel %vm396_vm0, %v469_v43, 0.0 }
  0x1b   : > { %253 = vbcast.lane.b32.xlu1 %v247_v21, 264  ;;  %249 = vbcast.lane.b32.xlu0 %v247_v21, 256  ;;  %v1000_v56 = vrot.slane %v339_v46, %v202_v9  ;;  %v472_v57 = vmul.f32 %v973_v41, %v195_v44  ;;  %v474_v58 = vmul.f32 %v975_v42, %v197_v45  ;;  %v492_v59 = vsel %vm396_vm0, %v470_v50, 0.0 }
  0x1c   : > { %v475_v60 = vmul.f32 %v995_v52, %v198_v48  ;;  %v486_v61 = vsel %vm396_vm0, %v471_v53, 0.0  ;;  %v488_v62 = vsel %vm396_vm0, %v473_v54, 0.0  ;;  %v476_v63 = vmul.f32 %v995_v52, %v199_v49 }
  0x1d   : > { %v487_v0 = vadd.f32 %v486_v61, %v485_v55  ;;  %v493_v1 = vsel %vm396_vm0, %v472_v57, 0.0  ;;  %v495_v2 = vsel %vm396_vm0, %v474_v58, 0.0  ;;  %v477_v4 = vmul.f32 %v965_v35, %v192_v28  ;;  %v186_v55 = vld [vmem:[%s1236_s1 + $0x10] sm:$0xff]  ;;  %v184_v57 = vld [vmem:[%s1236_s1] sm:$0xff]  ;;  %v187_v58 = vld [vmem:[%s1236_s1 + $0x18] sm:$0xff] }
  0x1e   : > { %v490_v5 = vsel %vm396_vm0, %v475_v60, 0.0  ;;  %v494_v6 = vadd.f32 %v493_v1, %v492_v59  ;;  %v497_v8 = vsel %vm396_vm0, %v476_v63, 0.0  ;;  %v479_v9 = vmul.f32 %v984_v47, %v194_v37  ;;  %v185_v59 = vld [vmem:[%s1236_s1 + $0x8] sm:$0xff] }
  0x1f   : > { %264 = vbcast.lane.b32.xlu1 %v258_v24, 264  ;;  %260 = vbcast.lane.b32.xlu0 %v258_v24, 256  ;;  %v489_v10 = vadd.f32 %v488_v62, %v487_v0  ;;  %v481_v13 = vmul.f32 %v993_v51, %v196_v38  ;;  %v483_v14 = vmul.f32 %v1000_v56, %v198_v48  ;;  %v499_v15 = vsel %vm396_vm0, %v477_v4, 0.0 }
  0x20   : > { %v496_v17 = vadd.f32 %v495_v2, %v494_v6  ;;  %v500_v18 = vsel %vm396_vm0, %v479_v9, 0.0  ;;  %v478_v19 = vmul.f32 %v965_v35, %v193_v33  ;;  %v480_v20 = vmul.f32 %v984_v47, %v195_v44 }
  0x21   : > { %v491_v21 = vadd.f32 %v490_v5, %v489_v10  ;;  %v501_v22 = vadd.f32 %v500_v18, %v499_v15  ;;  %v502_v23 = vsel %vm396_vm0, %v481_v13, 0.0  ;;  %v504_v24 = vsel %vm396_vm0, %v483_v14, 0.0 }
  0x22   : > { %v498_v26 = vadd.f32 %v497_v8, %v496_v17  ;;  %v482_v27 = vmul.f32 %v993_v51, %v197_v45  ;;  %v484_v28 = vmul.f32 %v1000_v56, %v199_v49  ;;  %v506_v30 = vsel %vm396_vm0, %v478_v19, 0.0 }
  0x23   : > { %231 = vbcast.lane.b32.xlu1 %v951_v25, 264  ;;  %227 = vbcast.lane.b32.xlu0 %v951_v25, 256  ;;  %521 = vst.msk [vmem:[%s1027_s10 + $0x40] sm:$0xff] %vm396_vm0, %v491_v21  ;;  %v503_v32 = vadd.f32 %v502_v23, %v501_v22  ;;  %v507_v33 = vsel %vm396_vm0, %v480_v20, 0.0  ;;  %v236_v39 = vrot.slane %v934_v11, %v235_v29  ;;  %v549_v46 = vsel %vm396_vm0, %v491_v21, 0.0  ;;  %v188_v22 = vld [vmem:[%s1236_s1 + $0x20] sm:$0xff] }
  0x24   : > { %522 = vst.msk [vmem:[%s1027_s10 + $0x48] sm:$0xff] %vm396_vm0, %v498_v26  ;;  %v508_v36 = vadd.f32 %v507_v33, %v506_v30  ;;  %v509_v37 = vsel %vm396_vm0, %v482_v27, 0.0  ;;  %v511_v38 = vsel %vm396_vm0, %v484_v28, 0.0  ;;  %v280_v44 = vrot.slane %v943_v16, %v235_v29 }
  0x25   : > { %v1040_v25 = vadd.f32 %v504_v24, %v503_v32  ;;  %v655_v11 = vmul.f32 %v498_v26, %v498_v26  ;;  %v654_v48 = vmul.f32 %v491_v21, %v491_v21  ;;  %v189_v21 = vld [vmem:[%s1236_s1 + $0x28] sm:$0xff] }
  0x26   : > { %v510_v40 = vadd.f32 %v509_v37, %v508_v36 }
  0x27   : > { %275 = vbcast.lane.b32.xlu1 %v963_v34, 264  ;;  %271 = vbcast.lane.b32.xlu0 %v963_v34, 256  ;;  %523 = vst.msk [vmem:[%s1027_s10 + $0x50] sm:$0xff] %vm396_vm0, %v1040_v25  ;;  %v552_v34 = vsel %vm396_vm0, %v498_v26, 0.0  ;;  %v685_v45 = vsel %vm396_vm0, %v655_v11, 0.0  ;;  %v682_v16 = vsel %vm396_vm0, %v654_v48, 0.0 }
  0x28   : > { %v1051_v43 = vadd.f32 %v511_v38, %v510_v40  ;;  %v555_v29 = vsel %vm396_vm0, %v1040_v25, 0.0 }
  0x2a   : > { %524 = vst.msk [vmem:[%s1027_s10 + $0x58] sm:$0xff] %vm396_vm0, %v1051_v43  ;;  %v558_v3 = vsel %vm396_vm0, %v1051_v43, 0.0 }
  0x2b   : > { %242 = vbcast.lane.b32.xlu1 %v236_v39, 264  ;;  %238 = vbcast.lane.b32.xlu0 %v236_v39, 256 }
  0x2f   : > { %286 = vbcast.lane.b32.xlu1 %v280_v44, 264  ;;  %282 = vbcast.lane.b32.xlu0 %v280_v44, 256 }
  0x4e   : > { %553 = vadd.xlane.f32.xlu0 %v552_v34 }
  0x52   : > { %686 = vadd.xlane.f32.xlu0 %v685_v45 }
  0x53   : > { %550 = vadd.xlane.f32.xlu1 %v549_v46 }
  0x56   : > { %559 = vadd.xlane.f32.xlu0 %v558_v3 }
  0x57   : > { %683 = vadd.xlane.f32.xlu1 %v682_v16 }
  0x5b   : > { %556 = vadd.xlane.f32.xlu1 %v555_v29 }
  0x85   : > { %v217_v49 = vpop.permute.xlu1 %216  ;;  %v206_v50 = vpop.permute.xlu0 %205 }
  0x86   : > { %v382_v60 = vmul.f32 %v973_v41, %v217_v49  ;;  %v427_v61 = vmul.f32 %v217_v49, %v186_v55  ;;  %v380_v0 = vmul.f32 %v957_v31, %v206_v50  ;;  %v425_v1 = vmul.f32 %v206_v50, %v184_v57 }
  0x88   : > { %v398_v8 = vsel %vm396_vm0, %v382_v60, 0.0  ;;  %v442_v9 = vsel %vm396_vm0, %v427_v61, 0.0  ;;  %v397_v14 = vsel %vm396_vm0, %v380_v0, 0.0  ;;  %v441_v15 = vsel %vm396_vm0, %v425_v1, 0.0  ;;  %v190_v0 = vld [vmem:[%s1236_s1 + $0x30] sm:$0xff] }
  0x89   : > { %v221_v53 = vpop.permute.xlu1 %220  ;;  %v210_v54 = vpop.permute.xlu0 %209  ;;  %v399_v28 = vadd.f32 %v398_v8, %v397_v14  ;;  %v443_v30 = vadd.f32 %v442_v9, %v441_v15 }
  0x8a   : > { %v383_v2 = vmul.f32 %v973_v41, %v221_v53  ;;  %v428_v4 = vmul.f32 %v221_v53, %v187_v58  ;;  %v381_v5 = vmul.f32 %v957_v31, %v210_v54  ;;  %v426_v6 = vmul.f32 %v210_v54, %v185_v59 }
  0x8c   : > { %v405_v17 = vsel %vm396_vm0, %v383_v2, 0.0  ;;  %v449_v18 = vsel %vm396_vm0, %v428_v4, 0.0  ;;  %v404_v41 = vsel %vm396_vm0, %v381_v5, 0.0  ;;  %v448_v19 = vsel %vm396_vm0, %v426_v6, 0.0 }
  0x8d   : > { %v254_v62 = vpop.permute.xlu1 %253  ;;  %v250_v63 = vpop.permute.xlu0 %249  ;;  %v406_v34 = vadd.f32 %v405_v17, %v404_v41  ;;  %v450_v11 = vadd.f32 %v449_v18, %v448_v19 }
  0x8e   : > { %v389_v31 = vmul.f32 %v965_v35, %v254_v62  ;;  %v434_v20 = vmul.f32 %v254_v62, %v185_v59  ;;  %v388_v23 = vmul.f32 %v965_v35, %v250_v63  ;;  %v433_v24 = vmul.f32 %v250_v63, %v184_v57  ;;  %v191_v63 = vld [vmem:[%s1236_s1 + $0x38] sm:$0xff] }
  0x90   : > { %v418_v35 = vsel %vm396_vm0, %v389_v31, 0.0  ;;  %v462_v45 = vsel %vm396_vm0, %v434_v20, 0.0  ;;  %v411_v46 = vsel %vm396_vm0, %v388_v23, 0.0  ;;  %v455_v48 = vsel %vm396_vm0, %v433_v24, 0.0 }
  0x91   : > { %v265_v10 = vpop.permute.xlu1 %264  ;;  %v261_v13 = vpop.permute.xlu0 %260 }
  0x92   : > { %v391_v26 = vmul.f32 %v984_v47, %v265_v10  ;;  %v436_v27 = vmul.f32 %v265_v10, %v187_v58  ;;  %v390_v32 = vmul.f32 %v984_v47, %v261_v13  ;;  %v435_v33 = vmul.f32 %v261_v13, %v186_v55 }
  0x94   : > { %v419_v47 = vsel %vm396_vm0, %v391_v26, 0.0  ;;  %v463_v3 = vsel %vm396_vm0, %v436_v27, 0.0  ;;  %v412_v16 = vsel %vm396_vm0, %v390_v32, 0.0  ;;  %v456_v29 = vsel %vm396_vm0, %v435_v33, 0.0 }
  0x95   : > { %v232_v36 = vpop.permute.xlu1 %231  ;;  %v228_v37 = vpop.permute.xlu0 %227  ;;  %v420_v59 = vadd.f32 %v419_v47, %v418_v35  ;;  %v464_v60 = vadd.f32 %v463_v3, %v462_v45  ;;  %v413_v1 = vadd.f32 %v412_v16, %v411_v46  ;;  %v457_v2 = vadd.f32 %v456_v29, %v455_v48 }
  0x96   : > { %v385_v38 = vmul.f32 %v975_v42, %v232_v36  ;;  %v430_v39 = vmul.f32 %v232_v36, %v189_v21  ;;  %v384_v40 = vmul.f32 %v975_v42, %v228_v37  ;;  %v429_v44 = vmul.f32 %v228_v37, %v188_v22 }
  0x98   : > { %v407_v42 = vsel %vm396_vm0, %v385_v38, 0.0  ;;  %v451_v49 = vsel %vm396_vm0, %v430_v39, 0.0  ;;  %v400_v54 = vsel %vm396_vm0, %v384_v40, 0.0  ;;  %v444_v55 = vsel %vm396_vm0, %v429_v44, 0.0 }
  0x99   : > { %v276_v50 = vpop.permute.xlu1 %275  ;;  %v272_v53 = vpop.permute.xlu0 %271  ;;  %v408_v6 = vadd.f32 %v407_v42, %v406_v34  ;;  %v452_v8 = vadd.f32 %v451_v49, %v450_v11  ;;  %v401_v9 = vadd.f32 %v400_v54, %v399_v28  ;;  %v445_v10 = vadd.f32 %v444_v55, %v443_v30 }
  0x9a   : > { %v393_v57 = vmul.f32 %v993_v51, %v276_v50  ;;  %v438_v58 = vmul.f32 %v276_v50, %v189_v21  ;;  %v392_v61 = vmul.f32 %v993_v51, %v272_v53  ;;  %v437_v62 = vmul.f32 %v272_v53, %v188_v22 }
  0x9c   : > { %v421_v4 = vsel %vm396_vm0, %v393_v57, 0.0  ;;  %v465_v5 = vsel %vm396_vm0, %v438_v58, 0.0  ;;  %v414_v31 = vsel %vm396_vm0, %v392_v61, 0.0  ;;  %v458_v20 = vsel %vm396_vm0, %v437_v62, 0.0 }
  0x9d   : > { %v243_v51 = vpop.permute.xlu1 %242  ;;  %v239_v13 = vpop.permute.xlu0 %238  ;;  %v422_v41 = vadd.f32 %v421_v4, %v420_v59  ;;  %v466_v19 = vadd.f32 %v465_v5, %v464_v60  ;;  %v415_v39 = vadd.f32 %v414_v31, %v413_v1  ;;  %v459_v40 = vadd.f32 %v458_v20, %v457_v2 }
  0x9e   : > { %v387_v14 = vmul.f32 %v995_v52, %v243_v51  ;;  %v432_v15 = vmul.f32 %v243_v51, %v191_v63  ;;  %v386_v17 = vmul.f32 %v995_v52, %v239_v13  ;;  %v431_v18 = vmul.f32 %v239_v13, %v190_v0 }
  0x9f   : > { %v656_v1 = vmul.f32 %v1040_v25, %v1040_v25 }
  0xa0   : > { %v409_v21 = vsel %vm396_vm0, %v387_v14, 0.0  ;;  %v453_v22 = vsel %vm396_vm0, %v432_v15, 0.0  ;;  %v402_v23 = vsel %vm396_vm0, %v386_v17, 0.0  ;;  %v446_v24 = vsel %vm396_vm0, %v431_v18, 0.0 }
  0xa1   : > { %v410_v52 = vadd.f32 %v409_v21, %v408_v6  ;;  %v454_v26 = vadd.f32 %v453_v22, %v452_v8  ;;  %v403_v27 = vadd.f32 %v402_v23, %v401_v9  ;;  %v447_v28 = vadd.f32 %v446_v24, %v445_v10  ;;  %v287_v30 = vpop.permute.xlu1 %286  ;;  %v283_v32 = vpop.permute.xlu0 %282 }
  0xa2   : > { %v395_v33 = vmul.f32 %v1000_v56, %v287_v30  ;;  %v440_v36 = vmul.f32 %v287_v30, %v191_v63  ;;  %v394_v37 = vmul.f32 %v1000_v56, %v283_v32  ;;  %v439_v38 = vmul.f32 %v283_v32, %v190_v0 }
  0xa3   : > { %514 = vst.msk [vmem:[%s1027_s10 + $0x8] sm:$0xff] %vm396_vm0, %v410_v52  ;;  %518 = vst.msk [vmem:[%s1027_s10 + $0x28] sm:$0xff] %vm396_vm0, %v454_v26  ;;  %v528_v44 = vsel %vm396_vm0, %v410_v52, 0.0  ;;  %v525_v34 = vsel %vm396_vm0, %v403_v27, 0.0  ;;  %v537_v16 = vsel %vm396_vm0, %v447_v28, 0.0  ;;  %v646_v50 = vmul.f32 %v403_v27, %v403_v27 }
  0xa4   : > { %513 = vst.msk [vmem:[%s1027_s10] sm:$0xff] %vm396_vm0, %v403_v27  ;;  %517 = vst.msk [vmem:[%s1027_s10 + $0x20] sm:$0xff] %vm396_vm0, %v447_v28  ;;  %v423_v56 = vsel %vm396_vm0, %v395_v33, 0.0  ;;  %v467_v11 = vsel %vm396_vm0, %v440_v36, 0.0  ;;  %v416_v35 = vsel %vm396_vm0, %v394_v37, 0.0  ;;  %v460_v45 = vsel %vm396_vm0, %v439_v38, 0.0  ;;  %529 = vadd.xlane.f32.xlu1 %v528_v44  ;;  %526 = vadd.xlane.f32.xlu0 %v525_v34 }
  0xa5   : > { %v424_v46 = vadd.f32 %v423_v56, %v422_v41  ;;  %v468_v48 = vadd.f32 %v467_v11, %v466_v19  ;;  %v417_v47 = vadd.f32 %v416_v35, %v415_v39  ;;  %v461_v3 = vadd.f32 %v460_v45, %v459_v40 }
  0xa6   : > { %v540_v53 = vsel %vm396_vm0, %v454_v26, 0.0  ;;  %v658_v54 = vsel %vm396_vm0, %v646_v50, 0.0  ;;  %v647_v59 = vmul.f32 %v410_v52, %v410_v52  ;;  %v650_v60 = vmul.f32 %v447_v28, %v447_v28 }
  0xa7   : > { %516 = vst.msk [vmem:[%s1027_s10 + $0x18] sm:$0xff] %vm396_vm0, %v424_v46  ;;  %520 = vst.msk [vmem:[%s1027_s10 + $0x38] sm:$0xff] %vm396_vm0, %v468_v48  ;;  %v531_v29 = vsel %vm396_vm0, %v417_v47, 0.0  ;;  %v534_v42 = vsel %vm396_vm0, %v424_v46, 0.0  ;;  %v543_v49 = vsel %vm396_vm0, %v461_v3, 0.0  ;;  %v648_v55 = vmul.f32 %v417_v47, %v417_v47 }
  0xa8   : > { %515 = vst.msk [vmem:[%s1027_s10 + $0x10] sm:$0xff] %vm396_vm0, %v417_v47  ;;  %519 = vst.msk [vmem:[%s1027_s10 + $0x30] sm:$0xff] %vm396_vm0, %v461_v3  ;;  %538 = vadd.xlane.f32.xlu1 %v537_v16  ;;  %532 = vadd.xlane.f32.xlu0 %v531_v29  ;;  %v546_v57 = vsel %vm396_vm0, %v468_v48, 0.0  ;;  %v661_v61 = vsel %vm396_vm0, %v647_v59, 0.0  ;;  %v670_v62 = vsel %vm396_vm0, %v650_v60, 0.0  ;;  %v649_v63 = vmul.f32 %v424_v46, %v424_v46 }
  0xa9   : > { %v664_v58 = vsel %vm396_vm0, %v648_v55, 0.0  ;;  %v652_v0 = vmul.f32 %v461_v3, %v461_v3  ;;  %v651_v5 = vmul.f32 %v454_v26, %v454_v26  ;;  %v688_v6 = vsel %vm396_vm0, %v656_v1, 0.0 }
  0xaa   : > { %v667_v2 = vsel %vm396_vm0, %v649_v63, 0.0  ;;  %v653_v9 = vmul.f32 %v468_v48, %v468_v48  ;;  %v657_v10 = vmul.f32 %v1051_v43, %v1051_v43 }
  0xab   : > { %v676_v4 = vsel %vm396_vm0, %v652_v0, 0.0  ;;  %v673_v8 = vsel %vm396_vm0, %v651_v5, 0.0 }
  0xac   : > { %535 = vadd.xlane.f32.xlu0 %v534_v42  ;;  %544 = vadd.xlane.f32.xlu1 %v543_v49  ;;  %v679_v51 = vsel %vm396_vm0, %v653_v9, 0.0  ;;  %v691_v25 = vsel %vm396_vm0, %v657_v10, 0.0 }
  0xb0   : > { %541 = vadd.xlane.f32.xlu0 %v540_v53  ;;  %659 = vadd.xlane.f32.xlu1 %v658_v54 }
  0xb4   : > { %547 = vadd.xlane.f32.xlu0 %v546_v57  ;;  %665 = vadd.xlane.f32.xlu1 %v664_v58 }
  0xb8   : > { %662 = vadd.xlane.f32.xlu0 %v661_v61  ;;  %671 = vadd.xlane.f32.xlu1 %v670_v62 }
  0xbc   : > { %668 = vadd.xlane.f32.xlu0 %v667_v2  ;;  %677 = vadd.xlane.f32.xlu1 %v676_v4 }
  0xc0   : > { %674 = vadd.xlane.f32.xlu0 %v673_v8  ;;  %689 = vadd.xlane.f32.xlu1 %v688_v6 }
  0xc4   : > { %680 = vadd.xlane.f32.xlu0 %v679_v51 }
  0xc8   : > { %692 = vadd.xlane.f32.xlu0 %v691_v25 }
  0xd7   : > { %v554_v13 = vpop.xlane.xlu0 %553 }
  0xd8   : > { %v620_v14 = vrot.slane %v554_v13, %v937_v12 }
  0xdb   : > { %v687_v15 = vpop.xlane.xlu0 %686 }
  0xdc   : > { %v551_v17 = vpop.xlane.xlu1 %550  ;;  %v749_v19 = vrot.slane %v687_v15, %v937_v12 }
  0xdd   : > { %v616_v18 = vrot.slane %v551_v17, %v927_v7 }
  0xdf   : > { %v621_v41 = vsel %vm584_vm1, %v620_v14, %v616_v18  ;;  %v560_v43 = vpop.xlane.xlu0 %559 }
  0xe0   : > { %v684_v31 = vpop.xlane.xlu1 %683  ;;  %v629_v22 = vrot.slane %v560_v43, %v937_v12 }
  0xe1   : > { %v745_v20 = vrot.slane %v684_v31, %v927_v7 }
  0xe3   : > { %v1183_v21 = vsel %vm584_vm1, %v749_v19, %v745_v20 }
  0xe4   : > { %v557_v23 = vpop.xlane.xlu1 %556 }
  0xe5   : > { %v625_v24 = vrot.slane %v557_v23, %v927_v7 }
  0xe7   : > { %v630_v52 = vsel %vm584_vm1, %v629_v22, %v625_v24 }
 0x12d   : > { %v530_v26 = vpop.xlane.xlu1 %529  ;;  %v527_v27 = vpop.xlane.xlu0 %526 }
 0x12e   : > { %v583_v28 = vrot.slane %v530_v26, %v937_v12  ;;  %v578_v30 = vrot.slane %v527_v27, %v927_v7 }
 0x130   : > { %v585_v32 = vsel %vm584_vm1, %v583_v28, %v578_v30 }
 0x131   : > { %v539_v33 = vpop.xlane.xlu1 %538  ;;  %v533_v36 = vpop.xlane.xlu0 %532 }
 0x132   : > { %v589_v39 = vrot.slane %v533_v36, %v927_v7  ;;  %v598_v35 = vrot.slane %v539_v33, %v927_v7 }
 0x135   : > { %v545_v37 = vpop.xlane.xlu1 %544  ;;  %v536_v38 = vpop.xlane.xlu0 %535 }
 0x136   : > { %v593_v40 = vrot.slane %v536_v38, %v937_v12  ;;  %v607_v16 = vrot.slane %v545_v37, %v927_v7 }
 0x138   : > { %v594_v44 = vsel %vm584_vm1, %v593_v40, %v589_v39 }
 0x139   : > { %v632_v34 = vsel %vm631_vm2, %v594_v44, %v585_v32  ;;  %v660_v56 = vpop.xlane.xlu1 %659  ;;  %v542_v11 = vpop.xlane.xlu0 %541 }
 0x13a   : > { %v602_v45 = vrot.slane %v542_v11, %v937_v12  ;;  %v709_v53 = vrot.slane %v660_v56, %v927_v7 }
 0x13c   : > { %v603_v46 = vsel %vm584_vm1, %v602_v45, %v598_v35 }
 0x13d   : > { %v634_v48 = vsel %vm633_vm3, %v603_v46, %v632_v34  ;;  %v666_v47 = vpop.xlane.xlu1 %665  ;;  %v548_v3 = vpop.xlane.xlu0 %547 }
 0x13e   : > { %v611_v29 = vrot.slane %v548_v3, %v937_v12  ;;  %v718_v62 = vrot.slane %v666_v47, %v927_v7 }
 0x140   : > { %v612_v42 = vsel %vm584_vm1, %v611_v29, %v607_v16 }
 0x141   : > { %v663_v49 = vpop.xlane.xlu0 %662  ;;  %v636_v50 = vsel %vm635_vm4, %v612_v42, %v634_v48  ;;  %v672_v57 = vpop.xlane.xlu1 %671 }
 0x142   : > { %v713_v54 = vrot.slane %v663_v49, %v937_v12  ;;  %v638_v55 = vsel %vm637_vm5, %v621_v41, %v636_v50  ;;  %v727_v5 = vrot.slane %v672_v57, %v927_v7 }
 0x143   : > { %v640_v58 = vsel %vm639_vm6, %v630_v52, %v638_v55 }
 0x144   : > { %v714_v59 = vsel %vm584_vm1, %v713_v54, %v709_v53  ;;  %v643_v60 = vsel %vm642_vm7, %v640_v58, 0.0 }
 0x145   : > { %644 = vadd.xlane.f32.xlu1 %v643_v60  ;;  %v669_v61 = vpop.xlane.xlu0 %668  ;;  %v678_v1 = vpop.xlane.xlu1 %677 }
 0x146   : > { %v722_v63 = vrot.slane %v669_v61, %v937_v12  ;;  %v736_v25 = vrot.slane %v678_v1, %v927_v7 }
 0x148   : > { %v723_v0 = vsel %vm584_vm1, %v722_v63, %v718_v62 }
 0x149   : > { %v760_v2 = vsel %vm631_vm2, %v723_v0, %v714_v59  ;;  %v675_v4 = vpop.xlane.xlu0 %674  ;;  %v690_v51 = vpop.xlane.xlu1 %689 }
 0x14a   : > { %v731_v6 = vrot.slane %v675_v4, %v937_v12  ;;  %v754_v15 = vrot.slane %v690_v51, %v927_v7 }
 0x14c   : > { %v732_v8 = vsel %vm584_vm1, %v731_v6, %v727_v5 }
 0x14d   : > { %v761_v9 = vsel %vm633_vm3, %v732_v8, %v760_v2  ;;  %v681_v10 = vpop.xlane.xlu0 %680 }
 0x14e   : > { %v740_v13 = vrot.slane %v681_v10, %v937_v12 }
 0x150   : > { %v741_v14 = vsel %vm584_vm1, %v740_v13, %v736_v25 }
 0x151   : > { %v693_v17 = vpop.xlane.xlu0 %692  ;;  %v762_v18 = vsel %vm635_vm4, %v741_v14, %v761_v9 }
 0x152   : > { %v758_v41 = vrot.slane %v693_v17, %v937_v12  ;;  %v763_v19 = vsel %vm637_vm5, %v1183_v21, %v762_v18 }
 0x154   : > { %v759_v31 = vsel %vm584_vm1, %v758_v41, %v754_v15 }
 0x155   : > { %v764_v43 = vsel %vm639_vm6, %v759_v31, %v763_v19 }
 0x156   : > { %v766_v20 = vsel %vm642_vm7, %v764_v43, 0.0 }
 0x157   : > { %767 = vadd.xlane.f32.xlu0 %v766_v20 }
 0x1ce   : > { %v645_v7 = vpop.xlane.xlu1 %644 }
 0x1e0   : > { %v768_v22 = vpop.xlane.xlu0 %767 }
 0x1e1   : > { %v770_v12 = vsel %vm769_vm8, %v645_v7, %v768_v22 }
 0x1e2   : > { %772 = vst.msk [vmem:[%s181_s5] sm:$0x3f] %vm771_vm9, %v770_v12 }
 0x1e3 PF: > { %s14_s12 = sadd.s32 1, %s889_s12  }
 0x1e4   : > { %p11_p4 = scmp.ge.s32.totalorder %s14_s12, 34  }
 0x1e6   :  { %13 = sbr.rel (!%p11_p4) target bundleno = 1 (0x1), region = 70 }

// kernel: axial_block_forward.20
= control target key start
LH: loop header
LB: loop body
LE: loop exit
PB: predicated region body
PF: predicated region fallthrough
CT: control target
= control target key end

     0   :  { %s475_s21 = smov 0   ;;  %s519_s0 = inlined_call_operand.vmem [shape: f32[32,16,16], index: 0, kind: input, shape index: {}, may-alias: {0,6}]   ;;  %s520_s1 = inlined_call_operand.vmem [shape: f32[32,16,16], index: 1, kind: input, shape index: {}]   ;;  %s521_s2 = inlined_call_operand.vmem [shape: f32[16,1], index: 2, kind: input, shape index: {}]   ;;  %s522_s3 = inlined_call_operand.vmem [shape: f32[16,1], index: 3, kind: input, shape index: {}]   ;;  %s523_s4 = inlined_call_operand.vmem [shape: f32[16,1], index: 4, kind: input, shape index: {}]   ;;  %s524_s5 = inlined_call_operand.vmem [shape: f32[16,1], index: 5, kind: input, shape index: {}]   ;;  %s525_s6 = inlined_call_operand.vmem [shape: f32[32,16,16], index: 6, kind: output, shape index: {}, may-alias: {0,6}]  }
   0x1 LB: > { %s404_s22 = sadd.s32 4294967295, %s437_s21   ;;  %p408_p0 = scmp.ge.s32.totalorder %s437_s21, 1  ;;  %s437_s21 = sphi %s475_s21, %s16_s21  }
   0x2   : > { %p222_p1 = scmp.lt.s32.totalorder %s437_s21, 33 }
   0x4   : > { %p223_p2 = pnand %p408_p0, %p222_p1 }
   0x5   : > { %p257_p3 = scmp.lt.s32.totalorder (!%p223_p2), %s404_s22, 31 }
   0x6   : > { %226 = sbr.rel (%p223_p2) target bundleno = 152 (0x98), region = 44 }
   0xb   : > { %v288_v0 = vld [vmem:[%s522_s3] sm:$0xff]  ;;  %v439_v2 = vmov 0   ;;  %v289_v3 = vld [vmem:[%s522_s3 + $0x8] sm:$0xff]  ;;  %s527_s22 = smov (!%p257_p3, %s404_s22), 31  ;;  %vm334_vm0 = vcmask 130048  }
   0xc   : > { %v274_v1 = vld [vmem:[%s521_s2] sm:$0xff]  ;;  %430 = vset.pattern.permute.xlu1 %v439_v2  ;;  %429 = vset.pattern.permute.xlu0 %v439_v2  ;;  %v275_v4 = vld [vmem:[%s521_s2 + $0x8] sm:$0xff]  ;;  %s417_s15 = sshll.u32 %s527_s22, 4 }
   0xd   : > { %292 = vperm.xlu1 %430, %v288_v0   ;;  %278 = vperm.xlu0 %429, %v274_v1   ;;  %v305_v5 = vld [vmem:[%s523_s4 + $0x8] sm:$0xff]  ;;  %v304_v6 = vld [vmem:[%s523_s4] sm:$0xff]  ;;  %s261_s18 = scalar_lea.vmem %s519_s0, %s417_s15  ;;  %s266_s23 = scalar_lea.vmem %s520_s1, %s417_s15 }
   0xe   : > { %v321_v7 = vld [vmem:[%s524_s5 + $0x8] sm:$0xff]  ;;  %v320_v8 = vld [vmem:[%s524_s5] sm:$0xff]  ;;  %s271_s25 = scalar_lea.vmem %s525_s6, %s417_s15 }
   0xf   : > { %v272_v11 = vld [vmem:[%s261_s18] sm:$0xff]  ;;  %v273_v12 = vld [vmem:[%s261_s18 + $0x8] sm:$0xff] }
  0x10   : > { %v303_v17 = vld [vmem:[%s266_s23 + $0x8] sm:$0xff]  ;;  %v302_v18 = vld [vmem:[%s266_s23] sm:$0xff] }
  0x11   : > { %297 = vperm.xlu1 %430, %v289_v3   ;;  %283 = vperm.xlu0 %429, %v275_v4  }
  0x15   : > { %313 = vperm.xlu1 %430, %v305_v5   ;;  %308 = vperm.xlu0 %429, %v304_v6  }
  0x19   : > { %329 = vperm.xlu1 %430, %v321_v7   ;;  %324 = vperm.xlu0 %429, %v320_v8  }
  0x88   : > { %v293_v9 = vpop.permute.xlu1 %292  ;;  %v279_v10 = vpop.permute.xlu0 %278 }
  0x89   : > { %v286_v15 = vmul.f32 %v279_v10, %v272_v11 }
  0x8b   : > { %v300_v21 = vadd.f32 %v293_v9, %v286_v15 }
  0x8c   : > { %v298_v13 = vpop.permute.xlu1 %297  ;;  %v284_v14 = vpop.permute.xlu0 %283 }
  0x8d   : > { %v287_v16 = vmul.f32 %v284_v14, %v273_v12 }
  0x8f   : > { %v301_v22 = vadd.f32 %v298_v13, %v287_v16 }
  0x90   : > { %v314_v19 = vpop.permute.xlu1 %313  ;;  %v309_v20 = vpop.permute.xlu0 %308 }
  0x91   : > { %v317_v23 = vmul.f32 %v314_v19, %v303_v17  ;;  %v316_v24 = vmul.f32 %v309_v20, %v302_v18 }
  0x93   : > { %v319_v25 = vadd.f32 %v317_v23, %v301_v22  ;;  %v318_v26 = vadd.f32 %v316_v24, %v300_v21 }
  0x94   : > { %v330_v27 = vpop.permute.xlu1 %329  ;;  %v325_v28 = vpop.permute.xlu0 %324 }
  0x95   : > { %v333_v29 = vadd.f32 %v330_v27, %v319_v25  ;;  %v332_v30 = vadd.f32 %v325_v28, %v318_v26 }
  0x97   : > { %336 = vst.msk [vmem:[%s271_s25 + $0x8] sm:$0xff] %vm334_vm0, %v333_v29  ;;  %335 = vst.msk [vmem:[%s271_s25] sm:$0xff] %vm334_vm0, %v332_v30 }
  0x98 PF: > { %s16_s21 = sadd.s32 1, %s437_s21  }
  0x99   : > { %p13_p4 = scmp.ge.s32.totalorder %s16_s21, 34  }
  0x9b   :  { %15 = sbr.rel (!%p13_p4) target bundleno = 1 (0x1), region = 77 }

// kernel: axial_block_forward.19
= control target key start
LH: loop header
LB: loop body
LE: loop exit
PB: predicated region body
PF: predicated region fallthrough
CT: control target
= control target key end

     0   :  { %s1656_s27 = smov 0   ;;  %s2149_s0 = inlined_call_operand.vmem [shape: f32[32,6,16,16], index: 0, kind: input, shape index: {}]   ;;  %s2150_s1 = inlined_call_operand.vmem [shape: f32[32,2,16,16], index: 1, kind: input, shape index: {}]   ;;  %s2151_s2 = inlined_call_operand.vmem [shape: f32[8,16,16], index: 2, kind: input, shape index: {}]   ;;  %s2152_s3 = inlined_call_operand.vmem [shape: f32[6,1,1], index: 3, kind: input, shape index: {}]   ;;  %s2153_s4 = inlined_call_operand.vmem [shape: f32[6,1,1], index: 4, kind: input, shape index: {}]   ;;  %s2154_s5 = inlined_call_operand.vmem [shape: f32[32,2,8,16], index: 5, kind: output, shape index: {0}]   ;;  %s2155_s6 = inlined_call_operand.vmem [shape: f32[32,2,8,16], index: 6, kind: output, shape index: {1}]   ;;  %s2156_s7 = inlined_call_operand.vmem [shape: f32[32,2,8,2], index: 7, kind: output, shape index: {2}]   ;;  %s2157_s8 = inlined_call_operand.vmem [shape: f32[32,2,8,2], index: 8, kind: output, shape index: {3}]  }
   0x1 LB: > { %s1509_s28 = sadd.s32 4294967295, %s1606_s27   ;;  %p1513_p0 = scmp.ge.s32.totalorder %s1606_s27, 1  ;;  %s1606_s27 = sphi %s1656_s27, %s19_s27  }
   0x2   : > { %p279_p1 = scmp.lt.s32.totalorder %s1606_s27, 33 }
   0x4   : > { %p280_p2 = pnand %p1513_p0, %p279_p1 }
   0x5   : > { %p333_p3 = scmp.lt.s32.totalorder (!%p280_p2), %s1509_s28, 31 }
   0x6   : > { %283 = sbr.rel (%p280_p2) target bundleno = 836 (0x344), region = 40 }
   0xb   : > { %v1527_v0 = vld [vmem:[%s2152_s3 + $0x2] ss:$0 sm:$0xff]  ;;  %v1525_v1 = vld [vmem:[%s2152_s3] ss:$0 sm:$0xff]  ;;  %v1608_v2 = vmov 0   ;;  %s2159_s28 = smov (!%p333_p3, %s1509_s28), 31 }
   0xc   : > { %1583 = vset.pattern.permute.xlu1 %v1608_v2  ;;  %1582 = vset.pattern.permute.xlu0 %v1608_v2  ;;  %v1528_v3 = vld [vmem:[%s2152_s3 + $0x3] ss:$0 sm:$0xff]  ;;  %v1526_v4 = vld [vmem:[%s2152_s3 + $0x1] ss:$0 sm:$0xff]  ;;  %v1530_v5 = vld [vmem:[%s2152_s3 + $0x5] ss:$0 sm:$0xff] }
   0xd   : > { %420 = vperm.xlu1 %1583, %v1527_v0   ;;  %412 = vperm.xlu0 %1582, %v1525_v1   ;;  %v1529_v6 = vld [vmem:[%s2152_s3 + $0x4] ss:$0 sm:$0xff]  ;;  %v1532_v7 = vld [vmem:[%s2153_s4 + $0x1] ss:$0 sm:$0xff]  ;;  %v1531_v8 = vld [vmem:[%s2153_s4] ss:$0 sm:$0xff] }
   0xe   : > { %v1534_v9 = vld [vmem:[%s2153_s4 + $0x3] ss:$0 sm:$0xff]  ;;  %v1533_v10 = vld [vmem:[%s2153_s4 + $0x2] ss:$0 sm:$0xff]  ;;  %v1536_v11 = vld [vmem:[%s2153_s4 + $0x5] ss:$0 sm:$0xff] }
   0xf   : > { %v1535_v12 = vld [vmem:[%s2153_s4 + $0x4] ss:$0 sm:$0xff]  ;;  %s1570_s11 = smul.u32 96, %s2159_s28  ;;  %vm527_vm0 = vcmask 130048   ;;  %vm1610_vm1 = vmmov 0   ;;  %s1545_s19 = sshll.u32 %s2159_s28, 5 }
  0x10   : > { %s342_s24 = scalar_lea.vmem %s2150_s1, %s1545_s19  ;;  %vm921_vm2 = vcmask 130112   ;;  %vm1058_vm3 = vcmask 1041409   ;;  %vm1060_vm4 = vcmask 1042434   ;;  %vm1062_vm5 = vcmask 1043459  }
  0x11   : > { %424 = vperm.xlu1 %1583, %v1528_v3   ;;  %416 = vperm.xlu0 %1582, %v1526_v4   ;;  %s337_s14 = scalar_lea.vmem %s2149_s0, %s1570_s11  ;;  %vm1064_vm6 = vcmask 1044484   ;;  %vm1066_vm7 = vcmask 1045509   ;;  %vm1068_vm8 = vcmask 1046534   ;;  %vm1070_vm9 = vcmask 1047559   ;;  %s2033_s11 = sshll.u32 %s2159_s28, 4 }
  0x12   : > { %v368_v19 = vld [vmem:[%s337_s14 + $0x28] sm:$0xff]  ;;  %v370_v20 = vld [vmem:[%s337_s14 + $0x38] sm:$0xff]  ;;  %v367_v24 = vld [vmem:[%s337_s14 + $0x20] sm:$0xff]  ;;  %s2067_s16 = scalar_lea.vmem %s2155_s6, %s2033_s11  ;;  %vm1097_vm10 = vcmask 7168   ;;  %s357_s19 = scalar_lea.vmem %s2156_s7, %s2033_s11  ;;  %vm1100_vm11 = vcmask 15360  }
  0x13   : > { %v366_v23 = vld [vmem:[%s337_s14 + $0x18] sm:$0xff]  ;;  %v364_v25 = vld [vmem:[%s337_s14 + $0x8] sm:$0xff]  ;;  %v363_v27 = vld [vmem:[%s337_s14] sm:$0xff]  ;;  %s362_s22 = scalar_lea.vmem %s2157_s8, %s2033_s11 }
  0x14   : > { %v374_v29 = vld [vmem:[%s337_s14 + $0x58] sm:$0xff]  ;;  %v371_v31 = vld [vmem:[%s337_s14 + $0x40] sm:$0xff]  ;;  %v372_v32 = vld [vmem:[%s337_s14 + $0x48] sm:$0xff] }
  0x15   : > { %432 = vperm.xlu1 %1583, %v1530_v5   ;;  %428 = vperm.xlu0 %1582, %v1529_v6   ;;  %v369_v37 = vld [vmem:[%s337_s14 + $0x30] sm:$0xff] }
  0x16   : > { %v365_v43 = vld [vmem:[%s337_s14 + $0x10] sm:$0xff] }
  0x17   : > { %v373_v44 = vld [vmem:[%s337_s14 + $0x50] sm:$0xff]  ;;  %s2044_s14 = scalar_lea.vmem %s2154_s5, %s2033_s11 }
  0x19   : > { %488 = vperm.xlu1 %1583, %v1532_v7   ;;  %484 = vperm.xlu0 %1582, %v1531_v8  }
  0x1d   : > { %496 = vperm.xlu1 %1583, %v1534_v9   ;;  %492 = vperm.xlu0 %1582, %v1533_v10  }
  0x21   : > { %504 = vperm.xlu1 %1583, %v1536_v11   ;;  %500 = vperm.xlu0 %1582, %v1535_v12  }
  0x88   : > { %v421_v13 = vpop.permute.xlu1 %420  ;;  %v413_v14 = vpop.permute.xlu0 %412 }
  0x89   : > { %v440_v26 = vmul.f32 %v421_v13, %v368_v19  ;;  %v439_v35 = vmul.f32 %v421_v13, %v367_v24  ;;  %v436_v36 = vmul.f32 %v413_v14, %v364_v25  ;;  %v435_v40 = vmul.f32 %v413_v14, %v363_v27 }
  0x8c   : > { %v425_v15 = vpop.permute.xlu1 %424  ;;  %v417_v16 = vpop.permute.xlu0 %416 }
  0x8d   : > { %v442_v28 = vmul.f32 %v425_v15, %v370_v20  ;;  %v438_v30 = vmul.f32 %v417_v16, %v366_v23  ;;  %v441_v49 = vmul.f32 %v425_v15, %v369_v37  ;;  %v437_v58 = vmul.f32 %v417_v16, %v365_v43  ;;  %v733_v37 = vld [vmem:[%s2151_s2 + $0x8] sm:$0xff] }
  0x90   : > { %v433_v17 = vpop.permute.xlu1 %432  ;;  %v429_v18 = vpop.permute.xlu0 %428 }
  0x91   : > { %v446_v41 = vmul.f32 %v433_v17, %v374_v29  ;;  %v443_v45 = vmul.f32 %v429_v18, %v371_v31  ;;  %v444_v46 = vmul.f32 %v429_v18, %v372_v32  ;;  %v445_v59 = vmul.f32 %v433_v17, %v373_v44 }
  0x92   : > { %v1609_v29 = vmov 0.0  }
  0x93   : > { %1556 = vmatprep.subr.mxu0 %v1609_v29  ;;  %1563 = vmatprep.subr.mxu1 %v1609_v29 }
  0x94   : > { %v489_v21 = vpop.permute.xlu1 %488  ;;  %v485_v22 = vpop.permute.xlu0 %484  ;;  %1560 = vmatprep.mubr.msk.f32.mxu0 %vm1610_vm1, %v1609_v29  ;;  %1567 = vmatprep.mubr.msk.f32.mxu1 %vm1610_vm1, %v1609_v29 }
  0x95   : > { %v510_v42 = vadd.f32 %v489_v21, %v438_v30  ;;  %v508_v47 = vadd.f32 %v485_v22, %v436_v36  ;;  %v507_v50 = vadd.f32 %v485_v22, %v435_v40  ;;  %v509_v0 = vadd.f32 %v489_v21, %v437_v58 }
  0x98   : > { %v497_v33 = vpop.permute.xlu1 %496  ;;  %v493_v34 = vpop.permute.xlu0 %492 }
  0x99   : > { %v514_v38 = vadd.f32 %v497_v33, %v442_v28  ;;  %v512_v39 = vadd.f32 %v493_v34, %v440_v26  ;;  %v511_v48 = vadd.f32 %v493_v34, %v439_v35  ;;  %v513_v60 = vadd.f32 %v497_v33, %v441_v49 }
  0x9b   : > { %v522_v51 = vadd.f32 %v514_v38, %v510_v42  ;;  %v520_v54 = vadd.f32 %v512_v39, %v508_v47  ;;  %v519_v61 = vadd.f32 %v511_v48, %v507_v50  ;;  %v521_v5 = vadd.f32 %v513_v60, %v509_v0  ;;  %v735_v39 = vld [vmem:[%s2151_s2 + $0x18] sm:$0xff]  ;;  %v732_v42 = vld [vmem:[%s2151_s2] sm:$0xff]  ;;  %v572_v50 = vld [vmem:[%s342_s24 + $0x8] sm:$0xff] }
  0x9c   : > { %v505_v52 = vpop.permute.xlu1 %504  ;;  %v501_v53 = vpop.permute.xlu0 %500  ;;  %v737_v60 = vld [vmem:[%s2151_s2 + $0x28] sm:$0xff] }
  0x9d   : > { %v518_v55 = vadd.f32 %v505_v52, %v446_v41  ;;  %v515_v56 = vadd.f32 %v501_v53, %v443_v45  ;;  %v516_v57 = vadd.f32 %v501_v53, %v444_v46  ;;  %v517_v1 = vadd.f32 %v505_v52, %v445_v59  ;;  %v734_v46 = vld [vmem:[%s2151_s2 + $0x10] sm:$0xff] }
  0x9f   : > { %v526_v62 = vadd.f32 %v522_v51, %v518_v55  ;;  %v524_v63 = vadd.f32 %v520_v54, %v516_v57  ;;  %v523_v4 = vadd.f32 %v519_v61, %v515_v56  ;;  %v525_v7 = vadd.f32 %v521_v5, %v517_v1  ;;  %v573_v55 = vld [vmem:[%s342_s24 + $0x18] sm:$0xff]  ;;  %v736_v1 = vld [vmem:[%s2151_s2 + $0x20] sm:$0xff] }
  0xa1   : > { %v537_v2 = vsel %vm527_vm0, %v526_v62, -inf  ;;  %v531_v3 = vsel %vm527_vm0, %v524_v63, -inf  ;;  %v528_v6 = vsel %vm527_vm0, %v523_v4, -inf  ;;  %v534_v8 = vsel %vm527_vm0, %v525_v7, -inf }
  0xa2   : > { %538 = vmax.xlane.f32.xlu1 %v537_v2  ;;  %532 = vmax.xlane.f32.xlu0 %v531_v3 }
  0xa6   : > { %529 = vmax.xlane.f32.xlu0 %v528_v6  ;;  %v739_v6 = vld [vmem:[%s2151_s2 + $0x38] sm:$0xff] }
  0xaa   : > { %535 = vmax.xlane.f32.xlu0 %v534_v8 }
 0x12b   : > { %v539_v9 = vpop.xlane.xlu1 %538  ;;  %v533_v10 = vpop.xlane.xlu0 %532 }
 0x12c   : > { %v543_v11 = vsub.f32 %v526_v62, %v539_v9  ;;  %v541_v12 = vsub.f32 %v524_v63, %v533_v10 }
 0x12e   : > { %v550_v13 = vmul.f32 1.442695, %v543_v11  ;;  %v546_v14 = vmul.f32 1.442695, %v541_v12  ;;  %v738_v11 = vld [vmem:[%s2151_s2 + $0x30] sm:$0xff] }
 0x12f   : > { %v530_v15 = vpop.xlane.xlu0 %529 }
 0x130   : > { %1584 = vpow2.f32 %v550_v13  ;;  %v540_v16 = vsub.f32 %v523_v4, %v530_v15 }
 0x131   : > { %1586 = vpow2.f32 %v546_v14 }
 0x132   : > { %v544_v17 = vmul.f32 1.442695, %v540_v16  ;;  %v741_v16 = vld [vmem:[%s2151_s2 + $0x48] sm:$0xff] }
 0x133   : > { %v536_v18 = vpop.xlane.xlu0 %535 }
 0x134   : > { %1588 = vpow2.f32 %v544_v17  ;;  %v542_v19 = vsub.f32 %v525_v7, %v536_v18 }
 0x136   : > { %v548_v20 = vmul.f32 1.442695, %v542_v19 }
 0x138   : > { %1590 = vpow2.f32 %v548_v20 }
 0x13d   : > { %v1585_v21 = vpop.eup %1584 }
 0x13e   : > { %v1587_v22 = vpop.eup %1586  ;;  %v561_v23 = vsel %vm527_vm0, %v1585_v21, 0.0 }
 0x13f   : > { %v555_v24 = vsel %vm527_vm0, %v1587_v22, 0.0  ;;  %562 = vadd.xlane.f32.xlu0 %v561_v23 }
 0x140   : > { %556 = vadd.xlane.f32.xlu1 %v555_v24 }
 0x141   : > { %v1589_v25 = vpop.eup %1588 }
 0x142   : > { %v552_v26 = vsel %vm527_vm0, %v1589_v25, 0.0 }
 0x144   : > { %553 = vadd.xlane.f32.xlu1 %v552_v26  ;;  %v743_v26 = vld [vmem:[%s2151_s2 + $0x58] sm:$0xff] }
 0x145   : > { %v1591_v27 = vpop.eup %1590 }
 0x146   : > { %v558_v28 = vsel %vm527_vm0, %v1591_v27, 0.0 }
 0x147   : > { %559 = vadd.xlane.f32.xlu0 %v558_v28 }
 0x1c8   : > { %v563_v30 = vpop.xlane.xlu0 %562 }
 0x1c9   : > { %v557_v31 = vpop.xlane.xlu1 %556  ;;  %1592 = vrcp.f32 %v563_v30 }
 0x1ca   : > { %1594 = vrcp.f32 %v557_v31  ;;  %v742_v31 = vld [vmem:[%s2151_s2 + $0x50] sm:$0xff] }
 0x1cd   : > { %v554_v32 = vpop.xlane.xlu1 %553 }
 0x1ce   : > { %1596 = vrcp.f32 %v554_v32 }
 0x1d0   : > { %v560_v33 = vpop.xlane.xlu0 %559 }
 0x1d1   : > { %1598 = vrcp.f32 %v560_v33 }
 0x1d6   : > { %v1593_v34 = vpop.eup %1592 }
 0x1d7   : > { %v1595_v35 = vpop.eup %1594  ;;  %v1718_v36 = vmul.f32 %v1593_v34, %v1585_v21  ;;  %v740_v21 = vld [vmem:[%s2151_s2 + $0x40] sm:$0xff] }
 0x1d8   : > { %v1723_v38 = vmul.f32 %v1595_v35, %v1587_v22 }
 0x1d9   : > { %1564 = vmatpush3.xpose.msk.msra.mxu1 %vm527_vm0, %v1718_v36  ;;  %v765_v54 = vmul.f32 %v733_v37, %v1718_v36  ;;  %v767_v58 = vmul.f32 %v735_v39, %v1718_v36  ;;  %v769_v4 = vmul.f32 %v737_v60, %v1718_v36  ;;  %v771_v14 = vmul.f32 %v739_v6, %v1718_v36 }
 0x1da   : > { %1557 = vmatpush3.xpose.msk.msra.mxu0 %vm527_vm0, %v1723_v38  ;;  %v749_v40 = vmul.f32 %v733_v37, %v1723_v38  ;;  %1565 = vmatprep.subr.mxu1 %v1609_v29  ;;  %v751_v45 = vmul.f32 %v735_v39, %v1723_v38  ;;  %v753_v63 = vmul.f32 %v737_v60, %v1723_v38  ;;  %v745_v37 = vld [vmem:[%s2151_s2 + $0x68] sm:$0xff] }
 0x1db   : > { %v1597_v41 = vpop.eup %1596  ;;  %1558 = vmatprep.subr.mxu0 %v1609_v29  ;;  %v831_v57 = vsel %vm527_vm0, %v765_v54, 0.0  ;;  %v837_v61 = vsel %vm527_vm0, %v767_v58, 0.0  ;;  %v843_v7 = vsel %vm527_vm0, %v769_v4, 0.0  ;;  %v755_v9 = vmul.f32 %v739_v6, %v1723_v38 }
 0x1dc   : > { %v1737_v43 = vmul.f32 %v1597_v41, %v1589_v25  ;;  %v783_v44 = vsel %vm527_vm0, %v749_v40, 0.0  ;;  %v789_v52 = vsel %vm527_vm0, %v751_v45, 0.0  ;;  %v795_v2 = vsel %vm527_vm0, %v753_v63, 0.0 }
 0x1dd   : > { %784 = vadd.xlane.f32.xlu0 %v783_v44  ;;  %v801_v12 = vsel %vm527_vm0, %v755_v9, 0.0  ;;  %v849_v17 = vsel %vm527_vm0, %v771_v14, 0.0  ;;  %v757_v19 = vmul.f32 %v741_v16, %v1723_v38  ;;  %v773_v24 = vmul.f32 %v741_v16, %v1718_v36  ;;  %v744_v44 = vld [vmem:[%s2151_s2 + $0x60] sm:$0xff] }
 0x1de   : > { %v1599_v47 = vpop.eup %1598  ;;  %1559 = vmatpush3.xpose.msk.msra.mxu0 %vm527_vm0, %v1737_v43  ;;  %v748_v48 = vmul.f32 %v732_v42, %v1737_v43  ;;  %v750_v53 = vmul.f32 %v734_v46, %v1737_v43  ;;  %v752_v5 = vmul.f32 %v736_v1, %v1737_v43  ;;  %v754_v15 = vmul.f32 %v738_v11, %v1737_v43 }
 0x1df   : > { %v1750_v49 = vmul.f32 %v1599_v47, %v1591_v27  ;;  %v807_v22 = vsel %vm527_vm0, %v757_v19, 0.0  ;;  %v756_v25 = vmul.f32 %v740_v21, %v1737_v43  ;;  %v855_v27 = vsel %vm527_vm0, %v773_v24, 0.0 }
 0x1e0   : > { %v780_v51 = vsel %vm527_vm0, %v748_v48, 0.0  ;;  %v786_v56 = vsel %vm527_vm0, %v750_v53, 0.0  ;;  %v792_v8 = vsel %vm527_vm0, %v752_v5, 0.0  ;;  %v798_v18 = vsel %vm527_vm0, %v754_v15, 0.0 }
 0x1e1   : > { %781 = vadd.xlane.f32.xlu1 %v780_v51  ;;  %790 = vadd.xlane.f32.xlu0 %v789_v52  ;;  %v764_v59 = vmul.f32 %v732_v42, %v1750_v49  ;;  %v766_v0 = vmul.f32 %v734_v46, %v1750_v49  ;;  %v768_v10 = vmul.f32 %v736_v1, %v1750_v49  ;;  %v804_v28 = vsel %vm527_vm0, %v756_v25, 0.0 }
 0x1e2   : > { %1566 = vmatpush3.xpose.msk.msra.mxu1 %vm527_vm0, %v1750_v49  ;;  %1561 = vmatmul.mubr.msk.f32.vlgmr.msra.gmra.mxu0 %vm527_vm0, %v572_v50  ;;  %v770_v20 = vmul.f32 %v738_v11, %v1750_v49  ;;  %v759_v29 = vmul.f32 %v743_v26, %v1723_v38  ;;  %v772_v30 = vmul.f32 %v740_v21, %v1750_v49  ;;  %v747_v50 = vld [vmem:[%s2151_s2 + $0x78] sm:$0xff] }
 0x1e3   : > { %v828_v62 = vsel %vm527_vm0, %v764_v59, 0.0  ;;  %v834_v3 = vsel %vm527_vm0, %v766_v0, 0.0  ;;  %v840_v13 = vsel %vm527_vm0, %v768_v10, 0.0  ;;  %v775_v34 = vmul.f32 %v743_v26, %v1718_v36 }
 0x1e4   : > { %v846_v23 = vsel %vm527_vm0, %v770_v20, 0.0  ;;  %v813_v32 = vsel %vm527_vm0, %v759_v29, 0.0  ;;  %v852_v33 = vsel %vm527_vm0, %v772_v30, 0.0  ;;  %v758_v35 = vmul.f32 %v742_v31, %v1737_v43 }
 0x1e5   : > { %787 = vadd.xlane.f32.xlu1 %v786_v56  ;;  %832 = vadd.xlane.f32.xlu0 %v831_v57  ;;  %v861_v39 = vsel %vm527_vm0, %v775_v34, 0.0  ;;  %v761_v41 = vmul.f32 %v745_v37, %v1723_v38  ;;  %v774_v42 = vmul.f32 %v742_v31, %v1750_v49  ;;  %v777_v47 = vmul.f32 %v745_v37, %v1718_v36 }
 0x1e6   : > { %1568 = vmatmul.mubr.msk.f32.vlgmr.msra.gmra.mxu1 %vm527_vm0, %v573_v55  ;;  %v810_v40 = vsel %vm527_vm0, %v758_v35, 0.0  ;;  %v760_v48 = vmul.f32 %v744_v44, %v1737_v43  ;;  %v763_v53 = vmul.f32 %v747_v50, %v1723_v38  ;;  %v776_v54 = vmul.f32 %v744_v44, %v1750_v49  ;;  %v746_v55 = vld [vmem:[%s2151_s2 + $0x70] sm:$0xff] }
 0x1e7   : > { %v819_v45 = vsel %vm527_vm0, %v761_v41, 0.0  ;;  %v858_v46 = vsel %vm527_vm0, %v774_v42, 0.0  ;;  %v867_v51 = vsel %vm527_vm0, %v777_v47, 0.0  ;;  %v779_v58 = vmul.f32 %v747_v50, %v1718_v36 }
 0x1e8   : > { %v816_v52 = vsel %vm527_vm0, %v760_v48, 0.0  ;;  %v825_v56 = vsel %vm527_vm0, %v763_v53, 0.0  ;;  %v864_v57 = vsel %vm527_vm0, %v776_v54, 0.0  ;;  %v762_v59 = vmul.f32 %v746_v55, %v1737_v43 }
 0x1e9   : > { %838 = vadd.xlane.f32.xlu0 %v837_v61  ;;  %829 = vadd.xlane.f32.xlu1 %v828_v62  ;;  %v873_v38 = vsel %vm527_vm0, %v779_v58, 0.0  ;;  %v778_v61 = vmul.f32 %v746_v55, %v1750_v49 }
 0x1ea   : > { %v822_v60 = vsel %vm527_vm0, %v762_v59, 0.0 }
 0x1eb   : > { %v870_v62 = vsel %vm527_vm0, %v778_v61, 0.0 }
 0x1ed   : > { %796 = vadd.xlane.f32.xlu0 %v795_v2  ;;  %835 = vadd.xlane.f32.xlu1 %v834_v3 }
 0x1f1   : > { %844 = vadd.xlane.f32.xlu0 %v843_v7  ;;  %793 = vadd.xlane.f32.xlu1 %v792_v8  ;;  %v910_v7 = vlaneseq }
 0x1f3   : > { %v911_v10 = vand.u32 127, %v910_v7 }
 0x1f5   : > { %802 = vadd.xlane.f32.xlu0 %v801_v12  ;;  %841 = vadd.xlane.f32.xlu1 %v840_v13  ;;  %v913_v13 = vshrl.u32 %v910_v7, 7  ;;  %v916_v14 = vadd.s32 4294967288, %v911_v10 }
 0x1f7   : > { %v1870_v16 = vsub.s32 %v911_v10, %v913_v13  ;;  %v1876_v20 = vsub.s32 %v916_v14, %v913_v13 }
 0x1f9   : > { %850 = vadd.xlane.f32.xlu0 %v849_v17  ;;  %799 = vadd.xlane.f32.xlu1 %v798_v18 }
 0x1fd   : > { %808 = vadd.xlane.f32.xlu0 %v807_v22  ;;  %847 = vadd.xlane.f32.xlu1 %v846_v23 }
 0x201   : > { %856 = vadd.xlane.f32.xlu0 %v855_v27  ;;  %805 = vadd.xlane.f32.xlu1 %v804_v28 }
 0x205   : > { %814 = vadd.xlane.f32.xlu0 %v813_v32  ;;  %853 = vadd.xlane.f32.xlu1 %v852_v33 }
 0x209   : > { %862 = vadd.xlane.f32.xlu0 %v861_v39  ;;  %811 = vadd.xlane.f32.xlu1 %v810_v40 }
 0x20d   : > { %820 = vadd.xlane.f32.xlu0 %v819_v45  ;;  %859 = vadd.xlane.f32.xlu1 %v858_v46 }
 0x211   : > { %868 = vadd.xlane.f32.xlu0 %v867_v51  ;;  %817 = vadd.xlane.f32.xlu1 %v816_v52 }
 0x215   : > { %826 = vadd.xlane.f32.xlu0 %v825_v56  ;;  %865 = vadd.xlane.f32.xlu1 %v864_v57 }
 0x219   : > { %874 = vadd.xlane.f32.xlu0 %v873_v38  ;;  %823 = vadd.xlane.f32.xlu1 %v822_v60 }
 0x21d   : > { %871 = vadd.xlane.f32.xlu1 %v870_v62 }
 0x266   : > { %v785_v63 = vpop.xlane.xlu0 %784 }
 0x267   : > { %v1110_v21 = vmul.f32 %v785_v63, %v785_v63  ;;  %v920_v31 = vrot.slane %v785_v63, %v1876_v20 }
 0x269   : > { %v1180_v32 = vrot.slane %v1110_v21, %v1876_v20 }
 0x26a   : > { %v782_v0 = vpop.xlane.xlu1 %781  ;;  %v791_v1 = vpop.xlane.xlu0 %790 }
 0x26b   : > { %v1109_v17 = vmul.f32 %v782_v0, %v782_v0  ;;  %v1112_v22 = vmul.f32 %v791_v1, %v791_v1  ;;  %v915_v25 = vrot.slane %v782_v0, %v1870_v16  ;;  %v930_v27 = vrot.slane %v791_v1, %v1876_v20 }
 0x26d   : > { %v1176_v26 = vrot.slane %v1109_v17, %v1870_v16  ;;  %v1189_v33 = vrot.slane %v1112_v22, %v1876_v20  ;;  %v922_v44 = vsel %vm921_vm2, %v920_v31, %v915_v25 }
 0x26e   : > { %v788_v2 = vpop.xlane.xlu1 %787  ;;  %v1852_v36 = vpop.xlane.xlu0 %832 }
 0x26f   : > { %v1111_v15 = vmul.f32 %v788_v2, %v788_v2  ;;  %v926_v23 = vrot.slane %v788_v2, %v1870_v16  ;;  %v1126_v35 = vmul.f32 %v1852_v36, %v1852_v36  ;;  %v1181_v45 = vsel %vm921_vm2, %v1180_v32, %v1176_v26 }
 0x270   : > { %v993_v52 = vrot.slane %v1852_v36, %v1876_v20 }
 0x271   : > { %v1185_v24 = vrot.slane %v1111_v15, %v1870_v16  ;;  %v931_v34 = vsel %vm921_vm2, %v930_v27, %v926_v23  ;;  %v1252_v56 = vrot.slane %v1126_v35, %v1876_v20 }
 0x272   : > { %v1854_v43 = vpop.xlane.xlu1 %829  ;;  %v839_v3 = vpop.xlane.xlu0 %838  ;;  %v1059_v51 = vsel %vm1058_vm3, %v931_v34, %v922_v44 }
 0x273   : > { %v1125_v37 = vmul.f32 %v1854_v43, %v1854_v43  ;;  %v1128_v39 = vmul.f32 %v839_v3, %v839_v3  ;;  %v1190_v40 = vsel %vm921_vm2, %v1189_v33, %v1185_v24  ;;  %v989_v46 = vrot.slane %v1854_v43, %v1870_v16 }
 0x274   : > { %v1002_v53 = vrot.slane %v839_v3, %v1876_v20  ;;  %v1317_v55 = vsel %vm1058_vm3, %v1190_v40, %v1181_v45 }
 0x275   : > { %v1248_v57 = vrot.slane %v1125_v37, %v1870_v16  ;;  %v1261_v58 = vrot.slane %v1128_v39, %v1876_v20  ;;  %v994_v62 = vsel %vm921_vm2, %v993_v52, %v989_v46 }
 0x276   : > { %v836_v4 = vpop.xlane.xlu1 %835  ;;  %v1856_v5 = vpop.xlane.xlu0 %796 }
 0x277   : > { %v1127_v28 = vmul.f32 %v836_v4, %v836_v4  ;;  %v998_v41 = vrot.slane %v836_v4, %v1870_v16  ;;  %v1114_v54 = vmul.f32 %v1856_v5, %v1856_v5  ;;  %v939_v0 = vrot.slane %v1856_v5, %v1876_v20 }
 0x278   : > { %v1253_v5 = vsel %vm921_vm2, %v1252_v56, %v1248_v57 }
 0x279   : > { %v1257_v47 = vrot.slane %v1127_v28, %v1870_v16  ;;  %v1003_v59 = vsel %vm921_vm2, %v1002_v53, %v998_v41  ;;  %v1198_v43 = vrot.slane %v1114_v54, %v1876_v20 }
 0x27a   : > { %v1858_v6 = vpop.xlane.xlu1 %793  ;;  %v1860_v49 = vpop.xlane.xlu0 %844  ;;  %v1072_v7 = vsel %vm1058_vm3, %v1003_v59, %v994_v62 }
 0x27b   : > { %v1113_v42 = vmul.f32 %v1858_v6, %v1858_v6  ;;  %v935_v38 = vrot.slane %v1858_v6, %v1870_v16  ;;  %v1262_v63 = vsel %vm921_vm2, %v1261_v58, %v1257_v47  ;;  %v1130_v3 = vmul.f32 %v1860_v49, %v1860_v49 }
 0x27c   : > { %v1011_v10 = vrot.slane %v1860_v49, %v1876_v20  ;;  %v1948_v14 = vsel %vm1058_vm3, %v1262_v63, %v1253_v5 }
 0x27d   : > { %v1194_v60 = vrot.slane %v1113_v42, %v1870_v16  ;;  %v940_v15 = vsel %vm921_vm2, %v939_v0, %v935_v38  ;;  %v1270_v25 = vrot.slane %v1130_v3, %v1876_v20 }
 0x27e   : > { %v1862_v8 = vpop.xlane.xlu1 %841  ;;  %v1864_v9 = vpop.xlane.xlu0 %802  ;;  %v1061_v34 = vsel %vm1060_vm4, %v940_v15, %v1059_v51 }
 0x27f   : > { %v1129_v1 = vmul.f32 %v1862_v8, %v1862_v8  ;;  %v1007_v4 = vrot.slane %v1862_v8, %v1870_v16  ;;  %v1116_v6 = vmul.f32 %v1864_v9, %v1864_v9  ;;  %v1199_v8 = vsel %vm921_vm2, %v1198_v43, %v1194_v60 }
 0x280   : > { %v948_v22 = vrot.slane %v1864_v9, %v1876_v20  ;;  %v1318_v35 = vsel %vm1060_vm4, %v1199_v8, %v1317_v55 }
 0x281   : > { %v1266_v21 = vrot.slane %v1129_v1, %v1870_v16  ;;  %v1012_v26 = vsel %vm921_vm2, %v1011_v10, %v1007_v4  ;;  %v1207_v27 = vrot.slane %v1116_v6, %v1876_v20 }
 0x282   : > { %v1866_v11 = vpop.xlane.xlu1 %799  ;;  %v1868_v12 = vpop.xlane.xlu0 %850  ;;  %v1073_v39 = vsel %vm1060_vm4, %v1012_v26, %v1072_v7 }
 0x283   : > { %v1115_v61 = vmul.f32 %v1866_v11, %v1866_v11  ;;  %v944_v13 = vrot.slane %v1866_v11, %v1870_v16  ;;  %v1020_v31 = vrot.slane %v1868_v12, %v1876_v20  ;;  %v1132_v32 = vmul.f32 %v1868_v12, %v1868_v12 }
 0x284   : > { %v1983_v40 = vsel %vm921_vm2, %v1270_v25, %v1266_v21 }
 0x285   : > { %v1203_v17 = vrot.slane %v1115_v61, %v1870_v16  ;;  %v949_v9 = vsel %vm921_vm2, %v948_v22, %v944_v13  ;;  %v1279_v51 = vrot.slane %v1132_v32, %v1876_v20 }
 0x286   : > { %v1872_v18 = vpop.xlane.xlu1 %847  ;;  %v1874_v19 = vpop.xlane.xlu0 %808  ;;  %v1063_v45 = vsel %vm1062_vm5, %v949_v9, %v1061_v34 }
 0x287   : > { %v1016_v49 = vrot.slane %v1872_v18, %v1870_v16  ;;  %v1131_v28 = vmul.f32 %v1872_v18, %v1872_v18  ;;  %v1118_v33 = vmul.f32 %v1874_v19, %v1874_v19  ;;  %v1208_v37 = vsel %vm921_vm2, %v1207_v27, %v1203_v17 }
 0x288   : > { %v1319_v54 = vsel %vm1062_vm5, %v1208_v37, %v1318_v35 }
 0x289   : > { %v1021_v12 = vsel %vm921_vm2, %v1020_v31, %v1016_v49  ;;  %v1275_v46 = vrot.slane %v1131_v28, %v1870_v16  ;;  %v1216_v52 = vrot.slane %v1118_v33, %v1876_v20 }
 0x28a   : > { %v1883_v29 = vpop.xlane.xlu1 %805  ;;  %v1885_v30 = vpop.xlane.xlu0 %856  ;;  %v1074_v55 = vsel %vm1062_vm5, %v1021_v12, %v1073_v39 }
 0x28b   : > { %v1117_v11 = vmul.f32 %v1883_v29, %v1883_v29  ;;  %v953_v18 = vrot.slane %v1883_v29, %v1870_v16  ;;  %v957_v29 = vrot.slane %v1874_v19, %v1876_v20  ;;  %v1999_v53 = vmul.f32 %v1885_v30, %v1885_v30 }
 0x28c   : > { %v1029_v19 = vrot.slane %v1885_v30, %v1876_v20  ;;  %v2019_v63 = vsel %vm921_vm2, %v1279_v51, %v1275_v46 }
 0x28d   : > { %v1212_v41 = vrot.slane %v1117_v11, %v1870_v16  ;;  %v958_v56 = vsel %vm921_vm2, %v957_v29, %v953_v18  ;;  %v1288_v1 = vrot.slane %v1999_v53, %v1876_v20 }
 0x28e   : > { %v1904_v48 = vpop.xlane.xlu1 %853  ;;  %v1906_v50 = vpop.xlane.xlu0 %814  ;;  %v1065_v4 = vsel %vm1064_vm6, %v958_v56, %v1063_v45 }
 0x28f   : > { %v1025_v47 = vrot.slane %v1904_v48, %v1870_v16  ;;  %v1217_v58 = vsel %vm921_vm2, %v1216_v52, %v1212_v41  ;;  %v2011_v59 = vmul.f32 %v1904_v48, %v1904_v48  ;;  %v2015_v38 = vmul.f32 %v1906_v50, %v1906_v50 }
 0x290   : > { %v966_v0 = vrot.slane %v1906_v50, %v1876_v20 }
 0x291   : > { %v1030_v30 = vsel %vm921_vm2, %v1029_v19, %v1025_v47  ;;  %v1284_v7 = vrot.slane %v2011_v59, %v1870_v16  ;;  %v1225_v10 = vrot.slane %v2015_v38, %v1876_v20 }
 0x292   : > { %v1930_v2 = vpop.xlane.xlu1 %811  ;;  %v1932_v36 = vpop.xlane.xlu0 %862  ;;  %v1075_v8 = vsel %vm1064_vm6, %v1030_v30, %v1074_v55 }
 0x293   : > { %v962_v57 = vrot.slane %v1930_v2, %v1870_v16  ;;  %v1119_v43 = vmul.f32 %v1930_v2, %v1930_v2  ;;  %v1038_v50 = vrot.slane %v1932_v36, %v1876_v20  ;;  %v2047_v2 = vsel %vm1064_vm6, %v1217_v58, %v1319_v54 }
 0x294   : > { %v1136_v26 = vmul.f32 %v1932_v36, %v1932_v36 }
 0x295   : > { %v967_v6 = vsel %vm921_vm2, %v966_v0, %v962_v57  ;;  %v1221_v25 = vrot.slane %v1119_v43, %v1870_v16 }
 0x296   : > { %v1960_v23 = vpop.xlane.xlu1 %859  ;;  %v1962_v24 = vpop.xlane.xlu0 %820  ;;  %v1067_v9 = vsel %vm1066_vm7, %v967_v6, %v1065_v4 }
 0x297   : > { %v1034_v48 = vrot.slane %v1960_v23, %v1870_v16  ;;  %v975_v3 = vrot.slane %v1962_v24, %v1876_v20  ;;  %v1135_v35 = vmul.f32 %v1960_v23, %v1960_v23  ;;  %v1122_v37 = vmul.f32 %v1962_v24, %v1962_v24 }
 0x299   : > { %v1039_v17 = vsel %vm921_vm2, %v1038_v50, %v1034_v48  ;;  %v1234_v57 = vrot.slane %v1122_v37, %v1876_v20  ;;  %v1297_v48 = vrot.slane %v1136_v26, %v1876_v20 }
 0x29a   : > { %v818_v42 = vpop.xlane.xlu1 %817  ;;  %v1987_v44 = vpop.xlane.xlu0 %868  ;;  %v1076_v41 = vsel %vm1066_vm7, %v1039_v17, %v1075_v8 }
 0x29b   : > { %v971_v60 = vrot.slane %v818_v42, %v1870_v16  ;;  %v1047_v21 = vrot.slane %v1987_v44, %v1876_v20  ;;  %v1121_v27 = vmul.f32 %v818_v42, %v818_v42  ;;  %v1138_v58 = vmul.f32 %v1987_v44, %v1987_v44 }
 0x29d   : > { %v976_v15 = vsel %vm921_vm2, %v975_v3, %v971_v60  ;;  %v1230_v23 = vrot.slane %v1121_v27, %v1870_v16  ;;  %v1226_v60 = vsel %vm921_vm2, %v1225_v10, %v1221_v25  ;;  %v1289_v10 = vsel %vm921_vm2, %v1288_v1, %v1284_v7 }
 0x29e   : > { %v866_v61 = vpop.xlane.xlu1 %865  ;;  %v827_v62 = vpop.xlane.xlu0 %826  ;;  %v1069_v33 = vsel %vm1068_vm8, %v976_v15, %v1067_v9  ;;  %v1321_v15 = vsel %vm1066_vm7, %v1226_v60, %v2047_v2 }
 0x29f   : > { %v1043_v5 = vrot.slane %v866_v61, %v1870_v16  ;;  %v984_v22 = vrot.slane %v827_v62, %v1876_v20  ;;  %v1124_v42 = vmul.f32 %v827_v62, %v827_v62  ;;  %v1137_v24 = vmul.f32 %v866_v61, %v866_v61 }
 0x2a0   : > { %v1293_v61 = vrot.slane %v1135_v35, %v1870_v16  ;;  %v1235_v44 = vsel %vm921_vm2, %v1234_v57, %v1230_v23 }
 0x2a1   : > { %v1048_v36 = vsel %vm921_vm2, %v1047_v21, %v1043_v5  ;;  %v1243_v62 = vrot.slane %v1124_v42, %v1876_v20  ;;  %v1302_v43 = vrot.slane %v1137_v24, %v1870_v16  ;;  %v1325_v5 = vsel %vm1060_vm4, %v1983_v40, %v1948_v14 }
 0x2a2   : > { %v824_v13 = vpop.xlane.xlu1 %823  ;;  %v649_v11 = vpop.f32.mrf.mxu0  ;;  %v1077_v51 = vsel %vm1068_vm8, %v1048_v36, %v1076_v41  ;;  %v1322_v17 = vsel %vm1068_vm8, %v1235_v44, %v1321_v15  ;;  %v1298_v14 = vsel %vm921_vm2, %v1297_v48, %v1293_v61  ;;  %v1326_v53 = vsel %vm1062_vm5, %v2019_v63, %v1325_v5 }
 0x2a3   : > { %v980_v49 = vrot.slane %v824_v13, %v1870_v16  ;;  %v875_v28 = vpop.xlane.xlu0 %874  ;;  %876 = vst.msk [vmem:[%s2044_s14] sm:$0xff] %vm527_vm0, %v649_v11  ;;  %v1123_v31 = vmul.f32 %v824_v13, %v824_v13  ;;  %v1083_v47 = vsel %vm527_vm0, %v649_v11, 0.0  ;;  %v1089_v19 = vmul.f32 %v649_v11, %v649_v11 }
 0x2a4   : > { %v1562_v34 = vpop.f32.mrf.mxu0  ;;  %v1056_v45 = vrot.slane %v875_v28, %v1876_v20  ;;  %v1140_v30 = vmul.f32 %v875_v28, %v875_v28  ;;  %v1306_v13 = vrot.slane %v1138_v58, %v1876_v20  ;;  %v1327_v1 = vsel %vm1064_vm6, %v1289_v10, %v1326_v53 }
 0x2a5   : > { %v985_v32 = vsel %vm921_vm2, %v984_v22, %v980_v49  ;;  %v1239_v54 = vrot.slane %v1123_v31, %v1870_v16  ;;  %v1091_v4 = vsel %vm527_vm0, %v1089_v19, 0.0 }
 0x2a6   : > { %v872_v18 = vpop.xlane.xlu1 %871  ;;  %v1071_v39 = vsel %vm1070_vm9, %v985_v32, %v1069_v33  ;;  %v728_v12 = vpop.f32.mrf.mxu1  ;;  %v1315_v8 = vrot.slane %v1140_v30, %v1876_v20  ;;  %v1307_v40 = vsel %vm921_vm2, %v1306_v13, %v1302_v43  ;;  %v1328_v20 = vsel %vm1066_vm7, %v1298_v14, %v1327_v1 }
 0x2a7   : > { %v1052_v46 = vrot.slane %v872_v18, %v1870_v16  ;;  %v1103_v29 = vsel %vm527_vm0, %v1071_v39, 0.0  ;;  %1081 = vst.msk [vmem:[%s2067_s16] sm:$0xff] %vm527_vm0, %v1071_v39  ;;  %877 = vst.msk [vmem:[%s2044_s14 + $0x8] sm:$0xff] %vm527_vm0, %v728_v12  ;;  %v1139_v55 = vmul.f32 %v872_v18, %v872_v18  ;;  %v1086_v6 = vsel %vm527_vm0, %v728_v12, 0.0 }
 0x2a8   : > { %1104 = vadd.xlane.f32.xlu1 %v1103_v29  ;;  %v1569_v52 = vpop.f32.mrf.mxu1  ;;  %v1244_v50 = vsel %vm921_vm2, %v1243_v62, %v1239_v54  ;;  %v1090_v21 = vmul.f32 %v728_v12, %v728_v12  ;;  %v1329_v22 = vsel %vm1068_vm8, %v1307_v40, %v1328_v20 }
 0x2a9   : > { %v1057_v56 = vsel %vm921_vm2, %v1056_v45, %v1052_v46  ;;  %v1311_v3 = vrot.slane %v1139_v55, %v1870_v16  ;;  %v1323_v16 = vsel %vm1070_vm9, %v1244_v50, %v1322_v17 }
 0x2aa   : > { %v1078_v38 = vsel %vm1070_vm9, %v1057_v56, %v1077_v51  ;;  %v1333_v2 = vsel %vm527_vm0, %v1323_v16, 0.0  ;;  %v1094_v7 = vsel %vm527_vm0, %v1090_v21, 0.0 }
 0x2ab   : > { %v1106_v0 = vsel %vm527_vm0, %v1078_v38, 0.0  ;;  %1082 = vst.msk [vmem:[%s2067_s16 + $0x8] sm:$0xff] %vm527_vm0, %v1078_v38  ;;  %v1316_v59 = vsel %vm921_vm2, %v1315_v8, %v1311_v3 }
 0x2ac   : > { %1084 = vadd.xlane.f32.xlu1 %v1083_v47  ;;  %1107 = vadd.xlane.f32.xlu0 %v1106_v0  ;;  %v1330_v49 = vsel %vm1070_vm9, %v1316_v59, %v1329_v22 }
 0x2ad   : > { %v1336_v63 = vsel %vm527_vm0, %v1330_v49, 0.0 }
 0x2b0   : > { %1092 = vadd.xlane.f32.xlu1 %v1091_v4  ;;  %1087 = vadd.xlane.f32.xlu0 %v1086_v6 }
 0x2b4   : > { %1334 = vadd.xlane.f32.xlu1 %v1333_v2  ;;  %1095 = vadd.xlane.f32.xlu0 %v1094_v7 }
 0x2b8   : > { %1337 = vadd.xlane.f32.xlu0 %v1336_v63 }
 0x331   : > { %v1105_v11 = vpop.xlane.xlu1 %1104 }
 0x335   : > { %v1085_v25 = vpop.xlane.xlu1 %1084  ;;  %v1108_v26 = vpop.xlane.xlu0 %1107 }
 0x339   : > { %v1093_v27 = vpop.xlane.xlu1 %1092  ;;  %v1088_v28 = vpop.xlane.xlu0 %1087 }
 0x33a   : > { %v1098_v9 = vsel %vm1097_vm10, %v1085_v25, %v1093_v27 }
 0x33b   : > { %1101 = vst.msk [vmem:[%s357_s19] sm:$0xff] %vm1100_vm11, %v1098_v9 }
 0x33d   : > { %v1335_v31 = vpop.xlane.xlu1 %1334  ;;  %v1096_v32 = vpop.xlane.xlu0 %1095 }
 0x33e   : > { %v1339_v33 = vsel %vm1097_vm10, %v1105_v11, %v1335_v31  ;;  %v1099_v36 = vsel %vm1097_vm10, %v1088_v28, %v1096_v32 }
 0x33f   : > { %1341 = vst.msk [vmem:[%s362_s22] sm:$0xff] %vm1100_vm11, %v1339_v33  ;;  %1102 = vst.msk [vmem:[%s357_s19 + $0x8] sm:$0xff] %vm1100_vm11, %v1099_v36 }
 0x341   : > { %v1338_v34 = vpop.xlane.xlu0 %1337 }
 0x342   : > { %v1340_v35 = vsel %vm1097_vm10, %v1108_v26, %v1338_v34 }
 0x343   : > { %1342 = vst.msk [vmem:[%s362_s22 + $0x8] sm:$0xff] %vm1100_vm11, %v1340_v35 }
 0x344 PF: > { %s19_s27 = sadd.s32 1, %s1606_s27  }
 0x345   : > { %p16_p4 = scmp.ge.s32.totalorder %s19_s27, 34  }
 0x347   :  { %18 = sbr.rel (!%p16_p4) target bundleno = 1 (0x1), region = 109 }

// kernel: axial_block_forward.25
= control target key start
LH: loop header
LB: loop body
LE: loop exit
PB: predicated region body
PF: predicated region fallthrough
CT: control target
= control target key end

     0   :  { %s477_s21 = smov 0   ;;  %s521_s0 = inlined_call_operand.vmem [shape: f32[32,16,16], index: 0, kind: input, shape index: {}, may-alias: {0,6}]   ;;  %s522_s1 = inlined_call_operand.vmem [shape: f32[32,16,16], index: 1, kind: input, shape index: {}]   ;;  %s523_s2 = inlined_call_operand.vmem [shape: f32[16,1], index: 2, kind: input, shape index: {}]   ;;  %s524_s3 = inlined_call_operand.vmem [shape: f32[16,1], index: 3, kind: input, shape index: {}]   ;;  %s525_s4 = inlined_call_operand.vmem [shape: f32[16,1], index: 4, kind: input, shape index: {}]   ;;  %s526_s5 = inlined_call_operand.vmem [shape: f32[16,1], index: 5, kind: input, shape index: {}]   ;;  %s527_s6 = inlined_call_operand.vmem [shape: f32[32,16,16], index: 6, kind: output, shape index: {}, may-alias: {0,6}]  }
   0x1 LB: > { %s406_s22 = sadd.s32 4294967295, %s439_s21   ;;  %p410_p0 = scmp.ge.s32.totalorder %s439_s21, 1  ;;  %s439_s21 = sphi %s477_s21, %s16_s21  }
   0x2   : > { %p222_p1 = scmp.lt.s32.totalorder %s439_s21, 33 }
   0x4   : > { %p223_p2 = pnand %p410_p0, %p222_p1 }
   0x5   : > { %p257_p3 = scmp.lt.s32.totalorder (!%p223_p2), %s406_s22, 31 }
   0x6   : > { %226 = sbr.rel (%p223_p2) target bundleno = 154 (0x9a), region = 44 }
   0xb   : > { %v288_v0 = vld [vmem:[%s524_s3] sm:$0xff]  ;;  %v441_v2 = vmov 0   ;;  %v289_v3 = vld [vmem:[%s524_s3 + $0x8] sm:$0xff]  ;;  %s529_s22 = smov (!%p257_p3, %s406_s22), 31  ;;  %vm336_vm0 = vcmask 130048  }
   0xc   : > { %v274_v1 = vld [vmem:[%s523_s2] sm:$0xff]  ;;  %432 = vset.pattern.permute.xlu1 %v441_v2  ;;  %431 = vset.pattern.permute.xlu0 %v441_v2  ;;  %v275_v4 = vld [vmem:[%s523_s2 + $0x8] sm:$0xff]  ;;  %s419_s15 = sshll.u32 %s529_s22, 4 }
   0xd   : > { %292 = vperm.xlu1 %432, %v288_v0   ;;  %278 = vperm.xlu0 %431, %v274_v1   ;;  %v305_v5 = vld [vmem:[%s525_s4 + $0x8] sm:$0xff]  ;;  %v304_v6 = vld [vmem:[%s525_s4] sm:$0xff]  ;;  %s261_s18 = scalar_lea.vmem %s521_s0, %s419_s15  ;;  %s266_s23 = scalar_lea.vmem %s522_s1, %s419_s15 }
   0xe   : > { %v321_v7 = vld [vmem:[%s526_s5 + $0x8] sm:$0xff]  ;;  %v320_v8 = vld [vmem:[%s526_s5] sm:$0xff]  ;;  %s271_s25 = scalar_lea.vmem %s527_s6, %s419_s15 }
   0xf   : > { %v272_v11 = vld [vmem:[%s261_s18] sm:$0xff]  ;;  %v273_v12 = vld [vmem:[%s261_s18 + $0x8] sm:$0xff] }
  0x10   : > { %v303_v17 = vld [vmem:[%s266_s23 + $0x8] sm:$0xff]  ;;  %v302_v18 = vld [vmem:[%s266_s23] sm:$0xff] }
  0x11   : > { %297 = vperm.xlu1 %432, %v289_v3   ;;  %283 = vperm.xlu0 %431, %v275_v4  }
  0x15   : > { %313 = vperm.xlu1 %432, %v305_v5   ;;  %308 = vperm.xlu0 %431, %v304_v6  }
  0x19   : > { %329 = vperm.xlu1 %432, %v321_v7   ;;  %324 = vperm.xlu0 %431, %v320_v8  }
  0x88   : > { %v293_v9 = vpop.permute.xlu1 %292  ;;  %v279_v10 = vpop.permute.xlu0 %278 }
  0x89   : > { %v286_v15 = vmul.f32 %v279_v10, %v272_v11 }
  0x8b   : > { %v300_v21 = vadd.f32 %v293_v9, %v286_v15 }
  0x8c   : > { %v298_v13 = vpop.permute.xlu1 %297  ;;  %v284_v14 = vpop.permute.xlu0 %283 }
  0x8d   : > { %v287_v16 = vmul.f32 %v284_v14, %v273_v12 }
  0x8f   : > { %v301_v22 = vadd.f32 %v298_v13, %v287_v16 }
  0x90   : > { %v314_v19 = vpop.permute.xlu1 %313  ;;  %v309_v20 = vpop.permute.xlu0 %308 }
  0x91   : > { %v317_v23 = vmul.f32 %v314_v19, %v303_v17  ;;  %v316_v24 = vmul.f32 %v309_v20, %v302_v18 }
  0x93   : > { %v319_v25 = vadd.f32 %v317_v23, %v301_v22  ;;  %v318_v26 = vadd.f32 %v316_v24, %v300_v21 }
  0x94   : > { %v330_v27 = vpop.permute.xlu1 %329  ;;  %v325_v28 = vpop.permute.xlu0 %324 }
  0x95   : > { %v333_v29 = vadd.f32 %v330_v27, %v319_v25  ;;  %v332_v30 = vadd.f32 %v325_v28, %v318_v26 }
  0x97   : > { %v335_v31 = vmax.f32 %v333_v29, 0.0  ;;  %v334_v32 = vmax.f32 %v332_v30, 0.0 }
  0x99   : > { %338 = vst.msk [vmem:[%s271_s25 + $0x8] sm:$0xff] %vm336_vm0, %v335_v31  ;;  %337 = vst.msk [vmem:[%s271_s25] sm:$0xff] %vm336_vm0, %v334_v32 }
  0x9a PF: > { %s16_s21 = sadd.s32 1, %s439_s21  }
  0x9b   : > { %p13_p4 = scmp.ge.s32.totalorder %s16_s21, 34  }
  0x9d   :  { %15 = sbr.rel (!%p13_p4) target bundleno = 1 (0x1), region = 77 }

// kernel: axial_block_forward.27
= control target key start
LH: loop header
LB: loop body
LE: loop exit
PB: predicated region body
PF: predicated region fallthrough
CT: control target
= control target key end

     0   :  { %s450_s15 = smov 0   ;;  %s519_s0 = inlined_call_operand.vmem [shape: f32[2,32,256], index: 0, kind: input, shape index: {}, may-alias: {0,4}]   ;;  %s520_s1 = inlined_call_operand.vmem [shape: f32[32,1], index: 1, kind: input, shape index: {}]   ;;  %s521_s2 = inlined_call_operand.vmem [shape: f32[32,1], index: 2, kind: input, shape index: {}]   ;;  %s522_s3 = inlined_call_operand.vmem [shape: f32[2,32,256], index: 3, kind: input, shape index: {}]   ;;  %s523_s4 = inlined_call_operand.vmem [shape: f32[2,32,256], index: 4, kind: output, shape index: {}, may-alias: {0,4}]  }
   0x1 LB: > { %s389_s16 = sadd.s32 4294967295, %s422_s15   ;;  %p393_p0 = scmp.ge.s32.totalorder %s422_s15, 1  ;;  %s422_s15 = sphi %s450_s15, %s14_s15  }
   0x2   : > { %p172_p1 = scmp.lt.s32.totalorder %s422_s15, 3 }
   0x4   : > { %p173_p2 = pnand %p393_p0, %p172_p1 }
   0x5   : > { %p203_p3 = scmp.lt.s32.totalorder (!%p173_p2), %s389_s16, 1 }
   0x6   : > { %176 = sbr.rel (%p173_p2) target bundleno = 158 (0x9e), region = 36 }
   0xb   : > { %v228_v0 = vld [vmem:[%s520_s1 + $0x10] sm:$0xff]  ;;  %v226_v1 = vld [vmem:[%s520_s1] sm:$0xff]  ;;  %v424_v2 = vmov 0   ;;  %v229_v3 = vld [vmem:[%s520_s1 + $0x18] sm:$0xff]  ;;  %s525_s16 = smov (!%p203_p3, %s389_s16), 1 }
   0xc   : > { %415 = vset.pattern.permute.xlu1 %v424_v2  ;;  %414 = vset.pattern.permute.xlu0 %v424_v2  ;;  %v227_v4 = vld [vmem:[%s520_s1 + $0x8] sm:$0xff]  ;;  %v258_v6 = vld [vmem:[%s521_s2] sm:$0xff]  ;;  %v261_v7 = vld [vmem:[%s521_s2 + $0x18] sm:$0xff]  ;;  %s482_s7 = sshll.u32 %s525_s16, 6 }
   0xd   : > { %242 = vperm.xlu1 %415, %v228_v0   ;;  %232 = vperm.xlu0 %414, %v226_v1   ;;  %v259_v5 = vld [vmem:[%s521_s2 + $0x8] sm:$0xff]  ;;  %v260_v8 = vld [vmem:[%s521_s2 + $0x10] sm:$0xff]  ;;  %s207_s10 = scalar_lea.vmem %s519_s0, %s482_s7  ;;  %s492_s13 = scalar_lea.vmem %s522_s3, %s482_s7 }
   0xe   : > { %v218_v11 = vld [vmem:[%s207_s10] sm:$0xff]  ;;  %v219_v12 = vld [vmem:[%s207_s10 + $0x8] sm:$0xff]  ;;  %v220_v15 = vld [vmem:[%s207_s10 + $0x10] sm:$0xff]  ;;  %s502_s17 = scalar_lea.vmem %s523_s4, %s482_s7 }
   0xf   : > { %v221_v16 = vld [vmem:[%s207_s10 + $0x18] sm:$0xff]  ;;  %v222_v17 = vld [vmem:[%s207_s10 + $0x20] sm:$0xff]  ;;  %v292_v22 = vld [vmem:[%s492_s13 + $0x10] sm:$0xff] }
  0x10   : > { %v293_v24 = vld [vmem:[%s492_s13 + $0x18] sm:$0xff]  ;;  %v290_v26 = vld [vmem:[%s492_s13] sm:$0xff]  ;;  %v291_v27 = vld [vmem:[%s492_s13 + $0x8] sm:$0xff] }
  0x11   : > { %247 = vperm.xlu1 %415, %v229_v3   ;;  %237 = vperm.xlu0 %414, %v227_v4   ;;  %v223_v28 = vld [vmem:[%s207_s10 + $0x28] sm:$0xff]  ;;  %v224_v29 = vld [vmem:[%s207_s10 + $0x30] sm:$0xff]  ;;  %v225_v30 = vld [vmem:[%s207_s10 + $0x38] sm:$0xff] }
  0x12   : > { %v296_v44 = vld [vmem:[%s492_s13 + $0x30] sm:$0xff]  ;;  %v297_v45 = vld [vmem:[%s492_s13 + $0x38] sm:$0xff]  ;;  %v294_v51 = vld [vmem:[%s492_s13 + $0x20] sm:$0xff] }
  0x13   : > { %v295_v52 = vld [vmem:[%s492_s13 + $0x28] sm:$0xff] }
  0x15   : > { %269 = vperm.xlu1 %415, %v259_v5   ;;  %264 = vperm.xlu0 %414, %v258_v6  }
  0x19   : > { %279 = vperm.xlu1 %415, %v261_v7   ;;  %274 = vperm.xlu0 %414, %v260_v8  }
  0x88   : > { %v243_v9 = vpop.permute.xlu1 %242  ;;  %v233_v10 = vpop.permute.xlu0 %232 }
  0x89   : > { %v250_v18 = vmul.f32 %v233_v10, %v218_v11  ;;  %v251_v19 = vmul.f32 %v233_v10, %v219_v12  ;;  %v254_v39 = vmul.f32 %v243_v9, %v222_v17  ;;  %v255_v40 = vmul.f32 %v243_v9, %v223_v28 }
  0x8c   : > { %v248_v13 = vpop.permute.xlu1 %247  ;;  %v238_v14 = vpop.permute.xlu0 %237 }
  0x8d   : > { %v252_v20 = vmul.f32 %v238_v14, %v220_v15  ;;  %v253_v21 = vmul.f32 %v238_v14, %v221_v16  ;;  %v256_v41 = vmul.f32 %v248_v13, %v224_v29  ;;  %v257_v42 = vmul.f32 %v248_v13, %v225_v30 }
  0x90   : > { %v270_v23 = vpop.permute.xlu1 %269  ;;  %v265_v25 = vpop.permute.xlu0 %264 }
  0x91   : > { %v284_v31 = vadd.f32 %v270_v23, %v252_v20  ;;  %v285_v32 = vadd.f32 %v270_v23, %v253_v21  ;;  %v282_v33 = vadd.f32 %v265_v25, %v250_v18  ;;  %v283_v34 = vadd.f32 %v265_v25, %v251_v19 }
  0x93   : > { %v300_v35 = vadd.f32 %v292_v22, %v284_v31  ;;  %v301_v36 = vadd.f32 %v293_v24, %v285_v32  ;;  %v298_v37 = vadd.f32 %v290_v26, %v282_v33  ;;  %v299_v38 = vadd.f32 %v291_v27, %v283_v34 }
  0x94   : > { %v280_v43 = vpop.permute.xlu1 %279  ;;  %v275_v46 = vpop.permute.xlu0 %274 }
  0x95   : > { %v308_v47 = vmax.f32 %v300_v35, 0.0  ;;  %v309_v48 = vmax.f32 %v301_v36, 0.0  ;;  %v306_v49 = vmax.f32 %v298_v37, 0.0  ;;  %v307_v50 = vmax.f32 %v299_v38, 0.0 }
  0x96   : > { %v288_v53 = vadd.f32 %v280_v43, %v256_v41  ;;  %v289_v54 = vadd.f32 %v280_v43, %v257_v42  ;;  %v286_v55 = vadd.f32 %v275_v46, %v254_v39  ;;  %v287_v56 = vadd.f32 %v275_v46, %v255_v40 }
  0x97   : > { %316 = vst [vmem:[%s502_s17 + $0x10] sm:$0xff] %v308_v47  ;;  %317 = vst [vmem:[%s502_s17 + $0x18] sm:$0xff] %v309_v48 }
  0x98   : > { %314 = vst [vmem:[%s502_s17] sm:$0xff] %v306_v49  ;;  %315 = vst [vmem:[%s502_s17 + $0x8] sm:$0xff] %v307_v50  ;;  %v304_v57 = vadd.f32 %v296_v44, %v288_v53  ;;  %v305_v58 = vadd.f32 %v297_v45, %v289_v54  ;;  %v302_v59 = vadd.f32 %v294_v51, %v286_v55 }
  0x99   : > { %v303_v60 = vadd.f32 %v295_v52, %v287_v56 }
  0x9a   : > { %v312_v61 = vmax.f32 %v304_v57, 0.0  ;;  %v313_v62 = vmax.f32 %v305_v58, 0.0  ;;  %v310_v63 = vmax.f32 %v302_v59, 0.0 }
  0x9b   : > { %v311_v0 = vmax.f32 %v303_v60, 0.0 }
  0x9c   : > { %320 = vst [vmem:[%s502_s17 + $0x30] sm:$0xff] %v312_v61  ;;  %321 = vst [vmem:[%s502_s17 + $0x38] sm:$0xff] %v313_v62 }
  0x9d   : > { %318 = vst [vmem:[%s502_s17 + $0x20] sm:$0xff] %v310_v63  ;;  %319 = vst [vmem:[%s502_s17 + $0x28] sm:$0xff] %v311_v0 }
  0x9e PF: > { %s14_s15 = sadd.s32 1, %s422_s15  }
  0x9f   : > { %p11_p4 = scmp.ge.s32.totalorder %s14_s15, 4  }
  0xa1   :  { %13 = sbr.rel (!%p11_p4) target bundleno = 1 (0x1), region = 69 }

</bundles_post_ra>
